<compile_context>
chip_gen: v6e
topology: v6e:2x2x1
jax: 0.10.0
libtpu: 0.0.40
codegen_flags: <defaults>
</compile_context>

<pallas_src>
import math
from functools import partial

import jax
import jax.numpy as jnp
from jax.experimental import pallas as pl
from jax.experimental.pallas import tpu as pltpu

# ----- module hyperparameters (match the PyTorch source) -----
N_EMBD = 384
BLOCK_SIZE = 256
HEAD_SIZE = 64          # head_size used to instantiate Head(head_size)
DROPOUT = 0.2           # nn.Dropout(0.2) -> identity in eval mode

LANE = 128              # TPU vreg lane width


# ------------------------------ kernel -----------------------------------
def _head_kernel(x_ref, wqkv_ref, mask_ref, o_ref, *, padded_d):
    """Causal single-head attention for a block of Bb batch elements.

    x_ref    : (Bb, T, C)  bf16 activations
    wqkv_ref : (C, 3*P)    bf16 fused, lane-padded [q*scale | k | v] weights
    mask_ref : (T, T)      f32 additive causal mask (0 keep / -inf drop)
    o_ref    : (Bb, T, P)  f32 output (columns D..P are zero padding)
    """
    P = padded_d

    # Fused QKV projection: one MXU matmul, bf16 operands, f32 accumulation.
    qkv = jnp.einsum('btc,cd->btd', x_ref[...], wqkv_ref[...],
                     preferred_element_type=jnp.float32)        # (Bb, T, 3P) f32

    # Lane-aligned 128-wide slices -> no cross-lane relayout.
    q = qkv[..., 0 * P:1 * P].astype(jnp.bfloat16)   # 1/sqrt(D) folded into weight
    k = qkv[..., 1 * P:2 * P].astype(jnp.bfloat16)
    v = qkv[..., 2 * P:3 * P].astype(jnp.bfloat16)

    # scores = q @ k^T (batched over Bb), bf16 in / f32 accumulate.
    s = jnp.einsum('bqd,bkd->bqk', q, k,
                   preferred_element_type=jnp.float32)          # (Bb, T, T)

    # Precomputed additive causal mask, broadcast over the batch block.
    s = s + mask_ref[...]

    # Softmax numerator in f32; normalize the (T, P) output instead of the
    # (T, T) probability matrix.
    m = jnp.max(s, axis=-1, keepdims=True)
    p = jnp.exp(s - m)                                          # unnormalized
    l = jnp.sum(p, axis=-1, keepdims=True)

    # TODO(synk): attention dropout is identity in eval mode; training-mode
    # stochastic dropout (pltpu.prng_seed/prng_random_bits) not implemented.

    pv = jnp.einsum('bqk,bkd->bqd', p.astype(jnp.bfloat16), v,
                    preferred_element_type=jnp.float32)         # (Bb, T, P)
    o_ref[...] = pv * pl.reciprocal(l, approx=True)


# ------------------------------ wrapper -----------------------------------
def _pick_batch_block(B, bb_max=8):
    """Largest divisor of B that is <= bb_max while (if possible) keeping the
    grid >= 2 steps so both v7x TensorCores get work."""
    target = min(bb_max, max(1, B // 2)) if B >= 2 else 1
    for bb in range(target, 0, -1):
        if B % bb == 0:
            return bb
    return 1


def head_forward(x, w_query, w_key, w_value, *, head_size=HEAD_SIZE):
    """Pallas equivalent of Head.forward (eval mode).

    x        : (B, T, C) float32, T <= BLOCK_SIZE
    w_query, w_key, w_value : torch nn.Linear weights, shape (head_size, C)
    returns  : (B, T, head_size) float32
    """
    B, T, C = x.shape
    D = head_size
    P = max(LANE, ((D + LANE - 1) // LANE) * LANE)      # lane-padded head dim
    scale = 1.0 / math.sqrt(D)

    # Fused, lane-padded projection weight (C, 3P); 1/sqrt(D) folded into q.
    # torch Linear computes x @ W.T, so transpose each weight first.
    def pad(w):                                          # (C, D) -> (C, P)
        return jnp.pad(w, ((0, 0), (0, P - D)))
    w_qkv = jnp.concatenate(
        [pad(w_query.T * scale), pad(w_key.T), pad(w_value.T)],
        axis=1).astype(jnp.bfloat16)                     # (C, 3P)

    # Additive causal mask (0 keep / -inf drop), computed once and resident in
    # VMEM for all grid steps via a constant index_map.
    row = jax.lax.broadcasted_iota(jnp.int32, (T, T), 0)
    col = jax.lax.broadcasted_iota(jnp.int32, (T, T), 1)
    mask = jnp.where(col <= row, 0.0, -jnp.inf).astype(jnp.float32)

    x_bf16 = x.astype(jnp.bfloat16)

    Bb = _pick_batch_block(B)
    grid = (B // Bb,)

    out = pl.pallas_call(
        partial(_head_kernel, padded_d=P),
        out_shape=jax.ShapeDtypeStruct((B, T, P), jnp.float32),
        grid=grid,
        in_specs=[
            pl.BlockSpec((Bb, T, C), lambda b: (b, 0, 0)),   # activations
            pl.BlockSpec((C, 3 * P), lambda b: (0, 0)),      # fused weight (resident)
            pl.BlockSpec((T, T), lambda b: (0, 0)),          # causal mask (resident)
        ],
        out_specs=pl.BlockSpec((Bb, T, P), lambda b: (b, 0, 0)),
        compiler_params=pltpu.CompilerParams(
            dimension_semantics=("parallel",),
            vmem_limit_bytes=32 * 1024 * 1024),
    )(x_bf16, w_qkv, mask)

    # Drop the lane-padding columns (zero) to recover the true head_size.
    return out[..., :D]


# ------------------------- pure-JAX reference -----------------------------
def head_reference(x, w_query, w_key, w_value, *, head_size=HEAD_SIZE):
    q = x @ w_query.T
    k = x @ w_key.T
    v = x @ w_value.T
    wei = (q @ jnp.swapaxes(k, -2, -1)) * (head_size ** -0.5)
    T = x.shape[1]
    mask = jnp.tril(jnp.ones((T, T), dtype=bool))
    wei = jnp.where(mask, wei, -jnp.inf)
    wei = jax.nn.softmax(wei, axis=-1)
    return wei @ v


# --------------------------------- main ------------------------------------
if __name__ == "__main__":
    key = jax.random.PRNGKey(0)
    kx, kq, kk, kv = jax.random.split(key, 4)

    B, T, C, D = 8, 128, N_EMBD, HEAD_SIZE              # T <= block_size
    x = jax.random.normal(kx, (B, T, C), dtype=jnp.float32)
    # torch nn.Linear(n_embd, head_size, bias=False) weight layout: (D, C)
    w_query = 0.02 * jax.random.normal(kq, (D, C), dtype=jnp.float32)
    w_key   = 0.02 * jax.random.normal(kk, (D, C), dtype=jnp.float32)
    w_value = 0.02 * jax.random.normal(kv, (D, C), dtype=jnp.float32)

    fwd = jax.jit(partial(head_forward, head_size=D))
    out = jax.block_until_ready(fwd(x, w_query, w_key, w_value))

    ref = head_reference(x, w_query, w_key, w_value, head_size=D)

    assert out.shape == (B, T, D)
    assert bool(jnp.all(jnp.isfinite(out)))
    max_err = float(jnp.max(jnp.abs(out - ref)))
    # bf16 MXU operands with f32 accumulation -> relaxed tolerance vs f32 ref.
    assert max_err < 3e-2, f"mismatch vs f32 reference: {max_err}"
    print("KERNEL_OK")
</pallas_src>

<mosaic_0001>
module attributes {stable_mosaic.version = 11 : i64} {
  func.func @_head_kernel(%arg0: i32, %arg1: memref<4x128x384xbf16, #tpu.memory_space<vmem>>, %arg2: memref<384x384xbf16, #tpu.memory_space<vmem>>, %arg3: memref<128x128xf32, #tpu.memory_space<vmem>>, %arg4: memref<4x128x128xf32, #tpu.memory_space<vmem>>) attributes {dimension_semantics = [#tpu.dimension_semantics<parallel>], iteration_bounds = array<i64: 2>, scalar_prefetch = 0 : i64, scratch_operands = 0 : i64, tpu.core_type = #tpu.core_type<tc>, window_params = [{transform_indices = @transform_0, window_bounds = array<i64: 4, 128, 384>}, {pipeline_mode = #tpu.pipeline_mode<synchronous>, transform_indices = @transform_1, window_bounds = array<i64: 384, 384>}, {pipeline_mode = #tpu.pipeline_mode<synchronous>, transform_indices = @transform_2, window_bounds = array<i64: 128, 128>}, {transform_indices = @transform_3, window_bounds = array<i64: 4, 128, 128>}]} {
    %c0 = arith.constant 0 : index
    %c0_0 = arith.constant 0 : index
    %c0_1 = arith.constant 0 : index
    %0 = vector.load %arg1[%c0, %c0_0, %c0_1] : memref<4x128x384xbf16, #tpu.memory_space<vmem>>, vector<4x128x384xbf16>
    %c0_2 = arith.constant 0 : index
    %c0_3 = arith.constant 0 : index
    %1 = vector.load %arg2[%c0_2, %c0_3] : memref<384x384xbf16, #tpu.memory_space<vmem>>, vector<384x384xbf16>
    "tpu.trace_start"() <{level = 10 : i32, message = "btc,cd->btd"}> : () -> ()
    %cst = arith.constant dense<0.000000e+00> : vector<4x128x384xf32>
    %2 = tpu.matmul %0, %1, %cst {dimension_numbers = #tpu.dot_dimension_numbers<[2], [0], [0, 1], [1], [0, 0, 0, 1, 1, 1], [], []>} : vector<4x128x384xbf16>, vector<384x384xbf16>, vector<4x128x384xf32> -> vector<4x128x384xf32>
    "tpu.trace_stop"() : () -> ()
    %3 = vector.extract_strided_slice %2 {offsets = [0, 0, 0], sizes = [4, 128, 128], strides = [1, 1, 1]} : vector<4x128x384xf32> to vector<4x128x128xf32>
    %4 = arith.truncf %3 : vector<4x128x128xf32> to vector<4x128x128xbf16>
    %5 = vector.extract_strided_slice %2 {offsets = [0, 0, 128], sizes = [4, 128, 128], strides = [1, 1, 1]} : vector<4x128x384xf32> to vector<4x128x128xf32>
    %6 = arith.truncf %5 : vector<4x128x128xf32> to vector<4x128x128xbf16>
    %7 = vector.extract_strided_slice %2 {offsets = [0, 0, 256], sizes = [4, 128, 128], strides = [1, 1, 1]} : vector<4x128x384xf32> to vector<4x128x128xf32>
    %8 = arith.truncf %7 : vector<4x128x128xf32> to vector<4x128x128xbf16>
    "tpu.trace_start"() <{level = 10 : i32, message = "bqd,bkd->bqk"}> : () -> ()
    %cst_4 = arith.constant dense<0.000000e+00> : vector<4x128x128xf32>
    %9 = tpu.matmul %4, %6, %cst_4 {dimension_numbers = #tpu.dot_dimension_numbers<[2], [2], [1], [1], [0, 0, 0, 1, 1, 1], [0], [0]>} : vector<4x128x128xbf16>, vector<4x128x128xbf16>, vector<4x128x128xf32> -> vector<4x128x128xf32>
    "tpu.trace_stop"() : () -> ()
    %c0_5 = arith.constant 0 : index
    %c0_6 = arith.constant 0 : index
    %10 = vector.load %arg3[%c0_5, %c0_6] : memref<128x128xf32, #tpu.memory_space<vmem>>, vector<128x128xf32>
    %11 = vector.shape_cast %10 : vector<128x128xf32> to vector<1x128x128xf32>
    %12 = vector.broadcast %11 : vector<1x128x128xf32> to vector<4x128x128xf32>
    %13 = arith.addf %9, %12 : vector<4x128x128xf32>
    %cst_7 = arith.constant dense<0xFF800000> : vector<4x128xf32>
    %14 = vector.multi_reduction <maximumf>, %13, %cst_7 [2] : vector<4x128x128xf32> to vector<4x128xf32>
    %15 = vector.shape_cast %14 : vector<4x128xf32> to vector<4x128x1xf32>
    %16 = vector.broadcast %15 : vector<4x128x1xf32> to vector<4x128x128xf32>
    %17 = arith.subf %13, %16 : vector<4x128x128xf32>
    %18 = math.exp %17 : vector<4x128x128xf32>
    %cst_8 = arith.constant dense<0.000000e+00> : vector<4x128xf32>
    %19 = vector.multi_reduction <add>, %18, %cst_8 [2] : vector<4x128x128xf32> to vector<4x128xf32>
    %20 = vector.shape_cast %19 : vector<4x128xf32> to vector<4x128x1xf32>
    %21 = arith.truncf %18 : vector<4x128x128xf32> to vector<4x128x128xbf16>
    "tpu.trace_start"() <{level = 10 : i32, message = "bqk,bkd->bqd"}> : () -> ()
    %cst_9 = arith.constant dense<0.000000e+00> : vector<4x128x128xf32>
    %22 = tpu.matmul %21, %8, %cst_9 {dimension_numbers = #tpu.dot_dimension_numbers<[2], [1], [1], [2], [0, 0, 0, 1, 1, 2], [0], [0]>} : vector<4x128x128xbf16>, vector<4x128x128xbf16>, vector<4x128x128xf32> -> vector<4x128x128xf32>
    "tpu.trace_stop"() : () -> ()
    %23 = tpu.reciprocal %20 {approx = true} : vector<4x128x1xf32> -> vector<4x128x1xf32>
    %24 = vector.broadcast %23 : vector<4x128x1xf32> to vector<4x128x128xf32>
    %25 = arith.mulf %22, %24 : vector<4x128x128xf32>
    %c0_10 = arith.constant 0 : index
    %c0_11 = arith.constant 0 : index
    %c0_12 = arith.constant 0 : index
    %26 = vector.load %arg4[%c0_10, %c0_11, %c0_12] : memref<4x128x128xf32, #tpu.memory_space<vmem>>, vector<4x128x128xf32>
    tpu.vector_store %arg4[%c0_10, %c0_11, %c0_12], %25 {strides = array<i32>} : memref<4x128x128xf32, #tpu.memory_space<vmem>>, vector<4x128x128xf32>,
    return
  }
  func.func @transform_0(%arg0: i32) -> (i32, i32, i32) {
    %c0_i32 = arith.constant 0 : i32
    %c0_i32_0 = arith.constant 0 : i32
    %c0_i32_1 = arith.constant 0 : i32
    return %arg0, %c0_i32, %c0_i32_0 : i32, i32, i32
  }
  func.func @transform_1(%arg0: i32) -> (i32, i32) {
    %c0_i32 = arith.constant 0 : i32
    %c0_i32_0 = arith.constant 0 : i32
    %c0_i32_1 = arith.constant 0 : i32
    return %c0_i32, %c0_i32_0 : i32, i32
  }
  func.func @transform_2(%arg0: i32) -> (i32, i32) {
    %c0_i32 = arith.constant 0 : i32
    %c0_i32_0 = arith.constant 0 : i32
    %c0_i32_1 = arith.constant 0 : i32
    return %c0_i32, %c0_i32_0 : i32, i32
  }
  func.func @transform_3(%arg0: i32) -> (i32, i32, i32) {
    %c0_i32 = arith.constant 0 : i32
    %c0_i32_0 = arith.constant 0 : i32
    %c0_i32_1 = arith.constant 0 : i32
    return %arg0, %c0_i32, %c0_i32_0 : i32, i32, i32
  }
}

</mosaic_0001>

<bundles_post_ra>
// kernel: head_forward.1
= control target key start
LH: loop header
LB: loop body
LE: loop exit
PB: predicated region body
PF: predicated region fallthrough
CT: control target
= control target key end

     0   :  { %s5453_s12 = smov 0   ;;  %s7633_s0 = inlined_call_operand.vmem [shape: bf16[8,128,384], index: 0, kind: input, shape index: {}]   ;;  %s7634_s1 = inlined_call_operand.vmem [shape: bf16[384,384], index: 1, kind: input, shape index: {}]   ;;  %s7635_s2 = inlined_call_operand.vmem [shape: f32[128,128], index: 2, kind: input, shape index: {}]   ;;  %s7636_s3 = inlined_call_operand.vmem [shape: f32[8,128,128], index: 3, kind: output, shape index: {}]  }
   0x1 LB: > { %s4202_s13 = sadd.s32 4294967295, %s5430_s12   ;;  %p4206_p0 = scmp.ge.s32.totalorder %s5430_s12, 1  ;;  %s5430_s12 = sphi %s5453_s12, %s13_s12  }
   0x2   : > { %p139_p1 = scmp.lt.s32.totalorder %s5430_s12, 3 }
   0x4   : > { %p140_p2 = pnand %p4206_p0, %p139_p1 }
   0x6   : > { %143 = sbr.rel (%p140_p2) target bundleno = 1182 (0x49e), region = 32 }
   0xb   : > { %v4913_v0 = vld [vmem:[%s7634_s1 + $0xac] ss:$12 sps:$4 sm:$0xff]   ;;  %v5432_v2 = vmov 0   ;;  %v4917_v3 = vld [vmem:[%s7634_s1 + $0xa8] ss:$12 sps:$4 sm:$0xff]   ;;  %s4207_s5 = sshll.u32 %s4202_s13, 2 }
   0xc   : > { %v4915_v1 = vld [vmem:[%s7634_s1 + $0x22c] ss:$12 sps:$4 sm:$0xff]   ;;  %1685 = vmatprep.mubr.bf16.mxu1 %v5432_v2  ;;  %1300 = vmatprep.subr.bf16.mxu0 %v4913_v0  ;;  %v4918_v4 = vld [vmem:[%s7634_s1 + $0x228] ss:$12 sps:$4 sm:$0xff]   ;;  %v4923_v7 = vld [vmem:[%s7634_s1 + $0x90] ss:$12 sps:$4 sm:$0xff]  }
   0xd   : > { %1653 = vmatprep.subr.bf16.mxu1 %v4915_v1  ;;  %v4919_v5 = vld [vmem:[%s7634_s1 + $0x94] ss:$12 sps:$4 sm:$0xff]   ;;  %1301 = vmatpush1.bf16.msra.mxu0 %v4917_v3  ;;  %v4924_v8 = vld [vmem:[%s7634_s1 + $0x210] ss:$12 sps:$4 sm:$0xff]   ;;  %v4929_v11 = vld [vmem:[%s7634_s1 + $0x78] ss:$12 sps:$4 sm:$0xff]  }
   0xe   : > { %1654 = vmatpush1.bf16.msra.mxu1 %v4918_v4  ;;  %v4921_v6 = vld [vmem:[%s7634_s1 + $0x214] ss:$12 sps:$4 sm:$0xff]   ;;  %1302 = vmatprep.subr.bf16.mxu0 %v4919_v5  ;;  %v4925_v9 = vld [vmem:[%s7634_s1 + $0x7c] ss:$12 sps:$4 sm:$0xff]   ;;  %v4930_v12 = vld [vmem:[%s7634_s1 + $0x1f8] ss:$12 sps:$4 sm:$0xff]  }
   0xf   : > { %1655 = vmatprep.subr.bf16.mxu1 %v4921_v6  ;;  %v4927_v10 = vld [vmem:[%s7634_s1 + $0x1fc] ss:$12 sps:$4 sm:$0xff]   ;;  %v4931_v13 = vld [vmem:[%s7634_s1 + $0x64] ss:$12 sps:$4 sm:$0xff]   ;;  %p166_p3 = scmp.lt.s32.totalorder %s4207_s5, 7 }
  0x10   : > { %v4933_v14 = vld [vmem:[%s7634_s1 + $0x1e4] ss:$12 sps:$4 sm:$0xff]   ;;  %v4935_v15 = vld [vmem:[%s7634_s1 + $0x60] ss:$12 sps:$4 sm:$0xff]   ;;  %v4941_v19 = vld [vmem:[%s7634_s1 + $0x48] ss:$12 sps:$4 sm:$0xff]  }
  0x11   : > { %1303 = vmatpush1.bf16.msra.mxu0 %v4923_v7  ;;  %v4936_v16 = vld [vmem:[%s7634_s1 + $0x1e0] ss:$12 sps:$4 sm:$0xff]   ;;  %s7984_s5 = smov (!%p166_p3, %s4207_s5), 7  ;;  %v4942_v20 = vld [vmem:[%s7634_s1 + $0x1c8] ss:$12 sps:$4 sm:$0xff]  }
  0x12   : > { %1656 = vmatpush1.bf16.msra.mxu1 %v4924_v8  ;;  %1304 = vmatprep.subr.bf16.mxu0 %v4925_v9  ;;  %v4937_v17 = vld [vmem:[%s7634_s1 + $0x4c] ss:$12 sps:$4 sm:$0xff]   ;;  %v4943_v21 = vld [vmem:[%s7634_s1 + $0x34] ss:$12 sps:$4 sm:$0xff]   ;;  %s4903_s7 = smul.u32 192, %s7984_s5  ;;  %s4382_s22 = sshll.u32 %s7984_s5, 7 }
  0x13   : > { %1657 = vmatprep.subr.bf16.mxu1 %v4927_v10  ;;  %v4939_v18 = vld [vmem:[%s7634_s1 + $0x1cc] ss:$12 sps:$4 sm:$0xff]   ;;  %v4945_v22 = vld [vmem:[%s7634_s1 + $0x1b4] ss:$12 sps:$4 sm:$0xff]   ;;  %v4947_v23 = vld [vmem:[%s7634_s1 + $0x30] ss:$12 sps:$4 sm:$0xff]   ;;  %s7549_s25 = scalar_lea.vmem %s7636_s3, %s4382_s22 }
  0x14   : > { %v4948_v24 = vld [vmem:[%s7634_s1 + $0x1b0] ss:$12 sps:$4 sm:$0xff]   ;;  %s5546_s19 = scalar_lea.vmem %s7633_s0, %s4903_s7  ;;  %v4953_v27 = vld [vmem:[%s7634_s1 + $0x18] ss:$12 sps:$4 sm:$0xff]   ;;  %v4959_v31 = vld [vmem:[%s7634_s1] ss:$12 sps:$4 sm:$0xff]  }
  0x15   : > { %1305 = vmatpush1.bf16.msra.mxu0 %v4929_v11  ;;  %v4949_v25 = vld [vmem:[%s7634_s1 + $0x1c] ss:$12 sps:$4 sm:$0xff]   ;;  %v4954_v28 = vld [vmem:[%s7634_s1 + $0x198] ss:$12 sps:$4 sm:$0xff]   ;;  %v4960_v32 = vld [vmem:[%s7634_s1 + $0x180] ss:$12 sps:$4 sm:$0xff]  }
  0x16   : > { %1658 = vmatpush1.bf16.msra.mxu1 %v4930_v12  ;;  %1306 = vmatprep.subr.bf16.mxu0 %v4931_v13  ;;  %v4951_v26 = vld [vmem:[%s7634_s1 + $0x19c] ss:$12 sps:$4 sm:$0xff]   ;;  %v4955_v29 = vld [vmem:[%s7634_s1 + $0x4] ss:$12 sps:$4 sm:$0xff]   ;;  %v4961_v33 = vld [vmem:[%s7634_s1 + $0x16c] ss:$12 sps:$4 sm:$0xff]  }
  0x17   : > { %1659 = vmatprep.subr.bf16.mxu1 %v4933_v14  ;;  %v4957_v30 = vld [vmem:[%s7634_s1 + $0x184] ss:$12 sps:$4 sm:$0xff]   ;;  %v4963_v34 = vld [vmem:[%s5546_s19 + $0x8] ss:$12 sps:$4 sm:$0xff]   ;;  %v4970_v40 = vld [vmem:[%s5546_s19 + $0x20] ss:$12 sps:$4 sm:$0xff]  }
  0x18   : > { %v4964_v35 = vld [vmem:[%s7634_s1 + $0x168] ss:$12 sps:$4 sm:$0xff]   ;;  %v4967_v37 = vld [vmem:[%s7634_s1 + $0x150] ss:$12 sps:$4 sm:$0xff]   ;;  %v4971_v41 = vld [vmem:[%s7634_s1 + $0x138] ss:$12 sps:$4 sm:$0xff]  }
  0x19   : > { %1307 = vmatpush1.bf16.msra.mxu0 %v4935_v15  ;;  %v4965_v36 = vld [vmem:[%s7634_s1 + $0x154] ss:$12 sps:$4 sm:$0xff]   ;;  %v4968_v38 = vld [vmem:[%s7634_s1 + $0x13c] ss:$12 sps:$4 sm:$0xff]   ;;  %v4991_v39 = vld [vmem:[%s5546_s19 + $0x4] ss:$12 sps:$4 sm:$0xff]  }
  0x1a   : > { %1660 = vmatpush1.bf16.msra.mxu1 %v4936_v16  ;;  %1308 = vmatprep.subr.bf16.mxu0 %v4937_v17  ;;  %v4972_v42 = vld [vmem:[%s7634_s1 + $0x124] ss:$12 sps:$4 sm:$0xff]   ;;  %v4974_v43 = vld [vmem:[%s7634_s1 + $0x120] ss:$12 sps:$4 sm:$0xff]   ;;  %v4978_v46 = vld [vmem:[%s7634_s1 + $0x108] ss:$12 sps:$4 sm:$0xff]  }
  0x1b   : > { %1661 = vmatprep.subr.bf16.mxu1 %v4939_v18  ;;  %1332 = vmatprep.mubr.bf16.mxu0 %v4991_v39  ;;  %v4975_v44 = vld [vmem:[%s7634_s1 + $0x10c] ss:$12 sps:$4 sm:$0xff]   ;;  %v4979_v47 = vld [vmem:[%s7634_s1 + $0xf4] ss:$12 sps:$4 sm:$0xff]   ;;  %v4981_v48 = vld [vmem:[%s7634_s1 + $0xf0] ss:$12 sps:$4 sm:$0xff]  }
  0x1c   : > { %v4977_v45 = vld [vmem:[%s5546_s19 + $0x38] ss:$12 sps:$4 sm:$0xff]   ;;  %v4982_v49 = vld [vmem:[%s7634_s1 + $0xdc] ss:$12 sps:$4 sm:$0xff]   ;;  %v4988_v53 = vld [vmem:[%s7634_s1 + $0xc0] ss:$12 sps:$4 sm:$0xff]  }
  0x1d   : > { %1309 = vmatpush1.bf16.msra.mxu0 %v4941_v19  ;;  %v4984_v50 = vld [vmem:[%s5546_s19 + $0x50] ss:$12 sps:$4 sm:$0xff]   ;;  %v4985_v51 = vld [vmem:[%s7634_s1 + $0xd8] ss:$12 sps:$4 sm:$0xff]   ;;  %v5625_v54 = vld [vmem:[%s5546_s19] ss:$12 sps:$4 sm:$0xff]  }
  0x1e   : > { %1662 = vmatpush1.bf16.msra.mxu1 %v4942_v20  ;;  %1310 = vmatprep.subr.bf16.mxu0 %v4943_v21  ;;  %v4986_v52 = vld [vmem:[%s7634_s1 + $0xc4] ss:$12 sps:$4 sm:$0xff]   ;;  %v4992_v55 = vld [vmem:[%s5546_s19 + $0x68] ss:$12 sps:$4 sm:$0xff]   ;;  %v4996_v58 = vld [vmem:[%s5546_s19 + $0x80] ss:$12 sps:$4 sm:$0xff]  }
  0x1f   : > { %1663 = vmatprep.subr.bf16.mxu1 %v4945_v22  ;;  %v5629_v56 = vld [vmem:[%s5546_s19 + $0x1c] ss:$12 sps:$4 sm:$0xff]   ;;  %v5635_v57 = vld [vmem:[%s5546_s19 + $0x18] ss:$12 sps:$4 sm:$0xff]   ;;  %v5639_v59 = vld [vmem:[%s5546_s19 + $0x34] ss:$12 sps:$4 sm:$0xff]  }
  0x20   : > { %v5057_v60 = vld [vmem:[%s7634_s1 + $0xb0] ss:$12 sps:$4 sm:$0xff]   ;;  %v5000_v62 = vld [vmem:[%s5546_s19 + $0x98] ss:$12 sps:$4 sm:$0xff]   ;;  %v5662_v1 = vld [vmem:[%s5546_s19 + $0x48] ss:$12 sps:$4 sm:$0xff]  }
  0x21   : > { %1311 = vmatpush1.bf16.msra.mxu0 %v4947_v23  ;;  %v5648_v61 = vld [vmem:[%s5546_s19 + $0x30] ss:$12 sps:$4 sm:$0xff]   ;;  %v5653_v63 = vld [vmem:[%s5546_s19 + $0x4c] ss:$12 sps:$4 sm:$0xff]   ;;  %v5676_v6 = vld [vmem:[%s5546_s19 + $0xc8] ss:$12 sps:$4 sm:$0xff]  }
  0x22   : > { %1664 = vmatpush1.bf16.msra.mxu1 %v4948_v24  ;;  %1312 = vmatprep.subr.bf16.mxu0 %v4949_v25  ;;  %v5066_v0 = vld [vmem:[%s7634_s1 + $0x98] ss:$12 sps:$4 sm:$0xff]   ;;  %v5004_v3 = vld [vmem:[%s5546_s19 + $0xb0] ss:$12 sps:$4 sm:$0xff]   ;;  %v5673_v5 = vld [vmem:[%s5546_s19 + $0x60] ss:$12 sps:$4 sm:$0xff]  }
  0x23   : > { %1665 = vmatprep.subr.bf16.mxu1 %v4951_v26  ;;  %v5666_v4 = vld [vmem:[%s5546_s19 + $0x64] ss:$12 sps:$4 sm:$0xff]   ;;  %v5679_v7 = vld [vmem:[%s5546_s19 + $0x7c] ss:$12 sps:$4 sm:$0xff]   ;;  %v5692_v10 = vld [vmem:[%s5546_s19 + $0xe0] ss:$12 sps:$4 sm:$0xff]  }
  0x24   : > { %v5075_v8 = vld [vmem:[%s7634_s1 + $0x230] ss:$12 sps:$4 sm:$0xff]   ;;  %v5689_v9 = vld [vmem:[%s5546_s19 + $0x78] ss:$12 sps:$4 sm:$0xff]   ;;  %v5076_v11 = vld [vmem:[%s7634_s1 + $0x80] ss:$12 sps:$4 sm:$0xff]  }
  0x25   : > { %1313 = vmatpush1.bf16.msra.mxu0 %v4953_v27  ;;  %v5698_v12 = vld [vmem:[%s5546_s19 + $0x94] ss:$12 sps:$4 sm:$0xff]   ;;  %v5706_v13 = vld [vmem:[%s5546_s19 + $0x90] ss:$12 sps:$4 sm:$0xff]   ;;  %v5709_v14 = vld [vmem:[%s5546_s19 + $0xf8] ss:$12 sps:$4 sm:$0xff]  }
  0x26   : > { %1666 = vmatpush1.bf16.msra.mxu1 %v4954_v28  ;;  %1314 = vmatprep.subr.bf16.mxu0 %v4955_v29  ;;  %v5081_v15 = vld [vmem:[%s7634_s1 + $0x68] ss:$12 sps:$4 sm:$0xff]   ;;  %v5715_v16 = vld [vmem:[%s5546_s19 + $0xac] ss:$12 sps:$4 sm:$0xff]   ;;  %v5086_v17 = vld [vmem:[%s7634_s1 + $0x50] ss:$12 sps:$4 sm:$0xff]  }
  0x27   : > { %1667 = vmatprep.subr.bf16.mxu1 %v4957_v30  ;;  %v5087_v18 = vld [vmem:[%s7634_s1 + $0x38] ss:$12 sps:$4 sm:$0xff]   ;;  %v5730_v19 = vld [vmem:[%s5546_s19 + $0xa8] ss:$12 sps:$4 sm:$0xff]   ;;  %v5733_v20 = vld [vmem:[%s5546_s19 + $0x110] ss:$12 sps:$4 sm:$0xff]  }
  0x28   : > { %v5736_v21 = vld [vmem:[%s5546_s19 + $0xc4] ss:$12 sps:$4 sm:$0xff]   ;;  %v5092_v22 = vld [vmem:[%s7634_s1 + $0x20] ss:$12 sps:$4 sm:$0xff]   ;;  %v5093_v23 = vld [vmem:[%s7634_s1 + $0x8] ss:$12 sps:$4 sm:$0xff]  }
  0x29   : > { %1315 = vmatpush1.bf16.msra.mxu0 %v4959_v31  ;;  %v5751_v24 = vld [vmem:[%s5546_s19 + $0xc0] ss:$12 sps:$4 sm:$0xff]   ;;  %v5754_v25 = vld [vmem:[%s5546_s19 + $0x128] ss:$12 sps:$4 sm:$0xff]   ;;  %v5099_v27 = vld [vmem:[%s7634_s1 + $0x170] ss:$12 sps:$4 sm:$0xff]  }
  0x2a   : > { %1668 = vmatpush1.bf16.msra.mxu1 %v4960_v32  ;;  %1316 = vmatprep.subr.bf16.mxu0 %v4961_v33  ;;  %v5757_v26 = vld [vmem:[%s5546_s19 + $0xdc] ss:$12 sps:$4 sm:$0xff]   ;;  %v5098_v28 = vld [vmem:[%s7634_s1 + $0x218] ss:$12 sps:$4 sm:$0xff]   ;;  %v5778_v31 = vld [vmem:[%s5546_s19 + $0x140] ss:$12 sps:$4 sm:$0xff]  }
  0x2b   : > { %2006 = vmatprep.subr.bf16.mxu1 %v5432_v2  ;;  %v5100_v29 = vld [vmem:[%s7634_s1 + $0x158] ss:$12 sps:$4 sm:$0xff]   ;;  %v5781_v32 = vld [vmem:[%s5546_s19 + $0xf4] ss:$12 sps:$4 sm:$0xff]  }
  0x2c   : > { %v5775_v30 = vld [vmem:[%s5546_s19 + $0xd8] ss:$12 sps:$4 sm:$0xff]   ;;  %v5105_v33 = vld [vmem:[%s7634_s1 + $0x140] ss:$12 sps:$4 sm:$0xff]  }
  0x2d   : > { %1686 = vmatmul.mubr.bf16.vlgmr.msra.gmra.mxu1 %v4963_v34  ;;  %1317 = vmatpush2.bf16.msra.mxu0 %v4964_v35  ;;  %v5106_v34 = vld [vmem:[%s7634_s1 + $0x128] ss:$12 sps:$4 sm:$0xff]   ;;  %v5796_v35 = vld [vmem:[%s5546_s19 + $0xf0] ss:$12 sps:$4 sm:$0xff]   ;;  %v5112_v39 = vld [vmem:[%s7634_s1 + $0xf8] ss:$12 sps:$4 sm:$0xff]  }
  0x2e   : > { %1695 = vmatprep.mubr.bf16.mxu1 %v5432_v2  ;;  %1318 = vmatprep.subr.bf16.mxu0 %v4965_v36  ;;  %v5799_v36 = vld [vmem:[%s5546_s19 + $0x158] ss:$12 sps:$4 sm:$0xff]  }
  0x2f   : > { %2007 = vmatpush1.bf16.msra.mxu1 %v5057_v60  ;;  %7743 = vst [vmem:[#allocation2_spill] sm:$0xff] %v5799_v36  ;;  %v5130_v60 = vld [vmem:[%s7634_s1 + $0x1d0] ss:$12 sps:$4 sm:$0xff]  }
  0x30   : > { %2008 = vmatprep.subr.bf16.mxu1 %v5432_v2 }
  0x31   : > { %1319 = vmatpush2.bf16.msra.mxu0 %v4967_v37  ;;  %v5802_v37 = vld [vmem:[%s5546_s19 + $0x10c] ss:$12 sps:$4 sm:$0xff]  }
  0x32   : > { %1320 = vmatprep.subr.bf16.mxu0 %v4968_v38  ;;  %v5111_v38 = vld [vmem:[%s7634_s1 + $0x110] ss:$12 sps:$4 sm:$0xff]  }
  0x33   : > { %2009 = vmatpush1.bf16.msra.mxu1 %v5066_v0  ;;  %v5889_v0 = vld [vmem:[%s5546_s19 + $0x168] ss:$12 sps:$4 sm:$0xff]  }
  0x34   : > { %2010 = vmatprep.subr.bf16.mxu1 %v5432_v2  ;;  %7756 = vst [vmem:[#allocation15_spill] sm:$0xff] %v5889_v0 }
  0x35   : > { %1696 = vmatmul.mubr.bf16.gmra.mxu1 %v4970_v40  ;;  %1321 = vmatpush2.bf16.msra.mxu0 %v4971_v41  ;;  %v5817_v40 = vld [vmem:[%s5546_s19 + $0x108] ss:$12 sps:$4 sm:$0xff]   ;;  %v5820_v41 = vld [vmem:[%s5546_s19 + $0x170] ss:$12 sps:$4 sm:$0xff]  }
  0x36   : > { %1705 = vmatprep.mubr.bf16.mxu1 %v5432_v2  ;;  %1322 = vmatprep.subr.bf16.mxu0 %v4972_v42  ;;  %7744 = vst [vmem:[#allocation3_spill] sm:$0xff] %v5817_v40  ;;  %7745 = vst [vmem:[#allocation4_spill] sm:$0xff] %v5820_v41  ;;  %v5823_v42 = vld [vmem:[%s5546_s19 + $0x124] ss:$12 sps:$4 sm:$0xff]  }
  0x37   : > { %2011 = vmatpush1.bf16.msra.mxu1 %v5076_v11  ;;  %7746 = vst [vmem:[#allocation5_spill] sm:$0xff] %v5823_v42  ;;  %v5135_v11 = vld [vmem:[%s7634_s1 + $0x1a0] ss:$12 sps:$4 sm:$0xff]  }
  0x38   : > { %2012 = vmatprep.subr.bf16.mxu1 %v5432_v2 }
  0x39   : > { %1323 = vmatpush2.bf16.msra.mxu0 %v4974_v43  ;;  %v5117_v43 = vld [vmem:[%s7634_s1 + $0xe0] ss:$12 sps:$4 sm:$0xff]  }
  0x3a   : > { %1324 = vmatprep.subr.bf16.mxu0 %v4975_v44  ;;  %v5118_v44 = vld [vmem:[%s7634_s1 + $0xc8] ss:$12 sps:$4 sm:$0xff]  }
  0x3b   : > { %2013 = vmatpush1.bf16.msra.mxu1 %v5081_v15  ;;  %v5136_v15 = vld [vmem:[%s7634_s1 + $0x188] ss:$12 sps:$4 sm:$0xff]  }
  0x3c   : > { %2014 = vmatprep.subr.bf16.mxu1 %v5432_v2 }
  0x3d   : > { %1706 = vmatmul.mubr.bf16.gmra.mxu1 %v4977_v45  ;;  %1325 = vmatpush2.bf16.msra.mxu0 %v4978_v46  ;;  %v5838_v45 = vld [vmem:[%s5546_s19 + $0x120] ss:$12 sps:$4 sm:$0xff]   ;;  %v5841_v46 = vld [vmem:[%s5546_s19 + $0x188] ss:$12 sps:$4 sm:$0xff]  }
  0x3e   : > { %1715 = vmatprep.mubr.bf16.mxu1 %v5432_v2  ;;  %1326 = vmatprep.subr.bf16.mxu0 %v4979_v47  ;;  %7747 = vst [vmem:[#allocation6_spill] sm:$0xff] %v5838_v45  ;;  %7748 = vst [vmem:[#allocation7_spill] sm:$0xff] %v5841_v46  ;;  %v5844_v47 = vld [vmem:[%s5546_s19 + $0x13c] ss:$12 sps:$4 sm:$0xff]  }
  0x3f   : > { %2015 = vmatpush1.bf16.msra.mxu1 %v5086_v17  ;;  %7749 = vst [vmem:[#allocation8_spill] sm:$0xff] %v5844_v47  ;;  %v5908_v17 = vld [vmem:[%s5546_s19 + $0x180] ss:$12 sps:$4 sm:$0xff]  }
  0x40   : > { %2016 = vmatprep.subr.bf16.mxu1 %v5432_v2  ;;  %7759 = vst [vmem:[#allocation18_spill] sm:$0xff] %v5908_v17 }
  0x41   : > { %1327 = vmatpush2.bf16.msra.mxu0 %v4981_v48  ;;  %v5122_v48 = vld [vmem:[%s7634_s1 + $0x200] ss:$12 sps:$4 sm:$0xff]  }
  0x42   : > { %1328 = vmatprep.subr.bf16.mxu0 %v4982_v49  ;;  %v5854_v49 = vld [vmem:[%s5546_s19 + $0x138] ss:$12 sps:$4 sm:$0xff]  }
  0x43   : > { %2017 = vmatpush1.bf16.msra.mxu1 %v5087_v18  ;;  %7750 = vst [vmem:[#allocation9_spill] sm:$0xff] %v5854_v49  ;;  %v5911_v18 = vld [vmem:[%s5546_s19 + $0x1e8] ss:$12 sps:$4 sm:$0xff]  }
  0x44   : > { %2018 = vmatprep.subr.bf16.mxu1 %v5432_v2  ;;  %7760 = vst [vmem:[#allocation19_spill] sm:$0xff] %v5911_v18 }
  0x45   : > { %1716 = vmatmul.mubr.bf16.gmra.mxu1 %v4984_v50  ;;  %1329 = vmatpush2.bf16.msra.mxu0 %v4985_v51  ;;  %v5857_v50 = vld [vmem:[%s5546_s19 + $0x1a0] ss:$12 sps:$4 sm:$0xff]  }
  0x46   : > { %1725 = vmatprep.mubr.bf16.mxu1 %v5432_v2  ;;  %1330 = vmatprep.subr.bf16.mxu0 %v4986_v52  ;;  %7751 = vst [vmem:[#allocation10_spill] sm:$0xff] %v5857_v50  ;;  %v5860_v51 = vld [vmem:[%s5546_s19 + $0x154] ss:$12 sps:$4 sm:$0xff]  }
  0x47   : > { %2019 = vmatpush1.bf16.msra.mxu1 %v5092_v22  ;;  %7752 = vst [vmem:[#allocation11_spill] sm:$0xff] %v5860_v51  ;;  %v5126_v52 = vld [vmem:[%s7634_s1 + $0x1e8] ss:$12 sps:$4 sm:$0xff]  }
  0x48   : > { %2020 = vmatprep.subr.bf16.mxu1 %v5432_v2  ;;  %v5914_v22 = vld [vmem:[%s5546_s19 + $0x19c] ss:$12 sps:$4 sm:$0xff]  }
  0x49   : > { %1331 = vmatpush2.bf16.msra.mxu0 %v4988_v53  ;;  %v5870_v53 = vld [vmem:[%s5546_s19 + $0x150] ss:$12 sps:$4 sm:$0xff]   ;;  %7761 = vst [vmem:[#allocation20_spill] sm:$0xff] %v5914_v22 }
  0x4a   : > { %4551 = vmatprep.subr.bf16.mxu0 %v5075_v8  ;;  %7753 = vst [vmem:[#allocation12_spill] sm:$0xff] %v5870_v53 }
  0x4b   : > { %2021 = vmatpush1.bf16.msra.mxu1 %v5093_v23  ;;  %v5921_v23 = vld [vmem:[%s5546_s19 + $0x198] ss:$12 sps:$4 sm:$0xff]  }
  0x4c   : > { %1333 = vmatmul.mubr.bf16.vlgmr.msra.gmra.mxu0 %v5625_v54  ;;  %2022 = vmatprep.subr.bf16.mxu1 %v5432_v2  ;;  %7762 = vst [vmem:[#allocation21_spill] sm:$0xff] %v5921_v23 }
  0x4d   : > { %1726 = vmatmul.mubr.bf16.gmra.mxu1 %v4992_v55  ;;  %1342 = vmatprep.mubr.bf16.mxu0 %v5629_v56  ;;  %v5873_v55 = vld [vmem:[%s5546_s19 + $0x1b8] ss:$12 sps:$4 sm:$0xff]  }
  0x4e   : > { %1735 = vmatprep.mubr.bf16.mxu1 %v5432_v2  ;;  %4552 = vmatpush3.bf16.msra.mxu0 %v5075_v8  ;;  %7754 = vst [vmem:[#allocation13_spill] sm:$0xff] %v5873_v55  ;;  %v5895_v8 = vld [vmem:[%s5546_s19 + $0x184] ss:$12 sps:$4 sm:$0xff]  }
  0x4f   : > { %2023 = vmatpush2.bf16.msra.mxu1 %v5099_v27  ;;  %4553 = vmatprep.subr.bf16.mxu0 %v5098_v28  ;;  %7758 = vst [vmem:[#allocation17_spill] sm:$0xff] %v5895_v8  ;;  %v5924_v27 = vld [vmem:[%s5546_s19 + $0x200] ss:$12 sps:$4 sm:$0xff]  }
  0x50   : > { %2024 = vmatprep.subr.bf16.mxu1 %v5432_v2  ;;  %7763 = vst [vmem:[#allocation22_spill] sm:$0xff] %v5924_v27 }
  0x52   : > { %4554 = vmatpush3.bf16.msra.mxu0 %v5098_v28  ;;  %v5927_v28 = vld [vmem:[%s5546_s19 + $0x1b4] ss:$12 sps:$4 sm:$0xff]  }
  0x53   : > { %2025 = vmatpush2.bf16.msra.mxu1 %v5100_v29  ;;  %4555 = vmatprep.subr.bf16.mxu0 %v5122_v48  ;;  %7764 = vst [vmem:[#allocation23_spill] sm:$0xff] %v5927_v28  ;;  %v5934_v29 = vld [vmem:[%s5546_s19 + $0x1b0] ss:$12 sps:$4 sm:$0xff]  }
  0x54   : > { %1343 = vmatmul.mubr.bf16.gmra.mxu0 %v5635_v57  ;;  %2026 = vmatprep.subr.bf16.mxu1 %v5432_v2  ;;  %7765 = vst [vmem:[#allocation24_spill] sm:$0xff] %v5934_v29 }
  0x55   : > { %1736 = vmatmul.mubr.bf16.gmra.mxu1 %v4996_v58  ;;  %1352 = vmatprep.mubr.bf16.mxu0 %v5639_v59  ;;  %v5876_v58 = vld [vmem:[%s5546_s19 + $0x16c] ss:$12 sps:$4 sm:$0xff]  }
  0x56   : > { %1745 = vmatprep.mubr.bf16.mxu1 %v5432_v2  ;;  %4556 = vmatpush3.bf16.msra.mxu0 %v5122_v48  ;;  %7755 = vst [vmem:[#allocation14_spill] sm:$0xff] %v5876_v58  ;;  %v5963_v48 = vld [vmem:[%s5546_s19 + $0x248] ss:$12 sps:$4 sm:$0xff]  }
  0x57   : > { %2027 = vmatpush2.bf16.msra.mxu1 %v5105_v33  ;;  %4557 = vmatprep.subr.bf16.mxu0 %v5126_v52  ;;  %v5937_v33 = vld [vmem:[%s5546_s19 + $0x218] ss:$12 sps:$4 sm:$0xff]   ;;  %7772 = vst [vmem:[#allocation31_spill] sm:$0xff] %v5963_v48 }
  0x58   : > { %2028 = vmatprep.subr.bf16.mxu1 %v5432_v2  ;;  %7766 = vst [vmem:[#allocation25_spill] sm:$0xff] %v5937_v33 }
  0x5a   : > { %4558 = vmatpush3.bf16.msra.mxu0 %v5126_v52  ;;  %v5077_v52 = vld [vmem:[%s5546_s19 + $0x1fc] ss:$12 sps:$4 sm:$0xff]  }
  0x5b   : > { %2029 = vmatpush2.bf16.msra.mxu1 %v5106_v34  ;;  %4559 = vmatprep.subr.bf16.mxu0 %v5130_v60  ;;  %v5940_v34 = vld [vmem:[%s5546_s19 + $0x1cc] ss:$12 sps:$4 sm:$0xff]  }
  0x5c   : > { %1353 = vmatmul.mubr.bf16.gmra.mxu0 %v5648_v61  ;;  %2030 = vmatprep.subr.bf16.mxu1 %v5432_v2  ;;  %7767 = vst [vmem:[#allocation26_spill] sm:$0xff] %v5940_v34 }
  0x5d   : > { %1746 = vmatmul.mubr.bf16.gmra.mxu1 %v5000_v62  ;;  %1362 = vmatprep.mubr.bf16.mxu0 %v5653_v63  ;;  %v5131_v62 = vld [vmem:[%s7634_s1 + $0x1b8] ss:$12 sps:$4 sm:$0xff]  }
  0x5e   : > { %1755 = vmatprep.mubr.bf16.mxu1 %v5432_v2  ;;  %4560 = vmatpush3.bf16.msra.mxu0 %v5130_v60 }
  0x5f   : > { %2031 = vmatpush2.bf16.msra.mxu1 %v5111_v38  ;;  %4561 = vmatprep.subr.bf16.mxu0 %v5131_v62  ;;  %v5947_v38 = vld [vmem:[%s5546_s19 + $0x1c8] ss:$12 sps:$4 sm:$0xff]  }
  0x60   : > { %2032 = vmatprep.subr.bf16.mxu1 %v5432_v2  ;;  %7768 = vst [vmem:[#allocation27_spill] sm:$0xff] %v5947_v38 }
  0x62   : > { %4562 = vmatpush3.bf16.msra.mxu0 %v5131_v62 }
  0x63   : > { %2033 = vmatpush2.bf16.msra.mxu1 %v5112_v39  ;;  %4563 = vmatprep.subr.bf16.mxu0 %v5135_v11  ;;  %v5950_v39 = vld [vmem:[%s5546_s19 + $0x230] ss:$12 sps:$4 sm:$0xff]  }
  0x64   : > { %1363 = vmatmul.mubr.bf16.gmra.mxu0 %v5662_v1  ;;  %2034 = vmatprep.subr.bf16.mxu1 %v5432_v2  ;;  %7769 = vst [vmem:[#allocation28_spill] sm:$0xff] %v5950_v39 }
  0x65   : > { %1756 = vmatmul.mubr.bf16.gmra.mxu1 %v5004_v3  ;;  %1372 = vmatprep.mubr.bf16.mxu0 %v5666_v4  ;;  %v5892_v3 = vld [vmem:[%s5546_s19 + $0x1d0] ss:$12 sps:$4 sm:$0xff]  }
  0x66   : > { %1765 = vmatprep.mubr.bf16.mxu1 %v5432_v2  ;;  %7757 = vst [vmem:[#allocation16_spill] sm:$0xff] %v5892_v3  ;;  %4564 = vmatpush3.bf16.msra.mxu0 %v5135_v11 }
  0x67   : > { %2035 = vmatpush2.bf16.msra.mxu1 %v5117_v43  ;;  %4565 = vmatprep.subr.bf16.mxu0 %v5136_v15  ;;  %v5953_v43 = vld [vmem:[%s5546_s19 + $0x1e4] ss:$12 sps:$4 sm:$0xff]  }
  0x68   : > { %2036 = vmatprep.subr.bf16.mxu1 %v5432_v2  ;;  %7770 = vst [vmem:[#allocation29_spill] sm:$0xff] %v5953_v43 }
  0x6a   : > { %4566 = vmatpush3.bf16.msra.mxu0 %v5136_v15  ;;  %v5079_v15 = vld [vmem:[%s5546_s19 + $0x1f8] ss:$12 sps:$4 sm:$0xff]  }
  0x6b   : > { %2037 = vmatpush2.bf16.msra.mxu1 %v5118_v44  ;;  %v5960_v44 = vld [vmem:[%s5546_s19 + $0x1e0] ss:$12 sps:$4 sm:$0xff]  }
  0x6c   : > { %1373 = vmatmul.mubr.bf16.gmra.mxu0 %v5673_v5  ;;  %7771 = vst [vmem:[#allocation30_spill] sm:$0xff] %v5960_v44 }
  0x6d   : > { %1766 = vmatmul.mubr.bf16.gmra.mxu1 %v5676_v6  ;;  %1382 = vmatprep.mubr.bf16.mxu0 %v5679_v7 }
  0x6e   : > { %1775 = vmatprep.mubr.bf16.mxu1 %v5432_v2 }
  0x74   : > { %1383 = vmatmul.mubr.bf16.gmra.mxu0 %v5689_v9 }
  0x75   : > { %1776 = vmatmul.mubr.bf16.gmra.mxu1 %v5692_v10  ;;  %1392 = vmatprep.mubr.bf16.mxu0 %v5698_v12 }
  0x76   : > { %1785 = vmatprep.mubr.bf16.mxu1 %v5432_v2 }
  0x7c   : > { %1393 = vmatmul.mubr.bf16.gmra.mxu0 %v5706_v13 }
  0x7d   : > { %1786 = vmatmul.mubr.bf16.gmra.mxu1 %v5709_v14  ;;  %1402 = vmatprep.mubr.bf16.mxu0 %v5715_v16 }
  0x7e   : > { %1795 = vmatprep.mubr.bf16.mxu1 %v5432_v2 }
  0x84   : > { %1403 = vmatmul.mubr.bf16.gmra.mxu0 %v5730_v19 }
  0x85   : > { %1796 = vmatmul.mubr.bf16.gmra.mxu1 %v5733_v20  ;;  %1412 = vmatprep.mubr.bf16.mxu0 %v5736_v21 }
  0x86   : > { %1805 = vmatprep.mubr.bf16.mxu1 %v5432_v2 }
  0x8c   : > { %1413 = vmatmul.mubr.bf16.gmra.mxu0 %v5751_v24 }
  0x8d   : > { %1806 = vmatmul.mubr.bf16.gmra.mxu1 %v5754_v25  ;;  %1422 = vmatprep.mubr.bf16.mxu0 %v5757_v26 }
  0x8e   : > { %1815 = vmatprep.mubr.bf16.mxu1 %v5432_v2 }
  0x94   : > { %1423 = vmatmul.mubr.bf16.gmra.mxu0 %v5775_v30 }
  0x95   : > { %1816 = vmatmul.mubr.bf16.gmra.mxu1 %v5778_v31  ;;  %1432 = vmatprep.mubr.bf16.mxu0 %v5781_v32 }
  0x96   : > { %1825 = vmatprep.mubr.bf16.mxu1 %v5432_v2 }
  0x9c   : > { %1433 = vmatmul.mubr.bf16.gmra.mxu0 %v5796_v35 }
  0x9d   : > { %1826 = vmatmul.mubr.bf16.gmra.mxu1 %v5799_v36  ;;  %1442 = vmatprep.mubr.bf16.mxu0 %v5802_v37 }
  0x9e   : > { %1835 = vmatprep.mubr.bf16.mxu1 %v5432_v2 }
  0xa4   : > { %1443 = vmatmul.mubr.bf16.gmra.mxu0 %v5817_v40 }
  0xa5   : > { %1836 = vmatmul.mubr.bf16.gmra.mxu1 %v5820_v41  ;;  %1452 = vmatprep.mubr.bf16.mxu0 %v5823_v42 }
  0xa6   : > { %1845 = vmatprep.mubr.bf16.mxu1 %v5432_v2 }
  0xac   : > { %1453 = vmatmul.mubr.bf16.gmra.mxu0 %v5838_v45  ;;  %v5107_v45 = vld [vmem:[%s5546_s19 + $0x274] ss:$12 sps:$4 sm:$0xff]  }
  0xad   : > { %1846 = vmatmul.mubr.bf16.gmra.mxu1 %v5841_v46  ;;  %1462 = vmatprep.mubr.bf16.mxu0 %v5844_v47  ;;  %v5103_v47 = vld [vmem:[%s5546_s19 + $0x258] ss:$12 sps:$4 sm:$0xff]  }
  0xae   : > { %1855 = vmatprep.mubr.bf16.mxu1 %v5432_v2 }
  0xb4   : > { %1463 = vmatmul.mubr.bf16.gmra.mxu0 %v5854_v49 }
  0xb5   : > { %1856 = vmatmul.mubr.bf16.gmra.mxu1 %v5857_v50  ;;  %1472 = vmatprep.mubr.bf16.mxu0 %v5860_v51  ;;  %v6025_v50 = vld [vmem:[%s5546_s19 + $0x2c0] ss:$12 sps:$4 sm:$0xff]  }
  0xb6   : > { %1865 = vmatprep.mubr.bf16.mxu1 %v5432_v2  ;;  %7778 = vst [vmem:[#allocation37_spill] sm:$0xff] %v6025_v50 }
  0xbc   : > { %1473 = vmatmul.mubr.bf16.gmra.mxu0 %v5870_v53 }
  0xbd   : > { %1866 = vmatmul.mubr.bf16.gmra.mxu1 %v5873_v55  ;;  %1482 = vmatprep.mubr.bf16.mxu0 %v5876_v58  ;;  %v6008_v58 = vld [vmem:[%s5546_s19 + $0x2a8] ss:$12 sps:$4 sm:$0xff]  }
  0xbe   : > { %1875 = vmatprep.mubr.bf16.mxu1 %v5432_v2  ;;  %7776 = vst [vmem:[#allocation35_spill] sm:$0xff] %v6008_v58 }
  0xc4   : > { %1483 = vmatmul.mubr.bf16.gmra.mxu0 %v5889_v0 }
  0xc5   : > { %1876 = vmatmul.mubr.bf16.gmra.mxu1 %v5892_v3  ;;  %1492 = vmatprep.mubr.bf16.mxu0 %v5895_v8  ;;  %v5993_v8 = vld [vmem:[%s5546_s19 + $0x290] ss:$12 sps:$4 sm:$0xff]  }
  0xc6   : > { %1885 = vmatprep.mubr.bf16.mxu1 %v5432_v2  ;;  %7775 = vst [vmem:[#allocation34_spill] sm:$0xff] %v5993_v8 }
  0xcc   : > { %1493 = vmatmul.mubr.bf16.gmra.mxu0 %v5908_v17 }
  0xcd   : > { %1886 = vmatmul.mubr.bf16.gmra.mxu1 %v5911_v18  ;;  %1502 = vmatprep.mubr.bf16.mxu0 %v5914_v22  ;;  %v5088_v22 = vld [vmem:[%s5546_s19 + $0x22c] ss:$12 sps:$4 sm:$0xff]  }
  0xce   : > { %1895 = vmatprep.mubr.bf16.mxu1 %v5432_v2 }
  0xd4   : > { %1503 = vmatmul.mubr.bf16.gmra.mxu0 %v5921_v23  ;;  %v5978_v23 = vld [vmem:[%s5546_s19 + $0x278] ss:$12 sps:$4 sm:$0xff]  }
  0xd5   : > { %1896 = vmatmul.mubr.bf16.gmra.mxu1 %v5924_v27  ;;  %1512 = vmatprep.mubr.bf16.mxu0 %v5927_v28  ;;  %v5084_v28 = vld [vmem:[%s5546_s19 + $0x210] ss:$12 sps:$4 sm:$0xff]   ;;  %7774 = vst [vmem:[#allocation33_spill] sm:$0xff] %v5978_v23 }
  0xd6   : > { %1905 = vmatprep.mubr.bf16.mxu1 %v5432_v2  ;;  %v5101_v27 = vld [vmem:[%s5546_s19 + $0x25c] ss:$12 sps:$4 sm:$0xff]  }
  0xdc   : > { %1513 = vmatmul.mubr.bf16.gmra.mxu0 %v5934_v29 }
  0xdd   : > { %1906 = vmatmul.mubr.bf16.gmra.mxu1 %v5937_v33  ;;  %1522 = vmatprep.mubr.bf16.mxu0 %v5940_v34  ;;  %v5096_v33 = vld [vmem:[%s5546_s19 + $0x240] ss:$12 sps:$4 sm:$0xff]  }
  0xde   : > { %1915 = vmatprep.mubr.bf16.mxu1 %v5432_v2 }
  0xe4   : > { %1523 = vmatmul.mubr.bf16.gmra.mxu0 %v5947_v38  ;;  %v5082_v38 = vld [vmem:[%s5546_s19 + $0x214] ss:$12 sps:$4 sm:$0xff]  }
  0xe5   : > { %1916 = vmatmul.mubr.bf16.gmra.mxu1 %v5950_v39  ;;  %1532 = vmatprep.mubr.bf16.mxu0 %v5953_v43  ;;  %v5971_v43 = vld [vmem:[%s5546_s19 + $0x260] ss:$12 sps:$4 sm:$0xff]   ;;  %v5094_v39 = vld [vmem:[%s5546_s19 + $0x244] ss:$12 sps:$4 sm:$0xff]  }
  0xe6   : > { %1925 = vmatprep.mubr.bf16.mxu1 %v5432_v2  ;;  %7773 = vst [vmem:[#allocation32_spill] sm:$0xff] %v5971_v43 }
  0xec   : > { %1533 = vmatmul.mubr.bf16.gmra.mxu0 %v5960_v44 }
  0xed   : > { %v1687_v60 = vpop.f32.mrf.mxu1  ;;  %1926 = vmatmul.mubr.bf16.gmra.mxu1 %v5963_v48  ;;  %1542 = vmatprep.mubr.bf16.mxu0 %v5077_v52 }
  0xee   : > { %1935 = vmatprep.mubr.bf16.mxu1 %v5432_v2 }
  0xef   : > { %v1689_v62 = vpop.f32.mrf.mxu1 }
  0xf1   : > { %v1691_v11 = vpop.f32.mrf.mxu1 }
  0xf3   : > { %v1693_v34 = vpop.f32.mrf.mxu1 }
  0xf4   : > { %1543 = vmatmul.mubr.bf16.gmra.mxu0 %v5079_v15 }
  0xf5   : > { %v1697_v29 = vpop.f32.mrf.mxu1  ;;  %1936 = vmatmul.mubr.bf16.gmra.mxu1 %v5971_v43  ;;  %1552 = vmatprep.mubr.bf16.mxu0 %v5082_v38  ;;  %v5090_v43 = vld [vmem:[%s5546_s19 + $0x228] ss:$12 sps:$4 sm:$0xff]  }
  0xf6   : > { %1945 = vmatprep.mubr.bf16.mxu1 %v5432_v2 }
  0xf7   : > { %v1699_v52 = vpop.f32.mrf.mxu1 }
  0xf9   : > { %v1701_v44 = vpop.f32.mrf.mxu1 }
  0xfb   : > { %v5981_v17 = vpop.f32.mrf.mxu1 }
  0xfc   : > { %1553 = vmatmul.mubr.bf16.gmra.mxu0 %v5084_v28 }
  0xfd   : > { %v5983_v48 = vpop.f32.mrf.mxu1  ;;  %1946 = vmatmul.mubr.bf16.gmra.mxu1 %v5978_v23  ;;  %1562 = vmatprep.mubr.bf16.mxu0 %v5088_v22 }
  0xfe   : > { %1955 = vmatprep.mubr.bf16.mxu1 %v5432_v2 }
  0xff   : > { %v5987_v38 = vpop.f32.mrf.mxu1 }
 0x101   : > { %v5989_v15 = vpop.f32.mrf.mxu1 }
 0x103   : > { %v5996_v0 = vpop.f32.mrf.mxu1 }
 0x104   : > { %1563 = vmatmul.mubr.bf16.gmra.mxu0 %v5090_v43 }
 0x105   : > { %v5998_v28 = vpop.f32.mrf.mxu1  ;;  %1956 = vmatmul.mubr.bf16.gmra.mxu1 %v5993_v8  ;;  %1572 = vmatprep.mubr.bf16.mxu0 %v5094_v39 }
 0x106   : > { %1965 = vmatprep.mubr.bf16.mxu1 %v5432_v2 }
 0x107   : > { %v6002_v22 = vpop.f32.mrf.mxu1 }
 0x109   : > { %v6004_v23 = vpop.f32.mrf.mxu1 }
 0x10b   : > { %v6011_v53 = vpop.f32.mrf.mxu1 }
 0x10c   : > { %v1334_v43 = vpop.f32.mrf.mxu0  ;;  %1573 = vmatmul.mubr.bf16.gmra.mxu0 %v5096_v33 }
 0x10d   : > { %v6013_v18 = vpop.f32.mrf.mxu1  ;;  %1966 = vmatmul.mubr.bf16.gmra.mxu1 %v6008_v58  ;;  %v6016_v39 = vadd.f32 %v1687_v60, %v1334_v43  ;;  %1582 = vmatprep.mubr.bf16.mxu0 %v5101_v27 }
 0x10e   : > { %1975 = vmatprep.mubr.bf16.mxu1 %v5432_v2  ;;  %v1336_v8 = vpop.f32.mrf.mxu0 }
 0x10f   : > { %7777 = vst [vmem:[#allocation36_spill] sm:$0xff] %v6016_v39  ;;  %v6019_v51 = vpop.f32.mrf.mxu1  ;;  %v1690_v3 = vadd.f32 %v1689_v62, %v1336_v8 }
 0x110   : > { %v1338_v49 = vpop.f32.mrf.mxu0 }
 0x111   : > { %v6021_v55 = vpop.f32.mrf.mxu1  ;;  %v6027_v33 = vadd.f32 %v1691_v11, %v1338_v49 }
 0x112   : > { %v1340_v46 = vpop.f32.mrf.mxu0 }
 0x113   : > { %7779 = vst [vmem:[#allocation38_spill] sm:$0xff] %v6027_v33  ;;  %v6030_v58 = vpop.f32.mrf.mxu1  ;;  %v1694_v60 = vadd.f32 %v1693_v34, %v1340_v46  ;;  %v5109_v34 = vld [vmem:[%s5546_s19 + $0x270] ss:$12 sps:$4 sm:$0xff]  }
 0x114   : > { %v1344_v43 = vpop.f32.mrf.mxu0  ;;  %1583 = vmatmul.mubr.bf16.gmra.mxu0 %v5103_v47  ;;  %v6048_v47 = vld [vmem:[%s5546_s19 + $0x2d8] ss:$12 sps:$4 sm:$0xff]  }
 0x115   : > { %v6034_v8 = vpop.f32.mrf.mxu1  ;;  %1976 = vmatmul.mubr.bf16.gmra.mxu1 %v6025_v50  ;;  %v6037_v62 = vpack.c.bf16 %v1694_v60, %v1690_v3  ;;  %v6039_v49 = vadd.f32 %v1697_v29, %v1344_v43  ;;  %1592 = vmatprep.mubr.bf16.mxu0 %v5107_v45  ;;  %7782 = vst [vmem:[#allocation41_spill] sm:$0xff] %v6048_v47  ;;  %v5113_v50 = vld [vmem:[%s5546_s19 + $0x28c] ss:$12 sps:$4 sm:$0xff]  }
 0x116   : > { %1985 = vmatprep.mubr.bf16.mxu1 %v5432_v2  ;;  %v1346_v11 = vpop.f32.mrf.mxu0 }
 0x117   : > { %7780 = vst [vmem:[#allocation39_spill] sm:$0xff] %v6037_v62  ;;  %7781 = vst [vmem:[#allocation40_spill] sm:$0xff] %v6039_v49  ;;  %v6042_v42 = vpop.f32.mrf.mxu1  ;;  %v1700_v27 = vadd.f32 %v1699_v52, %v1346_v11 }
 0x118   : > { %v1348_v39 = vpop.f32.mrf.mxu0 }
 0x119   : > { %v6044_v46 = vpop.f32.mrf.mxu1  ;;  %v6050_v33 = vadd.f32 %v1701_v44, %v1348_v39 }
 0x11a   : > { %v1350_v3 = vpop.f32.mrf.mxu0 }
 0x11b   : > { %7783 = vst [vmem:[#allocation42_spill] sm:$0xff] %v6050_v33  ;;  %v6053_v60 = vpop.f32.mrf.mxu1  ;;  %v1704_v29 = vadd.f32 %v5981_v17, %v1350_v3  ;;  %v6074_v33 = vld [vmem:[%s5546_s19 + $0x2f0] ss:$12 sps:$4 sm:$0xff]  }
 0x11c   : > { %v1354_v52 = vpop.f32.mrf.mxu0  ;;  %1593 = vmatmul.mubr.bf16.gmra.mxu0 %v5109_v34  ;;  %v5115_v34 = vld [vmem:[%s5546_s19 + $0x288] ss:$12 sps:$4 sm:$0xff]   ;;  %7785 = vst [vmem:[#allocation44_spill] sm:$0xff] %v6074_v33 }
 0x11d   : > { %v6058_v43 = vpop.f32.mrf.mxu1  ;;  %1986 = vmatmul.mubr.bf16.gmra.mxu1 %v6048_v47  ;;  %v6061_v44 = vpack.c.bf16 %v1704_v29, %v1700_v27  ;;  %v6064_v39 = vadd.f32 %v5983_v48, %v1354_v52  ;;  %1602 = vmatprep.mubr.bf16.mxu0 %v5113_v50  ;;  %v5121_v48 = vld [vmem:[%s5546_s19 + $0x2a4] ss:$12 sps:$4 sm:$0xff]  }
 0x11e   : > { %1995 = vmatprep.mubr.bf16.mxu1 %v5432_v2  ;;  %v1356_v11 = vpop.f32.mrf.mxu0 }
 0x11f   : > { %7784 = vst [vmem:[#allocation43_spill] sm:$0xff] %v6064_v39  ;;  %v6067_v45 = vpop.f32.mrf.mxu1  ;;  %v1710_v17 = vadd.f32 %v5987_v38, %v1356_v11  ;;  %v5125_v39 = vld [vmem:[%s5546_s19 + $0x2bc] ss:$12 sps:$4 sm:$0xff]  }
 0x120   : > { %v1358_v3 = vpop.f32.mrf.mxu0 }
 0x121   : > { %v6070_v49 = vpop.f32.mrf.mxu1  ;;  %v6077_v27 = vadd.f32 %v5989_v15, %v1358_v3  ;;  %v5393_v3 = vld [vmem:[%s5546_s19 + $0x4] ss:$12 sps:$4 sm:$0xff]  }
 0x122   : > { %v1360_v29 = vpop.f32.mrf.mxu0 }
 0x123   : > { %7786 = vst [vmem:[#allocation45_spill] sm:$0xff] %v6077_v27  ;;  %v6080_v50 = vpop.f32.mrf.mxu1  ;;  %v1714_v38 = vadd.f32 %v5996_v0, %v1360_v29  ;;  %v5119_v29 = vld [vmem:[%s5546_s19 + $0x2a0] ss:$12 sps:$4 sm:$0xff]  }
 0x124   : > { %v1364_v52 = vpop.f32.mrf.mxu0  ;;  %1603 = vmatmul.mubr.bf16.gmra.mxu0 %v5115_v34 }
 0x125   : > { %v6085_v11 = vpop.f32.mrf.mxu1  ;;  %1996 = vmatmul.mubr.bf16.gmra.mxu1 %v6074_v33  ;;  %v6088_v47 = vpack.c.bf16 %v1714_v38, %v1710_v17  ;;  %v6091_v15 = vadd.f32 %v5998_v28, %v1364_v52  ;;  %1612 = vmatprep.mubr.bf16.mxu0 %v5121_v48 }
 0x126   : > { %2038 = vmatprep.mubr.bf16.mxu1 %v5393_v3  ;;  %v1366_v41 = vpop.f32.mrf.mxu0 }
 0x127   : > { %7787 = vst [vmem:[#allocation46_spill] sm:$0xff] %v6091_v15  ;;  %v6094_v40 = vpop.f32.mrf.mxu1  ;;  %v1720_v28 = vadd.f32 %v6002_v22, %v1366_v41 }
 0x128   : > { %v1368_v2 = vpop.f32.mrf.mxu0 }
 0x129   : > { %v6096_v0 = vpop.f32.mrf.mxu1  ;;  %v6100_v34 = vadd.f32 %v6004_v23, %v1368_v2 }
 0x12a   : > { %v1370_v27 = vpop.f32.mrf.mxu0 }
 0x12b   : > { %7788 = vst [vmem:[#allocation47_spill] sm:$0xff] %v6100_v34  ;;  %v6103_v17 = vpop.f32.mrf.mxu1  ;;  %v1724_v38 = vadd.f32 %v6011_v53, %v1370_v27  ;;  %v5123_v53 = vld [vmem:[%s5546_s19 + $0x2b8] ss:$12 sps:$4 sm:$0xff]  }
 0x12c   : > { %v1374_v52 = vpop.f32.mrf.mxu0  ;;  %1613 = vmatmul.mubr.bf16.gmra.mxu0 %v5119_v29  ;;  %v5129_v29 = vld [vmem:[%s5546_s19 + $0x2d4] ss:$12 sps:$4 sm:$0xff]  }
 0x12d   : > { %v6109_v3 = vpop.f32.mrf.mxu1  ;;  %2039 = vmatmul.mubr.bf16.vlgmr.msra.gmra.mxu1 %v5625_v54  ;;  %v6112_v23 = vpack.c.bf16 %v1724_v38, %v1720_v28  ;;  %v6115_v2 = vadd.f32 %v6013_v18, %v1374_v52  ;;  %1622 = vmatprep.mubr.bf16.mxu0 %v5125_v39 }
 0x12e   : > { %2046 = vmatprep.mubr.bf16.mxu1 %v5629_v56  ;;  %v1376_v41 = vpop.f32.mrf.mxu0 }
 0x12f   : > { %7789 = vst [vmem:[#allocation48_spill] sm:$0xff] %v6115_v2  ;;  %v6118_v22 = vpop.f32.mrf.mxu1  ;;  %v1730_v18 = vadd.f32 %v6019_v51, %v1376_v41 }
 0x130   : > { %v1378_v48 = vpop.f32.mrf.mxu0 }
 0x131   : > { %v6120_v15 = vpop.f32.mrf.mxu1  ;;  %v6124_v27 = vadd.f32 %v6021_v55, %v1378_v48 }
 0x132   : > { %v1380_v54 = vpop.f32.mrf.mxu0 }
 0x133   : > { %7790 = vst [vmem:[#allocation49_spill] sm:$0xff] %v6124_v27  ;;  %v6127_v28 = vpop.f32.mrf.mxu1  ;;  %v1734_v39 = vadd.f32 %v6030_v58, %v1380_v54 }
 0x134   : > { %v1384_v38 = vpop.f32.mrf.mxu0  ;;  %1623 = vmatmul.mubr.bf16.gmra.mxu0 %v5123_v53  ;;  %v5127_v53 = vld [vmem:[%s5546_s19 + $0x2d0] ss:$12 sps:$4 sm:$0xff]  }
 0x135   : > { %v6133_v52 = vpop.f32.mrf.mxu1  ;;  %2047 = vmatmul.mubr.bf16.gmra.mxu1 %v5635_v57  ;;  %v6136_v55 = vpack.c.bf16 %v1734_v39, %v1730_v18  ;;  %v6139_v48 = vadd.f32 %v6034_v8, %v1384_v38  ;;  %1632 = vmatprep.mubr.bf16.mxu0 %v5129_v29  ;;  %v5134_v57 = vld [vmem:[%s5546_s19 + $0x2ec] ss:$12 sps:$4 sm:$0xff]   ;;  %v5132_v8 = vld [vmem:[%s5546_s19 + $0x2e8] ss:$12 sps:$4 sm:$0xff]  }
 0x136   : > { %2054 = vmatprep.mubr.bf16.mxu1 %v5639_v59  ;;  %v6142_v51 = vpop.f32.mrf.mxu0 }
 0x137   : > { %7791 = vst [vmem:[#allocation50_spill] sm:$0xff] %v6139_v48  ;;  %v6144_v41 = vpop.f32.mrf.mxu1 }
 0x138   : > { %v1388_v56 = vpop.f32.mrf.mxu0 }
 0x139   : > { %v6146_v58 = vpop.f32.mrf.mxu1  ;;  %v6150_v54 = vadd.f32 %v6044_v46, %v1388_v56 }
 0x13a   : > { %v1390_v18 = vpop.f32.mrf.mxu0 }
 0x13b   : > { %7792 = vst [vmem:[#allocation51_spill] sm:$0xff] %v6150_v54  ;;  %v6153_v39 = vpop.f32.mrf.mxu1 }
 0x13c   : > { %v1394_v59 = vpop.f32.mrf.mxu0  ;;  %1633 = vmatmul.mubr.bf16.gmra.mxu0 %v5127_v53 }
 0x13d   : > { %v6157_v29 = vpop.f32.mrf.mxu1  ;;  %2055 = vmatmul.mubr.bf16.gmra.mxu1 %v5648_v61  ;;  %v6161_v38 = vadd.f32 %v6058_v43, %v1394_v59  ;;  %1642 = vmatprep.mubr.bf16.mxu0 %v5134_v57  ;;  %v5394_v59 = vld [vmem:[%s5546_s19 + $0x8] ss:$12 sps:$4 sm:$0xff]  }
 0x13e   : > { %2062 = vmatprep.mubr.bf16.mxu1 %v5653_v63  ;;  %v1396_v46 = vpop.f32.mrf.mxu0 }
 0x13f   : > { %7793 = vst [vmem:[#allocation52_spill] sm:$0xff] %v6161_v38  ;;  %v6164_v56 = vpop.f32.mrf.mxu1 }
 0x140   : > { %v1398_v2 = vpop.f32.mrf.mxu0 }
 0x141   : > { %v6166_v27 = vpop.f32.mrf.mxu1  ;;  %v6170_v53 = vadd.f32 %v6070_v49, %v1398_v2 }
 0x142   : > { %v1400_v48 = vpop.f32.mrf.mxu0 }
 0x143   : > { %7794 = vst [vmem:[#allocation53_spill] sm:$0xff] %v6170_v53  ;;  %v6172_v54 = vpop.f32.mrf.mxu1 }
 0x144   : > { %v1404_v43 = vpop.f32.mrf.mxu0  ;;  %1643 = vmatmul.mubr.bf16.gmra.mxu0 %v5132_v8 }
 0x145   : > { %v6176_v63 = vpop.f32.mrf.mxu1  ;;  %2063 = vmatmul.mubr.bf16.gmra.mxu1 %v5662_v1  ;;  %v6180_v57 = vadd.f32 %v6085_v11, %v1404_v43  ;;  %4567 = vmatprep.mubr.bf16.mxu0 %v5394_v59  ;;  %v1754_v11 = vadd.f32 %v6080_v50, %v1400_v48 }
 0x146   : > { %2070 = vmatprep.mubr.bf16.mxu1 %v5666_v4  ;;  %v1406_v49 = vpop.f32.mrf.mxu0 }
 0x147   : > { %v6184_v2 = vpop.f32.mrf.mxu1  ;;  %v1760_v4 = vadd.f32 %v6094_v40, %v1406_v49  ;;  %v5396_v40 = vld [vmem:[%s5546_s19 + $0x38] ss:$12 sps:$4 sm:$0xff]  }
 0x148   : > { %v1408_v34 = vpop.f32.mrf.mxu0 }
 0x149   : > { %v6186_v33 = vpop.f32.mrf.mxu1  ;;  %v6189_v8 = vadd.f32 %v6096_v0, %v1408_v34  ;;  %v5395_v0 = vld [vmem:[%s5546_s19 + $0x20] ss:$12 sps:$4 sm:$0xff]   ;;  %v1750_v34 = vadd.f32 %v6067_v45, %v1396_v46 }
 0x14a   : > { %v1410_v61 = vpop.f32.mrf.mxu0  ;;  %v7831_v46 = vld [vmem:[#allocation31_spill] sm:$0xff] }
 0x14b   : > { %v6191_v1 = vpop.f32.mrf.mxu1  ;;  %v1764_v59 = vadd.f32 %v6103_v17, %v1410_v61  ;;  %v2622_v17 = vpack.c.bf16 %v1754_v11, %v1750_v34 }
 0x14c   : > { %v1414_v38 = vpop.f32.mrf.mxu0  ;;  %4568 = vmatmul.mubr.bf16.vlgmr.msra.gmra.mxu0 %v5395_v0 }
 0x14d   : > { %v6198_v53 = vpop.f32.mrf.mxu1  ;;  %2071 = vmatmul.mubr.bf16.gmra.mxu1 %v5673_v5  ;;  %v2623_v62 = vpack.c.bf16 %v1764_v59, %v1760_v4  ;;  %v6204_v36 = vadd.f32 %v6109_v3, %v1414_v38  ;;  %4571 = vmatprep.mubr.bf16.mxu0 %v5396_v40  ;;  %v1744_v38 = vadd.f32 %v6053_v60, %v1390_v18  ;;  %v5398_v60 = vld [vmem:[%s5546_s19 + $0x68] ss:$12 sps:$4 sm:$0xff]  }
 0x14e   : > { %2078 = vmatprep.mubr.bf16.mxu1 %v5679_v7  ;;  %v1416_v50 = vpop.f32.mrf.mxu0 }
 0x14f   : > { %v6208_v48 = vpop.f32.mrf.mxu1  ;;  %v1770_v61 = vadd.f32 %v6118_v22, %v1416_v50  ;;  %4631 = vmatprep.subr.bf16.mxu0 %v2623_v62 }
 0x150   : > { %v1418_v5 = vpop.f32.mrf.mxu0  ;;  %4632 = vmatpush3.bf16.xpose.msra.mxu0 %v2623_v62  ;;  %v5397_v62 = vld [vmem:[%s5546_s19 + $0x50] ss:$12 sps:$4 sm:$0xff]  }
 0x151   : > { %v6211_v49 = vpop.f32.mrf.mxu1  ;;  %v6214_v45 = vadd.f32 %v6120_v15, %v1418_v5  ;;  %4633 = vmatprep.subr.bf16.mxu0 %v2622_v17  ;;  %v1740_v15 = vadd.f32 %v6042_v42, %v6142_v51 }
 0x152   : > { %v1420_v7 = vpop.f32.mrf.mxu0 }
 0x153   : > { %v6216_v3 = vpop.f32.mrf.mxu1  ;;  %v1774_v22 = vadd.f32 %v6127_v28, %v1420_v7  ;;  %v2621_v34 = vpack.c.bf16 %v1744_v38, %v1740_v15  ;;  %v5400_v38 = vld [vmem:[%s5546_s19 + $0x98] ss:$12 sps:$4 sm:$0xff]  }
 0x154   : > { %v1424_v11 = vpop.f32.mrf.mxu0  ;;  %4572 = vmatmul.mubr.bf16.gmra.mxu0 %v5397_v62 }
 0x155   : > { %v6222_v4 = vpop.f32.mrf.mxu1  ;;  %2079 = vmatmul.mubr.bf16.gmra.mxu1 %v5689_v9  ;;  %v6228_v59 = vpack.c.bf16 %v1774_v22, %v1770_v61  ;;  %v6231_v0 = vadd.f32 %v6133_v52, %v1424_v11  ;;  %4575 = vmatprep.mubr.bf16.mxu0 %v5398_v60 }
 0x156   : > { %2086 = vmatprep.mubr.bf16.mxu1 %v5698_v12  ;;  %v1426_v28 = vpop.f32.mrf.mxu0 }
 0x157   : > { %v6235_v18 = vpop.f32.mrf.mxu1  ;;  %v1780_v9 = vadd.f32 %v6144_v41, %v1426_v28  ;;  %v5399_v41 = vld [vmem:[%s5546_s19 + $0x80] ss:$12 sps:$4 sm:$0xff]  }
 0x158   : > { %v1428_v40 = vpop.f32.mrf.mxu0  ;;  %4634 = vmatpush3.bf16.xpose.msra.mxu0 %v2622_v17 }
 0x159   : > { %v6238_v50 = vpop.f32.mrf.mxu1  ;;  %v6241_v42 = vadd.f32 %v6146_v58, %v1428_v40  ;;  %4635 = vmatprep.subr.bf16.mxu0 %v2621_v34 }
 0x15a   : > { %v1430_v52 = vpop.f32.mrf.mxu0 }
 0x15b   : > { %v6243_v12 = vpop.f32.mrf.mxu1  ;;  %v1784_v61 = vadd.f32 %v6153_v39, %v1430_v52 }
 0x15c   : > { %v1434_v5 = vpop.f32.mrf.mxu0  ;;  %4576 = vmatmul.mubr.bf16.gmra.mxu0 %v5399_v41 }
 0x15d   : > { %v6248_v7 = vpop.f32.mrf.mxu1  ;;  %2087 = vmatmul.mubr.bf16.gmra.mxu1 %v5706_v13  ;;  %v6252_v17 = vpack.c.bf16 %v1784_v61, %v1780_v9  ;;  %v6255_v58 = vadd.f32 %v6157_v29, %v1434_v5  ;;  %4579 = vmatprep.mubr.bf16.mxu0 %v5400_v38 }
 0x15e   : > { %2094 = vmatprep.mubr.bf16.mxu1 %v5715_v16  ;;  %v1436_v22 = vpop.f32.mrf.mxu0 }
 0x15f   : > { %v6259_v11 = vpop.f32.mrf.mxu1  ;;  %v1790_v39 = vadd.f32 %v6164_v56, %v1436_v22  ;;  %v5401_v56 = vld [vmem:[%s5546_s19 + $0xb0] ss:$12 sps:$4 sm:$0xff]  }
 0x160   : > { %v1438_v62 = vpop.f32.mrf.mxu0  ;;  %4636 = vmatpush3.bf16.xpose.msra.mxu0 %v2621_v34 }
 0x161   : > { %v6262_v15 = vpop.f32.mrf.mxu1  ;;  %v6265_v13 = vadd.f32 %v6166_v27, %v1438_v62  ;;  %4637 = vmatprep.subr.bf16.mxu0 %v6136_v55 }
 0x162   : > { %v1440_v29 = vpop.f32.mrf.mxu0 }
 0x163   : > { %v6268_v60 = vpop.f32.mrf.mxu1  ;;  %v1794_v28 = vadd.f32 %v6172_v54, %v1440_v29 }
 0x164   : > { %v1444_v9 = vpop.f32.mrf.mxu0  ;;  %4580 = vmatmul.mubr.bf16.gmra.mxu0 %v5401_v56 }
 0x165   : > { %v6273_v40 = vpop.f32.mrf.mxu1  ;;  %2095 = vmatmul.mubr.bf16.gmra.mxu1 %v5730_v19  ;;  %v6277_v34 = vpack.c.bf16 %v1794_v28, %v1790_v39  ;;  %v6280_v27 = vadd.f32 %v6176_v63, %v1444_v9  ;;  %4583 = vmatprep.mubr.bf16.mxu0 %v5676_v6  ;;  %v7825_v6 = vld [vmem:[#allocation25_spill] sm:$0xff] }
 0x166   : > { %2102 = vmatprep.mubr.bf16.mxu1 %v5736_v21  ;;  %v1446_v52 = vpop.f32.mrf.mxu0 }
 0x167   : > { %v6284_v61 = vpop.f32.mrf.mxu1  ;;  %v1800_v54 = vadd.f32 %v6184_v2, %v1446_v52 }
 0x168   : > { %v1448_v5 = vpop.f32.mrf.mxu0  ;;  %4638 = vmatpush3.bf16.xpose.msra.mxu0 %v6136_v55 }
 0x169   : > { %v6287_v41 = vpop.f32.mrf.mxu1  ;;  %v6291_v19 = vadd.f32 %v6186_v33, %v1448_v5  ;;  %4639 = vmatprep.subr.bf16.mxu0 %v6112_v23 }
 0x16a   : > { %v1450_v63 = vpop.f32.mrf.mxu0 }
 0x16b   : > { %v6294_v38 = vpop.f32.mrf.mxu1  ;;  %v1804_v21 = vadd.f32 %v6191_v1, %v1450_v63 }
 0x16c   : > { %v1454_v22 = vpop.f32.mrf.mxu0  ;;  %4584 = vmatmul.mubr.bf16.gmra.mxu0 %v5692_v10 }
 0x16d   : > { %v6299_v2 = vpop.f32.mrf.mxu1  ;;  %2103 = vmatmul.mubr.bf16.gmra.mxu1 %v5751_v24  ;;  %v6303_v55 = vpack.c.bf16 %v1804_v21, %v1800_v54  ;;  %v6306_v33 = vadd.f32 %v6198_v53, %v1454_v22  ;;  %4587 = vmatprep.mubr.bf16.mxu0 %v5709_v14  ;;  %v7800_v21 = vld [vmem:[#allocation2_spill] sm:$0xff] }
 0x16e   : > { %2110 = vmatprep.mubr.bf16.mxu1 %v5757_v26  ;;  %v1456_v39 = vpop.f32.mrf.mxu0 }
 0x16f   : > { %7795 = vst [vmem:[#allocation54_spill] sm:$0xff] %v6306_v33  ;;  %v6310_v62 = vpop.f32.mrf.mxu1  ;;  %v1810_v1 = vadd.f32 %v6208_v48, %v1456_v39 }
 0x170   : > { %v1458_v29 = vpop.f32.mrf.mxu0  ;;  %4640 = vmatpush3.bf16.xpose.msra.mxu0 %v6112_v23 }
 0x171   : > { %v6313_v28 = vpop.f32.mrf.mxu1  ;;  %v6317_v10 = vadd.f32 %v6211_v49, %v1458_v29  ;;  %4641 = vmatprep.subr.bf16.mxu0 %v6088_v47 }
 0x172   : > { %v1460_v24 = vpop.f32.mrf.mxu0 }
 0x173   : > { %7796 = vst [vmem:[#allocation55_spill] sm:$0xff] %v6317_v10  ;;  %v6320_v53 = vpop.f32.mrf.mxu1  ;;  %v1814_v26 = vadd.f32 %v6216_v3, %v1460_v24 }
 0x174   : > { %v1464_v9 = vpop.f32.mrf.mxu0  ;;  %4588 = vmatmul.mubr.bf16.gmra.mxu0 %v5733_v20 }
 0x175   : > { %v6325_v48 = vpop.f32.mrf.mxu1  ;;  %2111 = vmatmul.mubr.bf16.gmra.mxu1 %v5775_v30  ;;  %v6329_v23 = vpack.c.bf16 %v1814_v26, %v1810_v1  ;;  %v6332_v49 = vadd.f32 %v6222_v4, %v1464_v9  ;;  %4591 = vmatprep.mubr.bf16.mxu0 %v5754_v25 }
 0x176   : > { %2118 = vmatprep.mubr.bf16.mxu1 %v5781_v32  ;;  %v1466_v56 = vpop.f32.mrf.mxu0 }
 0x177   : > { %7797 = vst [vmem:[#allocation56_spill] sm:$0xff] %v6332_v49  ;;  %v6336_v52 = vpop.f32.mrf.mxu1  ;;  %v1820_v3 = vadd.f32 %v6235_v18, %v1466_v56  ;;  %v7803_v56 = vld [vmem:[#allocation3_spill] sm:$0xff] }
 0x178   : > { %v1468_v54 = vpop.f32.mrf.mxu0  ;;  %4642 = vmatpush3.bf16.xpose.msra.mxu0 %v6088_v47 }
 0x179   : > { %v6339_v5 = vpop.f32.mrf.mxu1  ;;  %v6343_v20 = vadd.f32 %v6238_v50, %v1468_v54  ;;  %4643 = vmatprep.subr.bf16.mxu0 %v6061_v44  ;;  %v7806_v54 = vld [vmem:[#allocation5_spill] sm:$0xff] }
 0x17a   : > { %v1470_v30 = vpop.f32.mrf.mxu0 }
 0x17b   : > { %7798 = vst [vmem:[#allocation57_spill] sm:$0xff] %v6343_v20  ;;  %v6346_v4 = vpop.f32.mrf.mxu1  ;;  %v1824_v32 = vadd.f32 %v6243_v12, %v1470_v30  ;;  %v7807_v30 = vld [vmem:[#allocation7_spill] sm:$0xff]  ;;  %v7857_v20 = vld [vmem:[#allocation30_spill] sm:$0xff] }
 0x17c   : > { %v1474_v63 = vpop.f32.mrf.mxu0  ;;  %4592 = vmatmul.mubr.bf16.gmra.mxu0 %v5778_v31 }
 0x17d   : > { %v6351_v18 = vpop.f32.mrf.mxu1  ;;  %2119 = vmatmul.mubr.bf16.gmra.mxu1 %v5796_v35  ;;  %v6355_v47 = vpack.c.bf16 %v1824_v32, %v1820_v3  ;;  %v6358_v50 = vadd.f32 %v6248_v7, %v1474_v63  ;;  %4595 = vmatprep.mubr.bf16.mxu0 %v7800_v21  ;;  %v7802_v35 = vld [vmem:[#allocation39_spill] sm:$0xff]  ;;  %v7804_v3 = vld [vmem:[#allocation4_spill] sm:$0xff] }
 0x17e   : > { %2126 = vmatprep.mubr.bf16.mxu1 %v5802_v37  ;;  %v1476_v22 = vpop.f32.mrf.mxu0  ;;  %v7819_v37 = vld [vmem:[#allocation19_spill] sm:$0xff] }
 0x17f   : > { %7799 = vst [vmem:[#allocation58_spill] sm:$0xff] %v6358_v50  ;;  %v6362_v39 = vpop.f32.mrf.mxu1  ;;  %v1830_v12 = vadd.f32 %v6259_v11, %v1476_v22  ;;  %v7854_v50 = vld [vmem:[#allocation36_spill] sm:$0xff] }
 0x180   : > { %v1478_v1 = vpop.f32.mrf.mxu0  ;;  %4644 = vmatpush3.bf16.xpose.msra.mxu0 %v6061_v44 }
 0x181   : > { %v6365_v29 = vpop.f32.mrf.mxu1  ;;  %v6369_v31 = vadd.f32 %v6262_v15, %v1478_v1  ;;  %4645 = vmatprep.subr.bf16.mxu0 %v7802_v35 }
 0x182   : > { %v1480_v7 = vpop.f32.mrf.mxu0 }
 0x183   : > { %7801 = vst [vmem:[#allocation2_spill] sm:$0xff] %v6369_v31  ;;  %v6372_v24 = vpop.f32.mrf.mxu1  ;;  %v1834_v26 = vadd.f32 %v6268_v60, %v1480_v7 }
 0x184   : > { %v1484_v9 = vpop.f32.mrf.mxu0  ;;  %4596 = vmatmul.mubr.bf16.gmra.mxu0 %v7804_v3  ;;  %v7809_v3 = vld [vmem:[#allocation6_spill] sm:$0xff] }
 0x185   : > { %v6377_v11 = vpop.f32.mrf.mxu1  ;;  %2127 = vmatmul.mubr.bf16.gmra.mxu1 %v7803_v56  ;;  %v6381_v44 = vpack.c.bf16 %v1834_v26, %v1830_v12  ;;  %v6384_v15 = vadd.f32 %v6273_v40, %v1484_v9  ;;  %4599 = vmatprep.mubr.bf16.mxu0 %v7807_v30  ;;  %v7812_v30 = vld [vmem:[#allocation8_spill] sm:$0xff] }
 0x186   : > { %2134 = vmatprep.mubr.bf16.mxu1 %v7806_v54  ;;  %v1486_v32 = vpop.f32.mrf.mxu0  ;;  %v7810_v54 = vld [vmem:[#allocation10_spill] sm:$0xff] }
 0x187   : > { %7805 = vst [vmem:[#allocation39_spill] sm:$0xff] %v6384_v15  ;;  %v6388_v63 = vpop.f32.mrf.mxu1  ;;  %v1840_v40 = vadd.f32 %v6284_v61, %v1486_v32  ;;  %v7813_v61 = vld [vmem:[#allocation13_spill] sm:$0xff] }
 0x188   : > { %v1488_v60 = vpop.f32.mrf.mxu0  ;;  %4646 = vmatpush3.bf16.xpose.msra.mxu0 %v7802_v35 }
 0x189   : > { %v6390_v21 = vpop.f32.mrf.mxu1  ;;  %v6394_v22 = vadd.f32 %v6287_v41, %v1488_v60 }
 0x18a   : > { %v1490_v12 = vpop.f32.mrf.mxu0 }
 0x18b   : > { %7808 = vst [vmem:[#allocation3_spill] sm:$0xff] %v6394_v22  ;;  %v6396_v1 = vpop.f32.mrf.mxu1  ;;  %v1844_v26 = vadd.f32 %v6294_v38, %v1490_v12  ;;  %v7853_v22 = vld [vmem:[#allocation38_spill] sm:$0xff] }
 0x18c   : > { %v1494_v9 = vpop.f32.mrf.mxu0  ;;  %4600 = vmatmul.mubr.bf16.gmra.mxu0 %v7810_v54 }
 0x18d   : > { %v6402_v56 = vpop.f32.mrf.mxu1  ;;  %2135 = vmatmul.mubr.bf16.gmra.mxu1 %v7809_v3  ;;  %v6406_v35 = vpack.c.bf16 %v1844_v26, %v1840_v40  ;;  %v6409_v41 = vadd.f32 %v6299_v2, %v1494_v9  ;;  %4603 = vmatprep.mubr.bf16.mxu0 %v7813_v61 }
 0x18e   : > { %2142 = vmatprep.mubr.bf16.mxu1 %v7812_v30  ;;  %v1496_v32 = vpop.f32.mrf.mxu0 }
 0x18f   : > { %7811 = vst [vmem:[#allocation4_spill] sm:$0xff] %v6409_v41  ;;  %v6413_v60 = vpop.f32.mrf.mxu1  ;;  %v1850_v38 = vadd.f32 %v6310_v62, %v1496_v32  ;;  %4663 = vmatprep.subr.bf16.mxu0 %v6406_v35  ;;  %v7815_v62 = vld [vmem:[#allocation9_spill] sm:$0xff]  ;;  %v7816_v32 = vld [vmem:[#allocation16_spill] sm:$0xff] }
 0x190   : > { %v1498_v12 = vpop.f32.mrf.mxu0 }
 0x191   : > { %v6417_v3 = vpop.f32.mrf.mxu1  ;;  %v6420_v40 = vadd.f32 %v6313_v28, %v1498_v12  ;;  %v7818_v12 = vld [vmem:[#allocation11_spill] sm:$0xff] }
 0x192   : > { %v1500_v26 = vpop.f32.mrf.mxu0 }
 0x193   : > { %7814 = vst [vmem:[#allocation5_spill] sm:$0xff] %v6420_v40  ;;  %v6422_v2 = vpop.f32.mrf.mxu1  ;;  %v1854_v54 = vadd.f32 %v6320_v53, %v1500_v26 }
 0x194   : > { %v1504_v30 = vpop.f32.mrf.mxu0  ;;  %4604 = vmatmul.mubr.bf16.gmra.mxu0 %v7816_v32 }
 0x195   : > { %v6427_v61 = vpop.f32.mrf.mxu1  ;;  %2143 = vmatmul.mubr.bf16.gmra.mxu1 %v7815_v62  ;;  %v6431_v7 = vpack.c.bf16 %v1854_v54, %v1850_v38  ;;  %v6434_v28 = vadd.f32 %v6325_v48, %v1504_v30  ;;  %4607 = vmatprep.mubr.bf16.mxu0 %v7819_v37 }
 0x196   : > { %2150 = vmatprep.mubr.bf16.mxu1 %v7818_v12  ;;  %v1506_v25 = vpop.f32.mrf.mxu0  ;;  %v7821_v12 = vld [vmem:[#allocation12_spill] sm:$0xff] }
 0x197   : > { %7817 = vst [vmem:[#allocation7_spill] sm:$0xff] %v6434_v28  ;;  %v6438_v9 = vpop.f32.mrf.mxu1  ;;  %v1860_v53 = vadd.f32 %v6336_v52, %v1506_v25  ;;  %v7822_v52 = vld [vmem:[#allocation22_spill] sm:$0xff] }
 0x198   : > { %v1508_v26 = vpop.f32.mrf.mxu0 }
 0x199   : > { %v6441_v14 = vpop.f32.mrf.mxu1  ;;  %v6444_v62 = vadd.f32 %v6339_v5, %v1508_v26  ;;  %v7824_v26 = vld [vmem:[#allocation14_spill] sm:$0xff] }
 0x19a   : > { %v1510_v38 = vpop.f32.mrf.mxu0 }
 0x19b   : > { %7820 = vst [vmem:[#allocation6_spill] sm:$0xff] %v6444_v62  ;;  %v6446_v54 = vpop.f32.mrf.mxu1  ;;  %v1864_v30 = vadd.f32 %v6346_v4, %v1510_v38 }
 0x19c   : > { %v1514_v37 = vpop.f32.mrf.mxu0  ;;  %4608 = vmatmul.mubr.bf16.gmra.mxu0 %v7822_v52 }
 0x19d   : > { %v6451_v32 = vpop.f32.mrf.mxu1  ;;  %2151 = vmatmul.mubr.bf16.gmra.mxu1 %v7821_v12  ;;  %v6455_v25 = vpack.c.bf16 %v1864_v30, %v1860_v53  ;;  %v6458_v5 = vadd.f32 %v6351_v18, %v1514_v37  ;;  %4611 = vmatprep.mubr.bf16.mxu0 %v7825_v6 }
 0x19e   : > { %2158 = vmatprep.mubr.bf16.mxu1 %v7824_v26  ;;  %v1516_v16 = vpop.f32.mrf.mxu0  ;;  %v7827_v26 = vld [vmem:[#allocation15_spill] sm:$0xff] }
 0x19f   : > { %7823 = vst [vmem:[#allocation10_spill] sm:$0xff] %v6458_v5  ;;  %v6462_v48 = vpop.f32.mrf.mxu1  ;;  %v1870_v4 = vadd.f32 %v6362_v39, %v1516_v16  ;;  %v7828_v16 = vld [vmem:[#allocation28_spill] sm:$0xff] }
 0x1a0   : > { %v1518_v38 = vpop.f32.mrf.mxu0 }
 0x1a1   : > { %v6465_v51 = vpop.f32.mrf.mxu1  ;;  %v6468_v12 = vadd.f32 %v6365_v29, %v1518_v38  ;;  %v7830_v38 = vld [vmem:[#allocation17_spill] sm:$0xff] }
 0x1a2   : > { %v1520_v53 = vpop.f32.mrf.mxu0 }
 0x1a3   : > { %7826 = vst [vmem:[#allocation8_spill] sm:$0xff] %v6468_v12  ;;  %v6470_v30 = vpop.f32.mrf.mxu1  ;;  %v1874_v37 = vadd.f32 %v6372_v24, %v1520_v53  ;;  %v7834_v12 = vld [vmem:[#allocation32_spill] sm:$0xff] }
 0x1a4   : > { %v1524_v6 = vpop.f32.mrf.mxu0  ;;  %4612 = vmatmul.mubr.bf16.gmra.mxu0 %v7828_v16 }
 0x1a5   : > { %v6475_v52 = vpop.f32.mrf.mxu1  ;;  %2159 = vmatmul.mubr.bf16.gmra.mxu1 %v7827_v26  ;;  %v6479_v39 = vpack.c.bf16 %v1874_v37, %v1870_v4  ;;  %v6482_v29 = vadd.f32 %v6377_v11, %v1524_v6  ;;  %4615 = vmatprep.mubr.bf16.mxu0 %v7831_v46 }
 0x1a6   : > { %2166 = vmatprep.mubr.bf16.mxu1 %v7830_v38  ;;  %v1526_v43 = vpop.f32.mrf.mxu0  ;;  %v7833_v38 = vld [vmem:[#allocation18_spill] sm:$0xff] }
 0x1a7   : > { %7829 = vst [vmem:[#allocation13_spill] sm:$0xff] %v6482_v29  ;;  %v6486_v18 = vpop.f32.mrf.mxu1  ;;  %v1880_v4 = vadd.f32 %v6388_v63, %v1526_v43  ;;  %v7837_v43 = vld [vmem:[#allocation33_spill] sm:$0xff] }
 0x1a8   : > { %v1528_v24 = vpop.f32.mrf.mxu0 }
 0x1a9   : > { %v6488_v53 = vpop.f32.mrf.mxu1  ;;  %v6491_v5 = vadd.f32 %v6390_v21, %v1528_v24  ;;  %v7836_v24 = vld [vmem:[#allocation20_spill] sm:$0xff] }
 0x1aa   : > { %v1530_v26 = vpop.f32.mrf.mxu0 }
 0x1ab   : > { %7832 = vst [vmem:[#allocation9_spill] sm:$0xff] %v6491_v5  ;;  %v6493_v16 = vpop.f32.mrf.mxu1  ;;  %v1884_v37 = vadd.f32 %v6396_v1, %v1530_v26  ;;  %v7840_v5 = vld [vmem:[#allocation34_spill] sm:$0xff] }
 0x1ac   : > { %v1534_v46 = vpop.f32.mrf.mxu0  ;;  %4616 = vmatmul.mubr.bf16.gmra.mxu0 %v7834_v12 }
 0x1ad   : > { %v6499_v6 = vpop.f32.mrf.mxu1  ;;  %2167 = vmatmul.mubr.bf16.gmra.mxu1 %v7833_v38  ;;  %v6503_v28 = vpack.c.bf16 %v1884_v37, %v1880_v4  ;;  %v6506_v21 = vadd.f32 %v6402_v56, %v1534_v46  ;;  %4619 = vmatprep.mubr.bf16.mxu0 %v7837_v43  ;;  %v7839_v43 = vld [vmem:[#allocation21_spill] sm:$0xff] }
 0x1ae   : > { %2174 = vmatprep.mubr.bf16.mxu1 %v7836_v24  ;;  %v1536_v63 = vpop.f32.mrf.mxu0 }
 0x1af   : > { %7835 = vst [vmem:[#allocation16_spill] sm:$0xff] %v6506_v21  ;;  %v6510_v11 = vpop.f32.mrf.mxu1  ;;  %v1890_v4 = vadd.f32 %v6413_v60, %v1536_v63  ;;  %v7843_v60 = vld [vmem:[#allocation35_spill] sm:$0xff] }
 0x1b0   : > { %v1538_v1 = vpop.f32.mrf.mxu0 }
 0x1b1   : > { %v6512_v26 = vpop.f32.mrf.mxu1  ;;  %v6515_v29 = vadd.f32 %v6417_v3, %v1538_v1  ;;  %v7842_v1 = vld [vmem:[#allocation23_spill] sm:$0xff] }
 0x1b2   : > { %v1540_v38 = vpop.f32.mrf.mxu0 }
 0x1b3   : > { %7838 = vst [vmem:[#allocation11_spill] sm:$0xff] %v6515_v29  ;;  %v6517_v12 = vpop.f32.mrf.mxu1  ;;  %v1894_v37 = vadd.f32 %v6422_v2, %v1540_v38  ;;  %v7848_v29 = vld [vmem:[#allocation26_spill] sm:$0xff] }
 0x1b4   : > { %v1544_v46 = vpop.f32.mrf.mxu0  ;;  %4620 = vmatmul.mubr.bf16.gmra.mxu0 %v7840_v5 }
 0x1b5   : > { %v6523_v24 = vpop.f32.mrf.mxu1  ;;  %2175 = vmatmul.mubr.bf16.gmra.mxu1 %v7839_v43  ;;  %v6527_v62 = vpack.c.bf16 %v1894_v37, %v1890_v4  ;;  %v6530_v3 = vadd.f32 %v6427_v61, %v1544_v46  ;;  %4623 = vmatprep.mubr.bf16.mxu0 %v7843_v60  ;;  %v7846_v60 = vld [vmem:[#allocation37_spill] sm:$0xff] }
 0x1b6   : > { %2182 = vmatprep.mubr.bf16.mxu1 %v7842_v1  ;;  %v6534_v63 = vpop.f32.mrf.mxu0  ;;  %v7845_v1 = vld [vmem:[#allocation24_spill] sm:$0xff] }
 0x1b7   : > { %7841 = vst [vmem:[#allocation19_spill] sm:$0xff] %v6530_v3  ;;  %v6536_v56 = vpop.f32.mrf.mxu1 }
 0x1b8   : > { %v1548_v2 = vpop.f32.mrf.mxu0 }
 0x1b9   : > { %v6538_v38 = vpop.f32.mrf.mxu1  ;;  %v6541_v43 = vadd.f32 %v6441_v14, %v1548_v2  ;;  %v7849_v14 = vld [vmem:[#allocation41_spill] sm:$0xff] }
 0x1ba   : > { %v1550_v5 = vpop.f32.mrf.mxu0 }
 0x1bb   : > { %7844 = vst [vmem:[#allocation12_spill] sm:$0xff] %v6541_v43  ;;  %v6543_v4 = vpop.f32.mrf.mxu1 }
 0x1bc   : > { %v1554_v37 = vpop.f32.mrf.mxu0  ;;  %4624 = vmatmul.mubr.bf16.gmra.mxu0 %v7846_v60 }
 0x1bd   : > { %v6547_v46 = vpop.f32.mrf.mxu1  ;;  %2183 = vmatmul.mubr.bf16.gmra.mxu1 %v7845_v1  ;;  %v6552_v21 = vadd.f32 %v6451_v32, %v1554_v37  ;;  %4627 = vmatprep.mubr.bf16.mxu0 %v7849_v14  ;;  %v7852_v14 = vld [vmem:[#allocation44_spill] sm:$0xff] }
 0x1be   : > { %2190 = vmatprep.mubr.bf16.mxu1 %v7848_v29  ;;  %v1556_v2 = vpop.f32.mrf.mxu0  ;;  %v7851_v29 = vld [vmem:[#allocation27_spill] sm:$0xff] }
 0x1bf   : > { %7847 = vst [vmem:[#allocation22_spill] sm:$0xff] %v6552_v21  ;;  %v6556_v41 = vpop.f32.mrf.mxu1  ;;  %v1910_v10 = vadd.f32 %v6462_v48, %v1556_v2 }
 0x1c0   : > { %v1558_v40 = vpop.f32.mrf.mxu0 }
 0x1c1   : > { %v6558_v15 = vpop.f32.mrf.mxu1  ;;  %v6561_v61 = vadd.f32 %v6465_v51, %v1558_v40  ;;  %v7855_v51 = vpack.c.bf16 %v7853_v22, %v7854_v50  ;;  %v7856_v40 = vld [vmem:[#allocation29_spill] sm:$0xff] }
 0x1c2   : > { %v1560_v3 = vpop.f32.mrf.mxu0  ;;  %v5402_v22 = vld [vmem:[%s5546_s19 + $0x1fc] ss:$12 sps:$4 sm:$0xff]  }
 0x1c3   : > { %7850 = vst [vmem:[#allocation14_spill] sm:$0xff] %v6561_v61  ;;  %v6563_v1 = vpop.f32.mrf.mxu1 }
 0x1c4   : > { %v1564_v37 = vpop.f32.mrf.mxu0  ;;  %4628 = vmatmul.mubr.bf16.gmra.mxu0 %v7852_v14 }
 0x1c5   : > { %v6567_v60 = vpop.f32.mrf.mxu1  ;;  %2191 = vmatmul.mubr.bf16.gmra.mxu1 %v7851_v29  ;;  %v6572_v43 = vadd.f32 %v6475_v52, %v1564_v37  ;;  %4647 = vmatprep.mubr.bf16.mxu0 %v7855_v51  ;;  %v1914_v52 = vadd.f32 %v6470_v30, %v1560_v3 }
 0x1c6   : > { %2198 = vmatprep.mubr.bf16.mxu1 %v7856_v40  ;;  %v1566_v31 = vpop.f32.mrf.mxu0 }
 0x1c7   : > { %v6578_v49 = vpop.f32.mrf.mxu1  ;;  %v1920_v50 = vadd.f32 %v6486_v18, %v1566_v31  ;;  %v7861_v31 = vld [vmem:[#allocation45_spill] sm:$0xff]  ;;  %v7862_v18 = vld [vmem:[#allocation43_spill] sm:$0xff] }
 0x1c8   : > { %v1568_v32 = vpop.f32.mrf.mxu0 }
 0x1c9   : > { %v6580_v21 = vpop.f32.mrf.mxu1  ;;  %v6583_v61 = vadd.f32 %v6488_v53, %v1568_v32  ;;  %v7858_v53 = vld [vmem:[#allocation42_spill] sm:$0xff]  ;;  %v7859_v32 = vld [vmem:[#allocation40_spill] sm:$0xff] }
 0x1ca   : > { %v1570_v29 = vpop.f32.mrf.mxu0  ;;  %v7860_v33 = vpack.c.bf16 %v7858_v53, %v7859_v32  ;;  %v5403_v53 = vld [vmem:[%s5546_s19 + $0x1f8] ss:$12 sps:$4 sm:$0xff]   ;;  %v7864_v32 = vld [vmem:[#allocation47_spill] sm:$0xff] }
 0x1cb   : > { %v6585_v14 = vpop.f32.mrf.mxu1  ;;  %v1924_v37 = vadd.f32 %v6493_v16, %v1570_v29  ;;  %v7863_v16 = vpack.c.bf16 %v7861_v31, %v7862_v18  ;;  %v1900_v31 = vadd.f32 %v6438_v9, %v6534_v63 }
 0x1cc   : > { %v1574_v51 = vpop.f32.mrf.mxu0  ;;  %4648 = vmatmul.mubr.bf16.vlgmr.msra.gmra.mxu0 %v7860_v33  ;;  %v2638_v33 = vpack.c.bf16 %v1914_v52, %v1910_v10 }
 0x1cd   : > { %v6592_v40 = vpop.f32.mrf.mxu1  ;;  %2199 = vmatmul.mubr.bf16.gmra.mxu1 %v7857_v20  ;;  %v2639_v30 = vpack.c.bf16 %v1924_v37, %v1920_v50  ;;  %v6600_v3 = vadd.f32 %v6499_v6, %v1574_v51  ;;  %4664 = vmatpush3.bf16.xpose.msra.mxu0 %v6406_v35  ;;  %v1904_v51 = vadd.f32 %v6446_v54, %v1550_v5  ;;  %v7868_v5 = vld [vmem:[#allocation48_spill] sm:$0xff] }
 0x1ce   : > { %4651 = vmatprep.mubr.bf16.mxu0 %v7863_v16  ;;  %4665 = vmatprep.subr.bf16.mxu0 %v6381_v44  ;;  %v1576_v29 = vpop.f32.mrf.mxu0 }
 0x1cf   : > { %v6607_v20 = vpop.f32.mrf.mxu1  ;;  %2206 = vmatprep.mubr.bf16.mxu1 %v5402_v22  ;;  %v1930_v48 = vadd.f32 %v6510_v11, %v1576_v29  ;;  %4695 = vmatprep.subr.bf16.mxu1 %v2639_v30  ;;  %v2637_v9 = vpack.c.bf16 %v1904_v51, %v1900_v31 }
 0x1d0   : > { %v1578_v6 = vpop.f32.mrf.mxu0  ;;  %4696 = vmatpush3.bf16.xpose.msra.mxu1 %v2639_v30 }
 0x1d1   : > { %v6611_v2 = vpop.f32.mrf.mxu1  ;;  %v6614_v35 = vadd.f32 %v6512_v26, %v1578_v6  ;;  %4697 = vmatprep.subr.bf16.mxu1 %v2638_v33  ;;  %v7865_v26 = vld [vmem:[#allocation46_spill] sm:$0xff] }
 0x1d2   : > { %v1580_v50 = vpop.f32.mrf.mxu0  ;;  %v7866_v30 = vpack.c.bf16 %v7864_v32, %v7865_v26 }
 0x1d3   : > { %v6616_v37 = vpop.f32.mrf.mxu1  ;;  %v2608_v10 = vpack.c.bf16 %v6614_v35, %v6600_v3  ;;  %v1934_v11 = vadd.f32 %v6517_v12, %v1580_v50  ;;  %v7867_v12 = vld [vmem:[#allocation49_spill] sm:$0xff]  ;;  %v5404_v50 = vld [vmem:[%s5546_s19 + $0x214] ss:$12 sps:$4 sm:$0xff]   ;;  %v7897_v3 = vld [vmem:[#allocation7_spill] sm:$0xff] }
 0x1d4   : > { %v1584_v52 = vpop.f32.mrf.mxu0  ;;  %4652 = vmatmul.mubr.bf16.gmra.mxu0 %v7866_v30  ;;  %v7869_v16 = vpack.c.bf16 %v7867_v12, %v7868_v5  ;;  %v7870_v30 = vld [vmem:[#allocation51_spill] sm:$0xff]  ;;  %v7873_v5 = vld [vmem:[#allocation53_spill] sm:$0xff] }
 0x1d5   : > { %v6622_v22 = vpop.f32.mrf.mxu1  ;;  %2207 = vmatmul.mubr.bf16.gmra.mxu1 %v5403_v53  ;;  %v6630_v18 = vpack.c.bf16 %v1934_v11, %v1930_v48  ;;  %v6633_v54 = vadd.f32 %v6523_v24, %v1584_v52  ;;  %4666 = vmatpush3.bf16.xpose.msra.mxu0 %v6381_v44 }
 0x1d6   : > { %4655 = vmatprep.mubr.bf16.mxu0 %v7869_v16  ;;  %4667 = vmatprep.subr.bf16.mxu0 %v6355_v47  ;;  %v1586_v29 = vpop.f32.mrf.mxu0  ;;  %v7874_v16 = vld [vmem:[#allocation52_spill] sm:$0xff] }
 0x1d7   : > { %v6640_v6 = vpop.f32.mrf.mxu1  ;;  %2214 = vmatprep.mubr.bf16.mxu1 %v5404_v50  ;;  %v1940_v63 = vadd.f32 %v6536_v56, %v1586_v29  ;;  %v5405_v56 = vld [vmem:[%s5546_s19 + $0x210] ss:$12 sps:$4 sm:$0xff]   ;;  %v7875_v29 = vpack.c.bf16 %v7873_v5, %v7874_v16  ;;  %v7877_v16 = vpack.c.bf16 %v6214_v45, %v6204_v36 }
 0x1d8   : > { %v1588_v48 = vpop.f32.mrf.mxu0  ;;  %4698 = vmatpush3.bf16.xpose.msra.mxu1 %v2638_v33  ;;  %v7871_v33 = vld [vmem:[#allocation50_spill] sm:$0xff] }
 0x1d9   : > { %v6644_v24 = vpop.f32.mrf.mxu1  ;;  %v6647_v44 = vadd.f32 %v6538_v38, %v1588_v48  ;;  %4699 = vmatprep.subr.bf16.mxu1 %v2637_v9  ;;  %v7872_v31 = vpack.c.bf16 %v7870_v30, %v7871_v33  ;;  %v5406_v48 = vld [vmem:[%s5546_s19 + $0x22c] ss:$12 sps:$4 sm:$0xff]  }
 0x1da   : > { %v1590_v11 = vpop.f32.mrf.mxu0 }
 0x1db   : > { %v6649_v52 = vpop.f32.mrf.mxu1  ;;  %v2609_v53 = vpack.c.bf16 %v6647_v44, %v6633_v54  ;;  %v1944_v32 = vadd.f32 %v6543_v4, %v1590_v11 }
 0x1dc   : > { %v1594_v51 = vpop.f32.mrf.mxu0  ;;  %4656 = vmatmul.mubr.bf16.gmra.mxu0 %v7872_v31  ;;  %v5407_v31 = vld [vmem:[%s5546_s19 + $0x228] ss:$12 sps:$4 sm:$0xff]  }
 0x1dd   : > { %v6654_v26 = vpop.f32.mrf.mxu1  ;;  %2215 = vmatmul.mubr.bf16.gmra.mxu1 %v5405_v56  ;;  %v6660_v38 = vpack.c.bf16 %v1944_v32, %v1940_v63  ;;  %v6663_v12 = vadd.f32 %v6547_v46, %v1594_v51  ;;  %4668 = vmatpush3.bf16.xpose.msra.mxu0 %v6355_v47 }
 0x1de   : > { %4659 = vmatprep.mubr.bf16.mxu0 %v7875_v29  ;;  %4669 = vmatprep.subr.bf16.mxu0 %v6329_v23  ;;  %v1596_v4 = vpop.f32.mrf.mxu0 }
 0x1df   : > { %v6670_v50 = vpop.f32.mrf.mxu1  ;;  %2222 = vmatprep.mubr.bf16.mxu1 %v5406_v48  ;;  %v1950_v63 = vadd.f32 %v6556_v41, %v1596_v4  ;;  %v5408_v4 = vld [vmem:[%s5546_s19 + $0x244] ss:$12 sps:$4 sm:$0xff]  }
 0x1e0   : > { %v1598_v11 = vpop.f32.mrf.mxu0  ;;  %4700 = vmatpush3.bf16.xpose.msra.mxu1 %v2637_v9 }
 0x1e1   : > { %v6674_v32 = vpop.f32.mrf.mxu1  ;;  %v6677_v47 = vadd.f32 %v6558_v15, %v1598_v11  ;;  %4701 = vmatprep.subr.bf16.mxu1 %v6527_v62  ;;  %v7876_v15 = vpack.c.bf16 %v6189_v8, %v6180_v57 }
 0x1e2   : > { %v1600_v46 = vpop.f32.mrf.mxu0 }
 0x1e3   : > { %v6680_v51 = vpop.f32.mrf.mxu1  ;;  %v2610_v56 = vpack.c.bf16 %v6677_v47, %v6663_v12  ;;  %v1954_v30 = vadd.f32 %v6563_v1, %v1600_v46 }
 0x1e4   : > { %v1604_v33 = vpop.f32.mrf.mxu0  ;;  %4660 = vmatmul.mubr.bf16.gmra.mxu0 %v7876_v15 }
 0x1e5   : > { %v6685_v41 = vpop.f32.mrf.mxu1  ;;  %2223 = vmatmul.mubr.bf16.gmra.mxu1 %v5407_v31  ;;  %v6691_v9 = vpack.c.bf16 %v1954_v30, %v1950_v63  ;;  %v6694_v5 = vadd.f32 %v6567_v60, %v1604_v33  ;;  %4670 = vmatpush3.bf16.xpose.msra.mxu0 %v6329_v23  ;;  %v5409_v30 = vld [vmem:[%s5546_s19 + $0x240] ss:$12 sps:$4 sm:$0xff]   ;;  %v5410_v33 = vld [vmem:[%s5546_s19 + $0x25c] ss:$12 sps:$4 sm:$0xff]  }
 0x1e6   : > { %4679 = vmatprep.mubr.bf16.mxu0 %v7877_v16  ;;  %4671 = vmatprep.subr.bf16.mxu0 %v6303_v55  ;;  %v1606_v1 = vpop.f32.mrf.mxu0 }
 0x1e7   : > { %v6701_v29 = vpop.f32.mrf.mxu1  ;;  %2230 = vmatprep.mubr.bf16.mxu1 %v5408_v4  ;;  %v1960_v60 = vadd.f32 %v6578_v49, %v1606_v1 }
 0x1e8   : > { %v1608_v57 = vpop.f32.mrf.mxu0  ;;  %4702 = vmatpush3.bf16.xpose.msra.mxu1 %v6527_v62 }
 0x1e9   : > { %v6704_v8 = vpop.f32.mrf.mxu1  ;;  %v6708_v23 = vadd.f32 %v6580_v21, %v1608_v57  ;;  %4703 = vmatprep.subr.bf16.mxu1 %v6503_v28 }
 0x1ea   : > { %v1610_v36 = vpop.f32.mrf.mxu0 }
 0x1eb   : > { %v6711_v45 = vpop.f32.mrf.mxu1  ;;  %v2611_v48 = vpack.c.bf16 %v6708_v23, %v6694_v5  ;;  %v1964_v63 = vadd.f32 %v6585_v14, %v1610_v36 }
 0x1ec   : > { %v1614_v11 = vpop.f32.mrf.mxu0 }
 0x1ed   : > { %v6717_v46 = vpop.f32.mrf.mxu1  ;;  %2231 = vmatmul.mubr.bf16.gmra.mxu1 %v5409_v30  ;;  %v6720_v62 = vpack.c.bf16 %v1964_v63, %v1960_v60  ;;  %v6723_v21 = vadd.f32 %v6592_v40, %v1614_v11  ;;  %4672 = vmatpush3.bf16.xpose.msra.mxu0 %v6303_v55  ;;  %v5411_v63 = vld [vmem:[%s5546_s19 + $0x258] ss:$12 sps:$4 sm:$0xff]   ;;  %v5412_v11 = vld [vmem:[%s5546_s19 + $0x274] ss:$12 sps:$4 sm:$0xff]  }
 0x1ee   : > { %2238 = vmatprep.mubr.bf16.mxu1 %v5410_v33  ;;  %4673 = vmatprep.subr.bf16.mxu0 %v6277_v34  ;;  %v1616_v49 = vpop.f32.mrf.mxu0 }
 0x1ef   : > { %v2042_v31 = vpop.f32.mrf.mxu1  ;;  %v1970_v1 = vadd.f32 %v6607_v20, %v1616_v49 }
 0x1f0   : > { %v1618_v14 = vpop.f32.mrf.mxu0  ;;  %4704 = vmatpush3.bf16.xpose.msra.mxu1 %v6503_v28  ;;  %v5417_v31 = vld [vmem:[%s5546_s19 + $0x2a0] ss:$12 sps:$4 sm:$0xff]  }
 0x1f1   : > { %v6728_v15 = vpop.f32.mrf.mxu1  ;;  %v6732_v16 = vadd.f32 %v6611_v2, %v1618_v14  ;;  %4705 = vmatprep.subr.bf16.mxu1 %v6479_v39 }
 0x1f2   : > { %v1620_v40 = vpop.f32.mrf.mxu0 }
 0x1f3   : > { %v2045_v55 = vpop.f32.mrf.mxu1  ;;  %v1974_v57 = vadd.f32 %v6616_v37, %v1620_v40 }
 0x1f4   : > { %v1624_v36 = vpop.f32.mrf.mxu0  ;;  %v5413_v55 = vld [vmem:[%s5546_s19 + $0x270] ss:$12 sps:$4 sm:$0xff]  }
 0x1f5   : > { %v6739_v60 = vpop.f32.mrf.mxu1  ;;  %2239 = vmatmul.mubr.bf16.gmra.mxu1 %v5411_v63  ;;  %v6742_v28 = vpack.c.bf16 %v1974_v57, %v1970_v1  ;;  %v6745_v2 = vadd.f32 %v6622_v22, %v1624_v36  ;;  %4674 = vmatpush3.bf16.xpose.msra.mxu0 %v6277_v34 }
 0x1f6   : > { %2246 = vmatprep.mubr.bf16.mxu1 %v5412_v11  ;;  %4675 = vmatprep.subr.bf16.mxu0 %v6252_v17  ;;  %v6750_v20 = vpop.f32.mrf.mxu0 }
 0x1f7   : > { %v2050_v37 = vpop.f32.mrf.mxu1 }
 0x1f8   : > { %v1628_v30 = vpop.f32.mrf.mxu0  ;;  %4706 = vmatpush3.bf16.xpose.msra.mxu1 %v6479_v39  ;;  %v5414_v39 = vld [vmem:[%s5546_s19 + $0x28c] ss:$12 sps:$4 sm:$0xff]  }
 0x1f9   : > { %v6752_v33 = vpop.f32.mrf.mxu1  ;;  %v6756_v49 = vadd.f32 %v6644_v24, %v1628_v30  ;;  %4707 = vmatprep.subr.bf16.mxu1 %v6455_v25 }
 0x1fa   : > { %v6759_v34 = vpop.f32.mrf.mxu0 }
 0x1fb   : > { %v2053_v22 = vpop.f32.mrf.mxu1  ;;  %v7916_v5 = vpack.c.bf16 %v6756_v49, %v6745_v2 }
 0x1fc   : > { %v1634_v14 = vpop.f32.mrf.mxu0 }
 0x1fd   : > { %v6763_v40 = vpop.f32.mrf.mxu1  ;;  %2247 = vmatmul.mubr.bf16.gmra.mxu1 %v5413_v55  ;;  %v6767_v1 = vadd.f32 %v6654_v26, %v1634_v14  ;;  %4676 = vmatpush3.bf16.xpose.msra.mxu0 %v6252_v17  ;;  %v5415_v14 = vld [vmem:[%s5546_s19 + $0x288] ss:$12 sps:$4 sm:$0xff]  }
 0x1fe   : > { %2254 = vmatprep.mubr.bf16.mxu1 %v5414_v39  ;;  %4677 = vmatprep.subr.bf16.mxu0 %v6228_v59  ;;  %v1636_v24 = vpop.f32.mrf.mxu0 }
 0x1ff   : > { %v2058_v57 = vpop.f32.mrf.mxu1 }
 0x200   : > { %v1638_v36 = vpop.f32.mrf.mxu0  ;;  %4708 = vmatpush3.bf16.xpose.msra.mxu1 %v6455_v25  ;;  %v5416_v25 = vld [vmem:[%s5546_s19 + $0x2a4] ss:$12 sps:$4 sm:$0xff]  }
 0x201   : > { %v6772_v63 = vpop.f32.mrf.mxu1  ;;  %v6776_v11 = vadd.f32 %v6674_v32, %v1638_v36  ;;  %4709 = vmatprep.subr.bf16.mxu1 %v6431_v7 }
 0x202   : > { %v1640_v26 = vpop.f32.mrf.mxu0 }
 0x203   : > { %v2061_v17 = vpop.f32.mrf.mxu1 }
 0x204   : > { %v1644_v30 = vpop.f32.mrf.mxu0 }
 0x205   : > { %v6781_v22 = vpop.f32.mrf.mxu1  ;;  %2255 = vmatmul.mubr.bf16.gmra.mxu1 %v5415_v14  ;;  %v6785_v55 = vadd.f32 %v6685_v41, %v1644_v30  ;;  %4678 = vmatpush3.bf16.xpose.msra.mxu0 %v6228_v59  ;;  %v1994_v41 = vadd.f32 %v6680_v51, %v1640_v26  ;;  %v7879_v51 = vpack.c.bf16 %v6265_v13, %v6255_v58  ;;  %v7896_v30 = vld [vmem:[#allocation6_spill] sm:$0xff] }
 0x206   : > { %2262 = vmatprep.mubr.bf16.mxu1 %v5416_v25  ;;  %v1646_v32 = vpop.f32.mrf.mxu0  ;;  %v1984_v13 = vadd.f32 %v6649_v52, %v6759_v34  ;;  %v7882_v34 = vld [vmem:[#allocation54_spill] sm:$0xff]  ;;  %v7898_v35 = vpack.c.bf16 %v7896_v30, %v7897_v3 }
 0x207   : > { %v2066_v39 = vpop.f32.mrf.mxu1  ;;  %v2000_v59 = vadd.f32 %v6701_v29, %v1646_v32  ;;  %v5418_v29 = vld [vmem:[%s5546_s19 + $0x2bc] ss:$12 sps:$4 sm:$0xff]  }
 0x208   : > { %v1648_v57 = vpop.f32.mrf.mxu0  ;;  %4710 = vmatpush3.bf16.xpose.msra.mxu1 %v6431_v7  ;;  %v7878_v39 = vpack.c.bf16 %v6241_v42, %v6231_v0 }
 0x209   : > { %v6789_v36 = vpop.f32.mrf.mxu1  ;;  %v6793_v17 = vadd.f32 %v6704_v8, %v1648_v57 }
 0x20a   : > { %v1650_v14 = vpop.f32.mrf.mxu0 }
 0x20b   : > { %v2069_v37 = vpop.f32.mrf.mxu1  ;;  %v2004_v25 = vadd.f32 %v6711_v45, %v1650_v14  ;;  %v7918_v2 = vpack.c.bf16 %v6793_v17, %v6785_v55 }
 0x20c   : > { %4680 = vmatmul.mubr.bf16.vlgmr.msra.gmra.mxu0 %v7878_v39  ;;  %v4569_v8 = vpop.f32.mrf.mxu0  ;;  %v1990_v37 = vadd.f32 %v6670_v50, %v1636_v24 }
 0x20d   : > { %v6803_v7 = vpop.f32.mrf.mxu1  ;;  %2263 = vmatmul.mubr.bf16.gmra.mxu1 %v5417_v31  ;;  %v2647_v57 = vpack.c.bf16 %v2004_v25, %v2000_v59  ;;  %4683 = vmatprep.mubr.bf16.mxu0 %v7879_v51  ;;  %v2338_v31 = vadd.f32 %v4569_v8, %v6739_v60  ;;  %v7880_v25 = vpack.c.bf16 %v6291_v19, %v6280_v27 }
 0x20e   : > { %2270 = vmatprep.mubr.bf16.mxu1 %v5418_v29  ;;  %v2329_v45 = vpop.f32.mrf.mxu0  ;;  %v2646_v32 = vpack.c.bf16 %v1994_v41, %v1990_v37  ;;  %v1980_v8 = vadd.f32 %v6640_v6, %v6750_v20 }
 0x20f   : > { %v2074_v26 = vpop.f32.mrf.mxu1  ;;  %4727 = vmatprep.subr.bf16.mxu0 %v2647_v57  ;;  %v2330_v14 = vadd.f32 %v2329_v45, %v6717_v46  ;;  %v7881_v46 = vld [vmem:[#allocation55_spill] sm:$0xff]  ;;  %v7885_v45 = vld [vmem:[#allocation56_spill] sm:$0xff] }
 0x210   : > { %v4570_v42 = vpop.f32.mrf.mxu0  ;;  %4728 = vmatpush3.bf16.xpose.msra.mxu0 %v2647_v57  ;;  %v7883_v37 = vpack.c.bf16 %v7881_v46, %v7882_v34  ;;  %v2645_v57 = vpack.c.bf16 %v1984_v13, %v1980_v8  ;;  %v7884_v26 = vld [vmem:[#allocation57_spill] sm:$0xff] }
 0x211   : > { %v6811_v0 = vpop.f32.mrf.mxu1  ;;  %v2341_v50 = vadd.f32 %v4570_v42, %v6752_v33  ;;  %4729 = vmatprep.subr.bf16.mxu0 %v2646_v32  ;;  %v5419_v33 = vld [vmem:[%s5546_s19 + $0x2b8] ss:$12 sps:$4 sm:$0xff]   ;;  %v7886_v42 = vpack.c.bf16 %v7884_v26, %v7885_v45  ;;  %v5423_v26 = vld [vmem:[%s5546_s19 + $0x2e8] ss:$12 sps:$4 sm:$0xff]  }
 0x212   : > { %v2332_v58 = vpop.f32.mrf.mxu0 }
 0x213   : > { %v2077_v24 = vpop.f32.mrf.mxu1  ;;  %v6818_v41 = vpack.c.bf16 %v2341_v50, %v2338_v31  ;;  %v2333_v59 = vadd.f32 %v2332_v58, %v6728_v15  ;;  %v5420_v15 = vld [vmem:[%s5546_s19 + $0x2d4] ss:$12 sps:$4 sm:$0xff]   ;;  %v5421_v50 = vld [vmem:[%s5546_s19 + $0x2d0] ss:$12 sps:$4 sm:$0xff]  }
 0x214   : > { %4684 = vmatmul.mubr.bf16.gmra.mxu0 %v7880_v25  ;;  %v6827_v39 = vpop.f32.mrf.mxu0  ;;  %v7887_v58 = vld [vmem:[#allocation2_spill] sm:$0xff] }
 0x215   : > { %v6824_v60 = vpop.f32.mrf.mxu1  ;;  %2271 = vmatmul.mubr.bf16.gmra.mxu1 %v5419_v33  ;;  %v6831_v52 = vpack.c.bf16 %v2333_v59, %v2330_v14  ;;  %4687 = vmatprep.mubr.bf16.mxu0 %v7883_v37  ;;  %v7888_v14 = vld [vmem:[#allocation58_spill] sm:$0xff]  ;;  %v5422_v59 = vld [vmem:[%s5546_s19 + $0x2ec] ss:$12 sps:$4 sm:$0xff]  }
 0x216   : > { %2278 = vmatprep.mubr.bf16.mxu1 %v5420_v15  ;;  %v6837_v19 = vpop.f32.mrf.mxu0  ;;  %v7889_v13 = vpack.c.bf16 %v7887_v58, %v7888_v14  ;;  %v7890_v37 = vld [vmem:[#allocation3_spill] sm:$0xff] }
 0x217   : > { %v2082_v27 = vpop.f32.mrf.mxu1  ;;  %v7891_v15 = vld [vmem:[#allocation39_spill] sm:$0xff] }
 0x218   : > { %v6839_v29 = vpop.f32.mrf.mxu0  ;;  %4730 = vmatpush3.bf16.xpose.msra.mxu0 %v2646_v32  ;;  %v7892_v27 = vpack.c.bf16 %v7890_v37, %v7891_v15 }
 0x219   : > { %v2083_v51 = vpop.f32.mrf.mxu1  ;;  %4731 = vmatprep.subr.bf16.mxu0 %v2645_v57 }
 0x21a   : > { %v6841_v20 = vpop.f32.mrf.mxu0 }
 0x21b   : > { %v2085_v6 = vpop.f32.mrf.mxu1 }
 0x21c   : > { %4688 = vmatmul.mubr.bf16.gmra.mxu0 %v7886_v42  ;;  %v4577_v24 = vpop.f32.mrf.mxu0  ;;  %v7893_v42 = vld [vmem:[#allocation5_spill] sm:$0xff] }
 0x21d   : > { %v2088_v31 = vpop.f32.mrf.mxu1  ;;  %2279 = vmatmul.mubr.bf16.gmra.mxu1 %v5421_v50  ;;  %4691 = vmatprep.mubr.bf16.mxu0 %v7889_v13  ;;  %v7894_v50 = vld [vmem:[#allocation4_spill] sm:$0xff] }
 0x21e   : > { %2286 = vmatprep.mubr.bf16.mxu1 %v5422_v59  ;;  %v2361_v25 = vpop.f32.mrf.mxu0  ;;  %v7895_v58 = vpack.c.bf16 %v7893_v42, %v7894_v50 }
 0x21f   : > { %v2090_v32 = vpop.f32.mrf.mxu1 }
 0x220   : > { %v4578_v8 = vpop.f32.mrf.mxu0  ;;  %4732 = vmatpush3.bf16.xpose.msra.mxu0 %v2645_v57 }
 0x221   : > { %v2091_v33 = vpop.f32.mrf.mxu1  ;;  %4733 = vmatprep.subr.bf16.mxu0 %v6742_v28 }
 0x222   : > { %v2364_v34 = vpop.f32.mrf.mxu0 }
 0x223   : > { %v2093_v46 = vpop.f32.mrf.mxu1 }
 0x224   : > { %4692 = vmatmul.mubr.bf16.gmra.mxu0 %v7892_v27  ;;  %v4581_v45 = vpop.f32.mrf.mxu0 }
 0x225   : > { %v2096_v6 = vpop.f32.mrf.mxu1  ;;  %2287 = vmatmul.mubr.bf16.gmra.mxu1 %v5423_v26  ;;  %4743 = vmatprep.mubr.bf16.mxu0 %v2608_v10  ;;  %v2373_v10 = vadd.f32 %v4578_v8, %v2083_v51  ;;  %v2365_v51 = vadd.f32 %v2364_v34, %v6811_v0 }
 0x226   : > { %4711 = vmatprep.mubr.bf16.mxu1 %v7895_v58  ;;  %v2377_v14 = vpop.f32.mrf.mxu0  ;;  %v2386_v13 = vadd.f32 %v4581_v45, %v2096_v6  ;;  %v7899_v45 = vld [vmem:[#allocation8_spill] sm:$0xff] }
 0x227   : > { %v2098_v57 = vpop.f32.mrf.mxu1  ;;  %v2378_v27 = vadd.f32 %v2377_v14, %v2088_v31  ;;  %v2370_v31 = vadd.f32 %v4577_v24, %v6824_v60  ;;  %v7902_v24 = vld [vmem:[#allocation9_spill] sm:$0xff] }
 0x228   : > { %v4582_v32 = vpop.f32.mrf.mxu0  ;;  %4734 = vmatpush3.bf16.xpose.msra.mxu0 %v6742_v28  ;;  %v7900_v57 = vld [vmem:[#allocation10_spill] sm:$0xff] }
 0x229   : > { %v2099_v59 = vpop.f32.mrf.mxu1  ;;  %4735 = vmatprep.subr.bf16.mxu0 %v6720_v62  ;;  %v7901_v4 = vpack.c.bf16 %v7899_v45, %v7900_v57  ;;  %v2653_v30 = vpack.c.bf16 %v2373_v10, %v2370_v31  ;;  %v7909_v31 = vld [vmem:[#allocation19_spill] sm:$0xff] }
 0x22a   : > { %v2389_v46 = vadd.f32 %v4582_v32, %v2099_v59  ;;  %v2380_v15 = vpop.f32.mrf.mxu0 }
 0x22b   : > { %v2101_v37 = vpop.f32.mrf.mxu1  ;;  %v2381_v42 = vadd.f32 %v2380_v15, %v2091_v33  ;;  %v7903_v15 = vld [vmem:[#allocation13_spill] sm:$0xff] }
 0x22c   : > { %v2655_v26 = vpack.c.bf16 %v2389_v46, %v2386_v13  ;;  %v4585_v58 = vpop.f32.mrf.mxu0 }
 0x22d   : > { %v2104_v50 = vpop.f32.mrf.mxu1  ;;  %4712 = vmatmul.mubr.bf16.vlgmr.msra.gmra.mxu1 %v7898_v35  ;;  %v2654_v6 = vpack.c.bf16 %v2381_v42, %v2378_v27  ;;  %v7904_v27 = vpack.c.bf16 %v7902_v24, %v7903_v15  ;;  %v7905_v42 = vld [vmem:[#allocation11_spill] sm:$0xff]  ;;  %v2354_v35 = vadd.f32 %v6827_v39, %v6781_v22  ;;  %v2346_v22 = vadd.f32 %v6837_v19, %v6763_v40 }
 0x22e   : > { %4715 = vmatprep.mubr.bf16.mxu1 %v7901_v4  ;;  %4759 = vmatprep.subr.bf16.mxu1 %v2655_v26  ;;  %v2393_v59 = vpop.f32.mrf.mxu0  ;;  %v2362_v4 = vadd.f32 %v2361_v25, %v6803_v7 }
 0x22f   : > { %v2106_v28 = vpop.f32.mrf.mxu1  ;;  %4760 = vmatpush3.bf16.msra.mxu1 %v2655_v26  ;;  %v2394_v14 = vadd.f32 %v2393_v59, %v2104_v50  ;;  %v7906_v50 = vld [vmem:[#allocation16_spill] sm:$0xff] }
 0x230   : > { %4761 = vmatprep.subr.bf16.mxu1 %v2654_v6  ;;  %v4586_v13 = vpop.f32.mrf.mxu0  ;;  %4736 = vmatpush3.bf16.xpose.msra.mxu0 %v6720_v62  ;;  %v2357_v62 = vadd.f32 %v6839_v29, %v6789_v36  ;;  %v2652_v0 = vpack.c.bf16 %v2365_v51, %v2362_v4  ;;  %v7907_v3 = vpack.c.bf16 %v7905_v42, %v7906_v50  ;;  %v7908_v59 = vld [vmem:[#allocation12_spill] sm:$0xff] }
 0x231   : > { %v2107_v33 = vpop.f32.mrf.mxu1  ;;  %4737 = vmatprep.subr.bf16.mxu0 %v6691_v9  ;;  %v2349_v29 = vadd.f32 %v6841_v20, %v6772_v63  ;;  %v7910_v63 = vpack.c.bf16 %v7908_v59, %v7909_v31 }
 0x232   : > { %v2396_v32 = vpop.f32.mrf.mxu0  ;;  %v2651_v36 = vpack.c.bf16 %v2357_v62, %v2354_v35 }
 0x233   : > { %v2109_v8 = vpop.f32.mrf.mxu1  ;;  %4762 = vmatpush3.bf16.msra.mxu1 %v2654_v6  ;;  %v2397_v46 = vadd.f32 %v2396_v32, %v2107_v33  ;;  %v2650_v20 = vpack.c.bf16 %v2349_v29, %v2346_v22  ;;  %v7912_v33 = vld [vmem:[#allocation22_spill] sm:$0xff] }
 0x234   : > { %4763 = vmatprep.subr.bf16.mxu1 %v2653_v30  ;;  %v6875_v60 = vpop.f32.mrf.mxu0 }
 0x235   : > { %v2112_v37 = vpop.f32.mrf.mxu1  ;;  %4716 = vmatmul.mubr.bf16.gmra.mxu1 %v7904_v27  ;;  %v6882_v34 = vpack.c.bf16 %v2397_v46, %v2394_v14  ;;  %v7911_v14 = vld [vmem:[#allocation14_spill] sm:$0xff] }
 0x236   : > { %v2402_v26 = vadd.f32 %v4585_v58, %v2112_v37  ;;  %4719 = vmatprep.mubr.bf16.mxu1 %v7907_v3  ;;  %v6887_v25 = vpop.f32.mrf.mxu0  ;;  %v7914_v37 = vpack.c.bf16 %v6583_v61, %v6572_v43 }
 0x237   : > { %v2114_v7 = vpop.f32.mrf.mxu1  ;;  %4764 = vmatpush3.bf16.msra.mxu1 %v2653_v30 }
 0x238   : > { %4765 = vmatprep.subr.bf16.mxu1 %v2652_v0  ;;  %v6891_v6 = vpop.f32.mrf.mxu0  ;;  %4738 = vmatpush3.bf16.xpose.msra.mxu0 %v6691_v9 }
 0x239   : > { %v2115_v10 = vpop.f32.mrf.mxu1  ;;  %4739 = vmatprep.subr.bf16.mxu0 %v6660_v38 }
 0x23a   : > { %v2405_v58 = vadd.f32 %v4586_v13, %v2115_v10  ;;  %v6897_v57 = vpop.f32.mrf.mxu0  ;;  %v7913_v13 = vpack.c.bf16 %v7911_v14, %v7912_v33 }
 0x23b   : > { %v2117_v45 = vpop.f32.mrf.mxu1  ;;  %4766 = vmatpush3.bf16.msra.mxu1 %v2652_v0 }
 0x23c   : > { %v6901_v39 = vpack.c.bf16 %v2405_v58, %v2402_v26  ;;  %4767 = vmatprep.subr.bf16.mxu1 %v2651_v36  ;;  %v6905_v9 = vpop.f32.mrf.mxu0 }
 0x23d   : > { %v6903_v28 = vpop.f32.mrf.mxu1  ;;  %4720 = vmatmul.mubr.bf16.gmra.mxu1 %v7910_v63 }
 0x23e   : > { %4723 = vmatprep.mubr.bf16.mxu1 %v7913_v13  ;;  %v6913_v51 = vpop.f32.mrf.mxu0 }
 0x23f   : > { %v2122_v30 = vpop.f32.mrf.mxu1  ;;  %4768 = vmatpush3.bf16.msra.mxu1 %v2651_v36 }
 0x240   : > { %4769 = vmatprep.subr.bf16.mxu1 %v2650_v20  ;;  %v6917_v19 = vpop.f32.mrf.mxu0  ;;  %4740 = vmatpush3.bf16.xpose.msra.mxu0 %v6660_v38 }
 0x241   : > { %v6915_v40 = vpop.f32.mrf.mxu1  ;;  %4741 = vmatprep.subr.bf16.mxu0 %v6630_v18 }
 0x242   : > { %v6921_v32 = vpop.f32.mrf.mxu0 }
 0x243   : > { %v2125_v8 = vpop.f32.mrf.mxu1  ;;  %4770 = vmatpush3.bf16.msra.mxu1 %v2650_v20 }
 0x244   : > { %4771 = vmatprep.subr.bf16.mxu1 %v6818_v41  ;;  %v4597_v46 = vpop.f32.mrf.mxu0 }
 0x245   : > { %v6924_v4 = vpop.f32.mrf.mxu1  ;;  %4724 = vmatmul.mubr.bf16.gmra.mxu1 %v7914_v37 }
 0x246   : > { %v2441_v15 = vpop.f32.mrf.mxu0 }
 0x247   : > { %v2130_v24 = vpop.f32.mrf.mxu1  ;;  %4772 = vmatpush3.bf16.msra.mxu1 %v6818_v41 }
 0x248   : > { %4773 = vmatprep.subr.bf16.mxu1 %v6831_v52  ;;  %v4598_v27 = vpop.f32.mrf.mxu0  ;;  %4742 = vmatpush3.bf16.xpose.msra.mxu0 %v6630_v18 }
 0x249   : > { %v6931_v38 = vpop.f32.mrf.mxu1 }
 0x24a   : > { %v2444_v0 = vpop.f32.mrf.mxu0 }
 0x24b   : > { %v2133_v62 = vpop.f32.mrf.mxu1  ;;  %4774 = vmatpush3.bf16.msra.mxu1 %v6831_v52 }
 0x24c   : > { %v6937_v42 = vpop.f32.mrf.mxu0 }
 0x24d   : > { %v6935_v26 = vpop.f32.mrf.mxu1 }
 0x24e   : > { %v2457_v61 = vpop.f32.mrf.mxu0 }
 0x24f   : > { %v2138_v43 = vpop.f32.mrf.mxu1  ;;  %4744 = vmatmul.mubr.bf16.vlgmr.msra.gmra.mxu0 %v2609_v53  ;;  %v7915_v53 = vpack.c.bf16 %v6732_v16, %v6723_v21  ;;  %v7917_v21 = vpack.c.bf16 %v6776_v11, %v6767_v1 }
 0x250   : > { %v6942_v50 = vpop.f32.mrf.mxu0  ;;  %4747 = vmatprep.mubr.bf16.mxu0 %v2610_v56 }
 0x251   : > { %v2139_v41 = vpop.f32.mrf.mxu1 }
 0x252   : > { %v2460_v3 = vpop.f32.mrf.mxu0 }
 0x253   : > { %v2141_v18 = vpop.f32.mrf.mxu1 }
 0x254   : > { %v6947_v7 = vpop.f32.mrf.mxu0 }
 0x255   : > { %v2144_v52 = vpop.f32.mrf.mxu1 }
 0x256   : > { %v6949_v10 = vpop.f32.mrf.mxu0 }
 0x257   : > { %v2146_v35 = vpop.f32.mrf.mxu1  ;;  %4748 = vmatmul.mubr.bf16.gmra.mxu0 %v2611_v48 }
 0x258   : > { %v6954_v44 = vpop.f32.mrf.mxu0  ;;  %4751 = vmatprep.mubr.bf16.mxu0 %v7915_v53 }
 0x259   : > { %v2147_v54 = vpop.f32.mrf.mxu1 }
 0x25a   : > { %v6959_v47 = vpop.f32.mrf.mxu0  ;;  %v2437_v62 = vadd.f32 %v6917_v19, %v2147_v54  ;;  %v2426_v19 = vadd.f32 %v6913_v51, %v6935_v26 }
 0x25b   : > { %v2149_v12 = vpop.f32.mrf.mxu1 }
 0x25c   : > { %v6961_v36 = vpop.f32.mrf.mxu0 }
 0x25d   : > { %v2152_v56 = vpop.f32.mrf.mxu1 }
 0x25e   : > { %v6963_v58 = vpop.f32.mrf.mxu0  ;;  %v2442_v30 = vadd.f32 %v2441_v15, %v2152_v56  ;;  %v2429_v15 = vadd.f32 %v6921_v32, %v2139_v41 }
 0x25f   : > { %v2154_v29 = vpop.f32.mrf.mxu1  ;;  %4752 = vmatmul.mubr.bf16.gmra.mxu0 %v7916_v5  ;;  %v2418_v5 = vadd.f32 %v6875_v60, %v6924_v4 }
 0x260   : > { %v6968_v48 = vpop.f32.mrf.mxu0  ;;  %4755 = vmatprep.mubr.bf16.mxu0 %v7917_v21  ;;  %v2660_v29 = vpack.c.bf16 %v2429_v15, %v2426_v19 }
 0x261   : > { %v2155_v23 = vpop.f32.mrf.mxu1 }
 0x262   : > { %v6973_v45 = vpop.f32.mrf.mxu0  ;;  %v2445_v14 = vadd.f32 %v2444_v0, %v2155_v23  ;;  %v2413_v23 = vadd.f32 %v6897_v57, %v6915_v40 }
 0x263   : > { %v2157_v16 = vpop.f32.mrf.mxu1 }
 0x264   : > { %v6975_v59 = vpop.f32.mrf.mxu0  ;;  %v2662_v43 = vpack.c.bf16 %v2445_v14, %v2442_v30 }
 0x265   : > { %v2160_v22 = vpop.f32.mrf.mxu1 }
 0x266   : > { %v6977_v63 = vpop.f32.mrf.mxu0  ;;  %v2450_v33 = vadd.f32 %v4597_v46, %v2160_v22  ;;  %v2434_v46 = vadd.f32 %v6905_v9, %v2144_v52  ;;  %v2421_v52 = vadd.f32 %v6891_v6, %v6931_v38 }
 0x267   : > { %v2162_v31 = vpop.f32.mrf.mxu1  ;;  %4756 = vmatmul.mubr.bf16.gmra.mxu0 %v7918_v2 }
 0x268   : > { %v6982_v20 = vpop.f32.mrf.mxu0  ;;  %v2661_v35 = vpack.c.bf16 %v2437_v62, %v2434_v46  ;;  %v2659_v21 = vpack.c.bf16 %v2421_v52, %v2418_v5 }
 0x269   : > { %v2163_v49 = vpop.f32.mrf.mxu1 }
 0x26a   : > { %v2453_v1 = vadd.f32 %v4598_v27, %v2163_v49  ;;  %v6984_v13 = vpop.f32.mrf.mxu0 }
 0x26b   : > { %v2165_v11 = vpop.f32.mrf.mxu1 }
 0x26c   : > { %v2663_v8 = vpack.c.bf16 %v2453_v1, %v2450_v33  ;;  %v6986_v24 = vpop.f32.mrf.mxu0 }
 0x26d   : > { %v2168_v37 = vpop.f32.mrf.mxu1 }
 0x26e   : > { %v2458_v18 = vadd.f32 %v2457_v61, %v2168_v37  ;;  %4791 = vmatprep.subr.bf16.mxu0 %v2663_v8  ;;  %v6989_v17 = vpop.f32.mrf.mxu0 }
 0x26f   : > { %v2170_v55 = vpop.f32.mrf.mxu1  ;;  %4792 = vmatpush3.bf16.msra.mxu0 %v2663_v8 }
 0x270   : > { %4793 = vmatprep.subr.bf16.mxu0 %v2662_v43  ;;  %v6992_v0 = vpop.f32.mrf.mxu0  ;;  %v7049_v55 = vld [vmem:[%s7635_s2 + $0x10] sm:$0xff] }
 0x271   : > { %v2171_v27 = vpop.f32.mrf.mxu1 }
 0x272   : > { %v2461_v53 = vadd.f32 %v2460_v3, %v2171_v27  ;;  %v6995_v56 = vpop.f32.mrf.mxu0  ;;  %v7057_v27 = vld [vmem:[%s7635_s2] sm:$0xff] }
 0x273   : > { %v2173_v12 = vpop.f32.mrf.mxu1  ;;  %4794 = vmatpush3.bf16.msra.mxu0 %v2662_v43 }
 0x274   : > { %v6999_v61 = vpack.c.bf16 %v2461_v53, %v2458_v18  ;;  %4795 = vmatprep.subr.bf16.mxu0 %v2661_v35  ;;  %v7001_v9 = vpop.f32.mrf.mxu0 }
 0x275   : > { %v2176_v54 = vpop.f32.mrf.mxu1 }
 0x276   : > { %7919 = vst [vmem:[#allocation25_spill] sm:$0xff] %v6999_v61  ;;  %v2466_v32 = vadd.f32 %v6937_v42, %v2176_v54  ;;  %v7006_v3 = vpop.f32.mrf.mxu0  ;;  %v2410_v42 = vadd.f32 %v6887_v25, %v6903_v28 }
 0x277   : > { %v2178_v41 = vpop.f32.mrf.mxu1  ;;  %4796 = vmatpush3.bf16.msra.mxu0 %v2661_v35 }
 0x278   : > { %4797 = vmatprep.subr.bf16.mxu0 %v2660_v29  ;;  %v7010_v26 = vpop.f32.mrf.mxu0  ;;  %v2658_v31 = vpack.c.bf16 %v2413_v23, %v2410_v42 }
 0x279   : > { %v2179_v51 = vpop.f32.mrf.mxu1 }
 0x27a   : > { %v2469_v6 = vadd.f32 %v6942_v50, %v2179_v51  ;;  %v7015_v16 = vpop.f32.mrf.mxu0 }
 0x27b   : > { %v2181_v38 = vpop.f32.mrf.mxu1  ;;  %4798 = vmatpush3.bf16.msra.mxu0 %v2660_v29 }
 0x27c   : > { %v7019_v22 = vpack.c.bf16 %v2469_v6, %v2466_v32  ;;  %4799 = vmatprep.subr.bf16.mxu0 %v2659_v21  ;;  %v7021_v4 = vpop.f32.mrf.mxu0 }
 0x27d   : > { %v2184_v60 = vpop.f32.mrf.mxu1 }
 0x27e   : > { %7920 = vst [vmem:[#allocation15_spill] sm:$0xff] %v7019_v22  ;;  %v2474_v2 = vadd.f32 %v6949_v10, %v2184_v60  ;;  %v7024_v40 = vpop.f32.mrf.mxu0  ;;  %v7098_v60 = vld [vmem:[%s7635_s2 + $0x38] sm:$0xff] }
 0x27f   : > { %v2186_v57 = vpop.f32.mrf.mxu1  ;;  %4800 = vmatpush3.bf16.msra.mxu0 %v2659_v21  ;;  %v7091_v21 = vld [vmem:[%s7635_s2 + $0x30] sm:$0xff] }
 0x280   : > { %4801 = vmatprep.subr.bf16.mxu0 %v2658_v31  ;;  %v7026_v49 = vpop.f32.mrf.mxu0 }
 0x281   : > { %v2187_v50 = vpop.f32.mrf.mxu1 }
 0x282   : > { %v2477_v14 = vadd.f32 %v6959_v47, %v2187_v50  ;;  %v7029_v28 = vpop.f32.mrf.mxu0 }
 0x283   : > { %v2189_v25 = vpop.f32.mrf.mxu1  ;;  %4802 = vmatpush3.bf16.msra.mxu0 %v2658_v31 }
 0x284   : > { %v7031_v33 = vpack.c.bf16 %v2477_v14, %v2474_v2  ;;  %4803 = vmatprep.subr.bf16.mxu0 %v6901_v39  ;;  %v7034_v10 = vpop.f32.mrf.mxu0  ;;  %v7106_v2 = vld [vmem:[%s7635_s2 + $0x20] sm:$0xff] }
 0x285   : > { %v2192_v1 = vpop.f32.mrf.mxu1 }
 0x286   : > { %7921 = vst [vmem:[#allocation28_spill] sm:$0xff] %v7031_v33  ;;  %v2482_v11 = vadd.f32 %v6947_v7, %v2192_v1  ;;  %v7037_v8 = vpop.f32.mrf.mxu0 }
 0x287   : > { %v2194_v30 = vpop.f32.mrf.mxu1  ;;  %4804 = vmatpush3.bf16.msra.mxu0 %v6901_v39 }
 0x288   : > { %4805 = vmatprep.subr.bf16.mxu0 %v6882_v34  ;;  %v7041_v37 = vpop.f32.mrf.mxu0 }
 0x289   : > { %v2195_v47 = vpop.f32.mrf.mxu1 }
 0x28a   : > { %v2485_v62 = vadd.f32 %v6954_v44, %v2195_v47  ;;  %v7044_v18 = vpop.f32.mrf.mxu0 }
 0x28b   : > { %v2197_v43 = vpop.f32.mrf.mxu1  ;;  %4806 = vmatpush3.bf16.msra.mxu0 %v6882_v34  ;;  %v7066_v34 = vld [vmem:[%s7635_s2 + $0x18] sm:$0xff] }
 0x28c   : > { %v7052_v7 = vpack.c.bf16 %v2485_v62, %v2482_v11  ;;  %v4649_v46 = vpop.f32.mrf.mxu0  ;;  %v7116_v11 = vld [vmem:[%s7635_s2 + $0x28] sm:$0xff]  ;;  %v7127_v62 = vld [vmem:[%s7635_s2 + $0x50] sm:$0xff] }
 0x28d   : > { %v2200_v39 = vpop.f32.mrf.mxu1  ;;  %v7061_v15 = vadd.f32 %v4649_v46, %v7049_v55 }
 0x28e   : > { %7922 = vst [vmem:[#allocation17_spill] sm:$0xff] %v7052_v7  ;;  %v2490_v44 = vadd.f32 %v6963_v58, %v2200_v39  ;;  %v2730_v53 = vpop.f32.mrf.mxu0  ;;  %v7075_v58 = vld [vmem:[%s7635_s2 + $0x8] sm:$0xff] }
 0x28f   : > { %v2202_v35 = vpop.f32.mrf.mxu1  ;;  %v7069_v12 = vadd.f32 %v2730_v53, %v7057_v27  ;;  %3088 = vmax.xlane.f32.xlu1 %v7061_v15  ;;  %v7137_v53 = vld [vmem:[%s7635_s2 + $0x58] sm:$0xff] }
 0x290   : > { %v4650_v54 = vpop.f32.mrf.mxu0 }
 0x291   : > { %v2203_v19 = vpop.f32.mrf.mxu1  ;;  %v7079_v29 = vadd.f32 %v4650_v54, %v7066_v34  ;;  %3084 = vmax.xlane.f32.xlu0 %v7069_v12  ;;  %v7146_v54 = vld [vmem:[%s7635_s2 + $0x40] sm:$0xff] }
 0x292   : > { %v2493_v52 = vadd.f32 %v6973_v45, %v2203_v19  ;;  %v2733_v41 = vpop.f32.mrf.mxu0 }
 0x293   : > { %v2205_v32 = vpop.f32.mrf.mxu1  ;;  %v7085_v51 = vadd.f32 %v2733_v41, %v7075_v58  ;;  %3090 = vmax.xlane.f32.xlu1 %v7079_v29 }
 0x294   : > { %v7082_v5 = vpack.c.bf16 %v2493_v52, %v2490_v44  ;;  %v4653_v45 = vpop.f32.mrf.mxu0 }
 0x295   : > { %v2208_v23 = vpop.f32.mrf.mxu1  ;;  %3086 = vmax.xlane.f32.xlu0 %v7085_v51  ;;  %v7101_v31 = vadd.f32 %v4653_v45, %v7091_v21 }
 0x296   : > { %7923 = vst [vmem:[#allocation31_spill] sm:$0xff] %v7082_v5  ;;  %v2498_v6 = vadd.f32 %v6961_v36, %v2208_v23  ;;  %v2746_v42 = vpop.f32.mrf.mxu0 }
 0x297   : > { %v2210_v38 = vpop.f32.mrf.mxu1  ;;  %v7119_v30 = vadd.f32 %v2746_v42, %v7106_v2 }
 0x298   : > { %v4654_v50 = vpop.f32.mrf.mxu0 }
 0x299   : > { %v2211_v57 = vpop.f32.mrf.mxu1  ;;  %v7110_v14 = vadd.f32 %v4654_v50, %v7098_v60  ;;  %3096 = vmax.xlane.f32.xlu0 %v7101_v31 }
 0x29a   : > { %v2501_v36 = vadd.f32 %v6968_v48, %v2211_v57  ;;  %v2749_v1 = vpop.f32.mrf.mxu0  ;;  %v7167_v57 = vld [vmem:[%s7635_s2 + $0x70] sm:$0xff] }
 0x29b   : > { %v2213_v25 = vpop.f32.mrf.mxu1  ;;  %3098 = vmax.xlane.f32.xlu1 %v7110_v14  ;;  %v7130_v39 = vadd.f32 %v2749_v1, %v7116_v11 }
 0x29c   : > { %v7121_v47 = vpack.c.bf16 %v2501_v36, %v2498_v6  ;;  %v4657_v43 = vpop.f32.mrf.mxu0  ;;  %v7156_v6 = vld [vmem:[%s7635_s2 + $0x48] sm:$0xff] }
 0x29d   : > { %v2216_v48 = vpop.f32.mrf.mxu1  ;;  %3092 = vmax.xlane.f32.xlu0 %v7119_v30  ;;  %v7140_v19 = vadd.f32 %v4657_v43, %v7127_v62 }
 0x29e   : > { %7924 = vst [vmem:[#allocation18_spill] sm:$0xff] %v7121_v47  ;;  %v2506_v46 = vadd.f32 %v6977_v63, %v2216_v48  ;;  %v2762_v35 = vpop.f32.mrf.mxu0  ;;  %v7176_v48 = vld [vmem:[%s7635_s2 + $0x78] sm:$0xff] }
 0x29f   : > { %v2218_v44 = vpop.f32.mrf.mxu1  ;;  %3094 = vmax.xlane.f32.xlu1 %v7130_v39  ;;  %v7159_v38 = vadd.f32 %v2762_v35, %v7146_v54 }
 0x2a0   : > { %v4658_v52 = vpop.f32.mrf.mxu0 }
 0x2a1   : > { %v2219_v63 = vpop.f32.mrf.mxu1  ;;  %v7150_v41 = vadd.f32 %v4658_v52, %v7137_v53  ;;  %3104 = vmax.xlane.f32.xlu0 %v7140_v19 }
 0x2a2   : > { %v2509_v32 = vadd.f32 %v6984_v13, %v2219_v63  ;;  %v2765_v45 = vpop.f32.mrf.mxu0 }
 0x2a3   : > { %v2221_v23 = vpop.f32.mrf.mxu1  ;;  %3106 = vmax.xlane.f32.xlu1 %v7150_v41  ;;  %v7170_v36 = vadd.f32 %v2765_v45, %v7156_v6 }
 0x2a4   : > { %v7161_v42 = vpack.c.bf16 %v2509_v32, %v2506_v46  ;;  %v4661_v50 = vpop.f32.mrf.mxu0  ;;  %v7185_v46 = vld [vmem:[%s7635_s2 + $0x60] sm:$0xff] }
 0x2a5   : > { %v2224_v13 = vpop.f32.mrf.mxu1  ;;  %3100 = vmax.xlane.f32.xlu0 %v7159_v38  ;;  %v7179_v43 = vadd.f32 %v4661_v50, %v7167_v57  ;;  %v7196_v50 = vld [vmem:[%s7635_s2 + $0x68] sm:$0xff] }
 0x2a6   : > { %v2778_v1 = vpop.f32.mrf.mxu0  ;;  %v2514_v63 = vadd.f32 %v6975_v59, %v2224_v13 }
 0x2a7   : > { %v2226_v25 = vpop.f32.mrf.mxu1  ;;  %3102 = vmax.xlane.f32.xlu1 %v7170_v36 }
 0x2a8   : > { %v4662_v35 = vpop.f32.mrf.mxu0  ;;  %v7199_v25 = vadd.f32 %v2778_v1, %v7185_v46 }
 0x2a9   : > { %v2227_v44 = vpop.f32.mrf.mxu1  ;;  %v7190_v32 = vadd.f32 %v4662_v35, %v7176_v48  ;;  %3112 = vmax.xlane.f32.xlu0 %v7179_v43 }
 0x2aa   : > { %v2517_v52 = vadd.f32 %v6982_v20, %v2227_v44  ;;  %v2781_v45 = vpop.f32.mrf.mxu0 }
 0x2ab   : > { %v2229_v23 = vpop.f32.mrf.mxu1  ;;  %3114 = vmax.xlane.f32.xlu1 %v7190_v32  ;;  %v7205_v20 = vadd.f32 %v2781_v45, %v7196_v50 }
 0x2ac   : > { %v7201_v61 = vpack.c.bf16 %v2517_v52, %v2514_v63 }
 0x2ad   : > { %v2232_v59 = vpop.f32.mrf.mxu1  ;;  %7925 = vst [vmem:[#allocation32_spill] sm:$0xff] %v7205_v20  ;;  %3108 = vmax.xlane.f32.xlu0 %v7199_v25 }
 0x2ae   : > { %v2522_v13 = vadd.f32 %v6989_v17, %v2232_v59  ;;  %4823 = vmatprep.subr.bf16.mxu1 %v7201_v61 }
 0x2af   : > { %v2234_v44 = vpop.f32.mrf.mxu1  ;;  %3110 = vmax.xlane.f32.xlu1 %v7205_v20 }
 0x2b1   : > { %v2235_v35 = vpop.f32.mrf.mxu1 }
 0x2b2   : > { %v2525_v1 = vadd.f32 %v6995_v56, %v2235_v35 }
 0x2b3   : > { %v2237_v63 = vpop.f32.mrf.mxu1 }
 0x2b4   : > { %v7212_v52 = vpack.c.bf16 %v2525_v1, %v2522_v13 }
 0x2b5   : > { %v2240_v23 = vpop.f32.mrf.mxu1 }
 0x2b6   : > { %7926 = vst [vmem:[#allocation20_spill] sm:$0xff] %v7212_v52  ;;  %v2530_v45 = vadd.f32 %v6986_v24, %v2240_v23 }
 0x2b7   : > { %v2242_v22 = vpop.f32.mrf.mxu1 }
 0x2b9   : > { %v2243_v33 = vpop.f32.mrf.mxu1 }
 0x2ba   : > { %v2533_v17 = vadd.f32 %v6992_v0, %v2243_v33 }
 0x2bb   : > { %v2245_v59 = vpop.f32.mrf.mxu1 }
 0x2bc   : > { %v7216_v7 = vpack.c.bf16 %v2533_v17, %v2530_v45 }
 0x2bd   : > { %v2248_v5 = vpop.f32.mrf.mxu1 }
 0x2be   : > { %7927 = vst [vmem:[#allocation33_spill] sm:$0xff] %v7216_v7  ;;  %v2538_v20 = vadd.f32 %v7006_v3, %v2248_v5 }
 0x2bf   : > { %v2250_v44 = vpop.f32.mrf.mxu1 }
 0x2c1   : > { %v2251_v47 = vpop.f32.mrf.mxu1 }
 0x2c2   : > { %v2541_v56 = vadd.f32 %v7015_v16, %v2251_v47 }
 0x2c3   : > { %v2253_v35 = vpop.f32.mrf.mxu1 }
 0x2c4   : > { %v7220_v13 = vpack.c.bf16 %v2541_v56, %v2538_v20 }
 0x2c5   : > { %v2256_v1 = vpop.f32.mrf.mxu1 }
 0x2c6   : > { %7928 = vst [vmem:[#allocation21_spill] sm:$0xff] %v7220_v13  ;;  %v2546_v24 = vadd.f32 %v7001_v9, %v2256_v1 }
 0x2c7   : > { %v2258_v22 = vpop.f32.mrf.mxu1 }
 0x2c9   : > { %v2259_v63 = vpop.f32.mrf.mxu1 }
 0x2ca   : > { %v2549_v0 = vadd.f32 %v7010_v26, %v2259_v63 }
 0x2cb   : > { %v2261_v33 = vpop.f32.mrf.mxu1 }
 0x2cc   : > { %v7224_v23 = vpack.c.bf16 %v2549_v0, %v2546_v24  ;;  %v4681_v45 = vpop.f32.mrf.mxu0 }
 0x2cd   : > { %v2264_v17 = vpop.f32.mrf.mxu1  ;;  %v7227_v59 = vadd.f32 %v4681_v45, %v7049_v55 }
 0x2ce   : > { %7929 = vst [vmem:[#allocation34_spill] sm:$0xff] %v7224_v23  ;;  %v2827_v3 = vpop.f32.mrf.mxu0  ;;  %v2554_v20 = vadd.f32 %v7024_v40, %v2264_v17 }
 0x2cf   : > { %v2266_v16 = vpop.f32.mrf.mxu1  ;;  %3120 = vmax.xlane.f32.xlu0 %v7227_v59  ;;  %v7232_v9 = vadd.f32 %v2827_v3, %v7057_v27 }
 0x2d0   : > { %v4682_v5 = vpop.f32.mrf.mxu0 }
 0x2d1   : > { %v2267_v47 = vpop.f32.mrf.mxu1  ;;  %v7235_v26 = vadd.f32 %v4682_v5, %v7066_v34 }
 0x2d2   : > { %v2557_v44 = vadd.f32 %v7029_v28, %v2267_v47  ;;  %v2830_v56 = vpop.f32.mrf.mxu0 }
 0x2d3   : > { %v2269_v35 = vpop.f32.mrf.mxu1  ;;  %3122 = vmax.xlane.f32.xlu1 %v7235_v26  ;;  %3116 = vmax.xlane.f32.xlu0 %v7232_v9  ;;  %v7243_v40 = vadd.f32 %v2830_v56, %v7075_v58 }
 0x2d4   : > { %v7238_v1 = vpack.c.bf16 %v2557_v44, %v2554_v20  ;;  %v4685_v22 = vpop.f32.mrf.mxu0 }
 0x2d5   : > { %v2272_v63 = vpop.f32.mrf.mxu1  ;;  %v7246_v24 = vadd.f32 %v4685_v22, %v7091_v21 }
 0x2d6   : > { %7930 = vst [vmem:[#allocation23_spill] sm:$0xff] %v7238_v1  ;;  %v2843_v0 = vpop.f32.mrf.mxu0  ;;  %v2562_v17 = vadd.f32 %v7021_v4, %v2272_v63 }
 0x2d7   : > { %v2274_v33 = vpop.f32.mrf.mxu1  ;;  %3118 = vmax.xlane.f32.xlu1 %v7243_v40  ;;  %3128 = vmax.xlane.f32.xlu0 %v7246_v24  ;;  %v7252_v3 = vadd.f32 %v2843_v0, %v7106_v2 }
 0x2d8   : > { %v4686_v28 = vpop.f32.mrf.mxu0 }
 0x2d9   : > { %v2275_v45 = vpop.f32.mrf.mxu1  ;;  %v7255_v16 = vadd.f32 %v4686_v28, %v7098_v60 }
 0x2da   : > { %v2565_v5 = vadd.f32 %v7026_v49, %v2275_v45  ;;  %v2846_v47 = vpop.f32.mrf.mxu0 }
 0x2db   : > { %v2277_v20 = vpop.f32.mrf.mxu1  ;;  %3130 = vmax.xlane.f32.xlu1 %v7255_v16  ;;  %3124 = vmax.xlane.f32.xlu0 %v7252_v3  ;;  %v7263_v4 = vadd.f32 %v2846_v47, %v7116_v11 }
 0x2dc   : > { %v7258_v44 = vpack.c.bf16 %v2565_v5, %v2562_v17  ;;  %v4689_v56 = vpop.f32.mrf.mxu0 }
 0x2dd   : > { %v2280_v35 = vpop.f32.mrf.mxu1  ;;  %v7266_v22 = vadd.f32 %v4689_v56, %v7127_v62 }
 0x2de   : > { %7931 = vst [vmem:[#allocation35_spill] sm:$0xff] %v7258_v44  ;;  %v2859_v63 = vpop.f32.mrf.mxu0  ;;  %v2570_v28 = vadd.f32 %v7037_v8, %v2280_v35 }
 0x2df   : > { %v2282_v0 = vpop.f32.mrf.mxu1  ;;  %3126 = vmax.xlane.f32.xlu1 %v7263_v4  ;;  %3136 = vmax.xlane.f32.xlu0 %v7266_v22  ;;  %v7272_v45 = vadd.f32 %v2859_v63, %v7146_v54 }
 0x2e0   : > { %v4690_v49 = vpop.f32.mrf.mxu0 }
 0x2e1   : > { %v2283_v33 = vpop.f32.mrf.mxu1  ;;  %v7275_v17 = vadd.f32 %v4690_v49, %v7137_v53 }
 0x2e2   : > { %v2573_v5 = vadd.f32 %v7044_v18, %v2283_v33  ;;  %v2862_v47 = vpop.f32.mrf.mxu0 }
 0x2e3   : > { %v2285_v20 = vpop.f32.mrf.mxu1  ;;  %3138 = vmax.xlane.f32.xlu1 %v7275_v17  ;;  %3132 = vmax.xlane.f32.xlu0 %v7272_v45  ;;  %v7283_v8 = vadd.f32 %v2862_v47, %v7156_v6 }
 0x2e4   : > { %v7278_v56 = vpack.c.bf16 %v2573_v5, %v2570_v28  ;;  %v4693_v0 = vpop.f32.mrf.mxu0 }
 0x2e5   : > { %v2288_v52 = vpop.f32.mrf.mxu1  ;;  %v7286_v35 = vadd.f32 %v4693_v0, %v7167_v57 }
 0x2e6   : > { %v2875_v63 = vpop.f32.mrf.mxu0  ;;  %v2578_v28 = vadd.f32 %v7034_v10, %v2288_v52 }
 0x2e7   : > { %v2290_v49 = vpop.f32.mrf.mxu1  ;;  %3134 = vmax.xlane.f32.xlu1 %v7283_v8  ;;  %3144 = vmax.xlane.f32.xlu0 %v7286_v35  ;;  %v7292_v5 = vadd.f32 %v2875_v63, %v7185_v46 }
 0x2e8   : > { %v4694_v18 = vpop.f32.mrf.mxu0 }
 0x2e9   : > { %v2291_v33 = vpop.f32.mrf.mxu1  ;;  %v7295_v20 = vadd.f32 %v4694_v18, %v7176_v48 }
 0x2ea   : > { %v2581_v47 = vadd.f32 %v7041_v37, %v2291_v33  ;;  %v2878_v0 = vpop.f32.mrf.mxu0 }
 0x2eb   : > { %v2293_v7 = vpop.f32.mrf.mxu1  ;;  %3146 = vmax.xlane.f32.xlu1 %v7295_v20  ;;  %3140 = vmax.xlane.f32.xlu0 %v7292_v5  ;;  %v7303_v23 = vadd.f32 %v2878_v0, %v7196_v50 }
 0x2ec   : > { %v7298_v13 = vpack.c.bf16 %v2581_v47, %v2578_v28 }
 0x2ed   : > { %v4713_v49 = vpop.f32.mrf.mxu1 }
 0x2ee   : > { %v7306_v10 = vadd.f32 %v4713_v49, %v7049_v55  ;;  %4855 = vmatprep.subr.bf16.mxu0 %v7298_v13 }
 0x2ef   : > { %v2924_v52 = vpop.f32.mrf.mxu1  ;;  %3142 = vmax.xlane.f32.xlu1 %v7303_v23 }
 0x2f0   : > { %3152 = vmax.xlane.f32.xlu0 %v7306_v10  ;;  %v7312_v7 = vadd.f32 %v2924_v52, %v7057_v27 }
 0x2f1   : > { %v4714_v37 = vpop.f32.mrf.mxu1 }
 0x2f2   : > { %7932 = vst [vmem:[#allocation24_spill] sm:$0xff] %v7312_v7  ;;  %v7315_v63 = vadd.f32 %v4714_v37, %v7066_v34 }
 0x2f3   : > { %v2927_v18 = vpop.f32.mrf.mxu1 }
 0x2f4   : > { %7933 = vst [vmem:[#allocation37_spill] sm:$0xff] %v7315_v63  ;;  %3154 = vmax.xlane.f32.xlu1 %v7315_v63  ;;  %3148 = vmax.xlane.f32.xlu0 %v7312_v7  ;;  %v7320_v28 = vadd.f32 %v2927_v18, %v7075_v58 }
 0x2f5   : > { %v4717_v33 = vpop.f32.mrf.mxu1 }
 0x2f6   : > { %7934 = vst [vmem:[#allocation26_spill] sm:$0xff] %v7320_v28  ;;  %v7323_v47 = vadd.f32 %v4717_v33, %v7091_v21 }
 0x2f7   : > { %v2940_v0 = vpop.f32.mrf.mxu1 }
 0x2f8   : > { %7935 = vst [vmem:[#allocation41_spill] sm:$0xff] %v7323_v47  ;;  %3150 = vmax.xlane.f32.xlu1 %v7320_v28  ;;  %3160 = vmax.xlane.f32.xlu0 %v7323_v47  ;;  %v7328_v52 = vadd.f32 %v2940_v0, %v7106_v2 }
 0x2f9   : > { %v4718_v49 = vpop.f32.mrf.mxu1 }
 0x2fa   : > { %7936 = vst [vmem:[#allocation27_spill] sm:$0xff] %v7328_v52  ;;  %v7331_v37 = vadd.f32 %v4718_v49, %v7098_v60 }
 0x2fb   : > { %v2943_v1 = vpop.f32.mrf.mxu1 }
 0x2fc   : > { %7937 = vst [vmem:[#allocation44_spill] sm:$0xff] %v7331_v37  ;;  %3162 = vmax.xlane.f32.xlu1 %v7331_v37  ;;  %3156 = vmax.xlane.f32.xlu0 %v7328_v52  ;;  %v7336_v33 = vadd.f32 %v2943_v1, %v7116_v11 }
 0x2fd   : > { %v4721_v18 = vpop.f32.mrf.mxu1 }
 0x2fe   : > { %7938 = vst [vmem:[#allocation38_spill] sm:$0xff] %v7336_v33  ;;  %v7339_v28 = vadd.f32 %v4721_v18, %v7127_v62 }
 0x2ff   : > { %v2956_v47 = vpop.f32.mrf.mxu1 }
 0x300   : > { %7939 = vst [vmem:[#allocation36_spill] sm:$0xff] %v7339_v28  ;;  %3158 = vmax.xlane.f32.xlu1 %v7336_v33  ;;  %3168 = vmax.xlane.f32.xlu0 %v7339_v28  ;;  %v7344_v49 = vadd.f32 %v2956_v47, %v7146_v54 }
 0x301   : > { %v4722_v0 = vpop.f32.mrf.mxu1 }
 0x302   : > { %7940 = vst [vmem:[#allocation29_spill] sm:$0xff] %v7344_v49  ;;  %v7347_v37 = vadd.f32 %v4722_v0, %v7137_v53 }
 0x303   : > { %v2959_v52 = vpop.f32.mrf.mxu1 }
 0x304   : > { %7941 = vst [vmem:[#allocation30_spill] sm:$0xff] %v7347_v37  ;;  %3170 = vmax.xlane.f32.xlu1 %v7347_v37  ;;  %3164 = vmax.xlane.f32.xlu0 %v7344_v49  ;;  %v7352_v18 = vadd.f32 %v2959_v52, %v7156_v6 }
 0x305   : > { %v4725_v1 = vpop.f32.mrf.mxu1 }
 0x306   : > { %7942 = vst [vmem:[#allocation42_spill] sm:$0xff] %v7352_v18  ;;  %v7355_v33 = vadd.f32 %v4725_v1, %v7167_v57 }
 0x307   : > { %v2972_v28 = vpop.f32.mrf.mxu1 }
 0x308   : > { %7943 = vst [vmem:[#allocation40_spill] sm:$0xff] %v7355_v33  ;;  %3166 = vmax.xlane.f32.xlu1 %v7352_v18  ;;  %3176 = vmax.xlane.f32.xlu0 %v7355_v33  ;;  %v7360_v0 = vadd.f32 %v2972_v28, %v7185_v46 }
 0x309   : > { %v4726_v47 = vpop.f32.mrf.mxu1 }
 0x30a   : > { %7944 = vst [vmem:[#allocation45_spill] sm:$0xff] %v7360_v0  ;;  %v7363_v37 = vadd.f32 %v4726_v47, %v7176_v48 }
 0x30b   : > { %v2975_v49 = vpop.f32.mrf.mxu1 }
 0x30c   : > { %7945 = vst [vmem:[#allocation43_spill] sm:$0xff] %v7363_v37  ;;  %3178 = vmax.xlane.f32.xlu1 %v7363_v37  ;;  %3172 = vmax.xlane.f32.xlu0 %v7360_v0  ;;  %v7368_v52 = vadd.f32 %v2975_v49, %v7196_v50 }
 0x30e   : > { %7946 = vst [vmem:[#allocation47_spill] sm:$0xff] %v7368_v52 }
 0x30f   : > { %v4745_v1 = vpop.f32.mrf.mxu0 }
 0x310   : > { %3174 = vmax.xlane.f32.xlu1 %v7368_v52  ;;  %v7372_v33 = vadd.f32 %v4745_v1, %v7049_v55 }
 0x311   : > { %v3021_v18 = vpop.f32.mrf.mxu0 }
 0x312   : > { %7947 = vst [vmem:[#allocation46_spill] sm:$0xff] %v7372_v33  ;;  %3184 = vmax.xlane.f32.xlu0 %v7372_v33  ;;  %v7376_v47 = vadd.f32 %v3021_v18, %v7057_v27 }
 0x313   : > { %v4746_v28 = vpop.f32.mrf.mxu0 }
 0x314   : > { %7948 = vst [vmem:[#allocation49_spill] sm:$0xff] %v7376_v47  ;;  %v7379_v37 = vadd.f32 %v4746_v28, %v7066_v34 }
 0x315   : > { %v3024_v0 = vpop.f32.mrf.mxu0 }
 0x316   : > { %7949 = vst [vmem:[#allocation48_spill] sm:$0xff] %v7379_v37  ;;  %3186 = vmax.xlane.f32.xlu1 %v7379_v37  ;;  %3180 = vmax.xlane.f32.xlu0 %v7376_v47  ;;  %v7384_v52 = vadd.f32 %v3024_v0, %v7075_v58 }
 0x317   : > { %v4749_v49 = vpop.f32.mrf.mxu0 }
 0x318   : > { %7950 = vst [vmem:[#allocation51_spill] sm:$0xff] %v7384_v52  ;;  %v3089_v55 = vpop.xlane.xlu1 %3088 }
 0x319   : > { %v3037_v1 = vpop.f32.mrf.mxu0  ;;  %v3214_v18 = vsub.f32 %v7061_v15, %v3089_v55 }
 0x31a   : > { %v7387_v33 = vadd.f32 %v3037_v1, %v7106_v2  ;;  %v3085_v7 = vpop.xlane.xlu0 %3084  ;;  %3182 = vmax.xlane.f32.xlu1 %v7384_v52 }
 0x31b   : > { %v3212_v27 = vsub.f32 %v7069_v12, %v3085_v7  ;;  %v4750_v34 = vpop.f32.mrf.mxu0  ;;  %v3280_v44 = vmul.f32 1.442695, %v3214_v18 }
 0x31c   : > { %v3091_v28 = vpop.xlane.xlu1 %3090  ;;  %3188 = vmax.xlane.f32.xlu0 %v7387_v33 }
 0x31d   : > { %v3276_v47 = vmul.f32 1.442695, %v3212_v27  ;;  %v3215_v58 = vsub.f32 %v7079_v29, %v3091_v28  ;;  %v3040_v0 = vpop.f32.mrf.mxu0 }
 0x31e   : > { %v7395_v37 = vadd.f32 %v3040_v0, %v7116_v11  ;;  %v3087_v2 = vpop.xlane.xlu0 %3086 }
 0x31f   : > { %v3282_v1 = vmul.f32 1.442695, %v3215_v58  ;;  %v3213_v63 = vsub.f32 %v7085_v51, %v3087_v2  ;;  %v4753_v52 = vpop.f32.mrf.mxu0  ;;  %5137 = vpow2.f32 %v3276_v47 }
 0x320   : > { %v7399_v12 = vadd.f32 %v4753_v52, %v7127_v62  ;;  %3190 = vmax.xlane.f32.xlu1 %v7395_v37 }
 0x321   : > { %v3278_v15 = vmul.f32 1.442695, %v3213_v63  ;;  %v3053_v7 = vpop.f32.mrf.mxu0  ;;  %5139 = vpow2.f32 %v3282_v1 }
 0x322   : > { %v3097_v29 = vpop.xlane.xlu0 %3096  ;;  %3200 = vmax.xlane.f32.xlu0 %v7399_v12  ;;  %v7404_v55 = vadd.f32 %v3053_v7, %v7146_v54  ;;  %v7415_v54 = vadd.f32 %v4749_v49, %v7091_v21  ;;  %v7424_v21 = vadd.f32 %v4750_v34, %v7098_v60 }
 0x323   : > { %5141 = vpow2.f32 %v3278_v15  ;;  %v4754_v11 = vpop.f32.mrf.mxu0  ;;  %v3218_v63 = vsub.f32 %v7101_v31, %v3097_v29 }
 0x324   : > { %5143 = vpow2.f32 %v3280_v44  ;;  %v7407_v51 = vadd.f32 %v4754_v11, %v7137_v53  ;;  %v3099_v62 = vpop.xlane.xlu1 %3098 }
 0x325   : > { %v3219_v52 = vsub.f32 %v7110_v14, %v3099_v62  ;;  %v3056_v27 = vpop.f32.mrf.mxu0  ;;  %v3288_v2 = vmul.f32 1.442695, %v3218_v63 }
 0x326   : > { %v3093_v47 = vpop.xlane.xlu0 %3092  ;;  %3202 = vmax.xlane.f32.xlu1 %v7407_v51  ;;  %3196 = vmax.xlane.f32.xlu0 %v7404_v55  ;;  %v7418_v53 = vadd.f32 %v3056_v27, %v7156_v6 }
 0x327   : > { %v3290_v18 = vmul.f32 1.442695, %v3219_v52  ;;  %v3216_v44 = vsub.f32 %v7119_v30, %v3093_v47  ;;  %v4757_v28 = vpop.f32.mrf.mxu0 }
 0x328   : > { %v3095_v58 = vpop.xlane.xlu1 %3094  ;;  %v7435_v27 = vadd.f32 %v4757_v28, %v7167_v57 }
 0x329   : > { %v3284_v14 = vmul.f32 1.442695, %v3216_v44  ;;  %v3217_v0 = vsub.f32 %v7130_v39, %v3095_v58  ;;  %v3069_v31 = vpop.f32.mrf.mxu0  ;;  %5145 = vpow2.f32 %v3290_v18 }
 0x32a   : > { %v3105_v1 = vpop.xlane.xlu0 %3104  ;;  %3198 = vmax.xlane.f32.xlu1 %v7418_v53  ;;  %3192 = vmax.xlane.f32.xlu0 %v7415_v54  ;;  %v7427_v6 = vadd.f32 %v3069_v31, %v7185_v46 }
 0x32b   : > { %v3286_v30 = vmul.f32 1.442695, %v3217_v0  ;;  %v4758_v15 = vpop.f32.mrf.mxu0  ;;  %5147 = vpow2.f32 %v3284_v14  ;;  %v3222_v11 = vsub.f32 %v7140_v19, %v3105_v1 }
 0x32c   : > { %v3107_v49 = vpop.xlane.xlu1 %3106  ;;  %v5138_v29 = vpop.eup %5137  ;;  %v7444_v57 = vadd.f32 %v4758_v15, %v7176_v48 }
 0x32d   : > { %5149 = vpow2.f32 %v3286_v30  ;;  %v3223_v39 = vsub.f32 %v7150_v41, %v3107_v49  ;;  %v3072_v7 = vpop.f32.mrf.mxu0  ;;  %v3296_v14 = vmul.f32 1.442695, %v3222_v11 }
 0x32e   : > { %5151 = vpow2.f32 %v3288_v2  ;;  %v3101_v62 = vpop.xlane.xlu0 %3100  ;;  %3194 = vmax.xlane.f32.xlu1 %v7424_v21  ;;  %3204 = vmax.xlane.f32.xlu0 %v7427_v6  ;;  %v5140_v60 = vpop.eup %5139  ;;  %v7438_v41 = vadd.f32 %v3072_v7, %v7196_v50 }
 0x32f   : > { %v3298_v34 = vmul.f32 1.442695, %v3223_v39  ;;  %v3220_v52 = vsub.f32 %v7159_v38, %v3101_v62  ;;  %v7951_v39 = vld [vmem:[#allocation32_spill] sm:$0xff] }
 0x330   : > { %v5142_v46 = vpop.eup %5141  ;;  %v3103_v63 = vpop.xlane.xlu1 %3102 }
 0x331   : > { %v5144_v47 = vpop.eup %5143  ;;  %v3292_v18 = vmul.f32 1.442695, %v3220_v52  ;;  %v3221_v19 = vsub.f32 %v7170_v36, %v3103_v63  ;;  %v3532_v44 = vpack.c.bf16 %v5142_v46, %v5138_v29  ;;  %5153 = vpow2.f32 %v3298_v34  ;;  %v7954_v63 = vld [vmem:[#allocation17_spill] sm:$0xff] }
 0x332   : > { %v3533_v58 = vpack.c.bf16 %v5140_v60, %v5144_v47  ;;  %v3113_v0 = vpop.xlane.xlu0 %3112  ;;  %3206 = vmax.xlane.f32.xlu1 %v7438_v41  ;;  %3208 = vmax.xlane.f32.xlu0 %v7435_v27 }
 0x333   : > { %v3294_v38 = vmul.f32 1.442695, %v3221_v19  ;;  %4775 = vmatprep.mubr.bf16.mxu1 %v3532_v44  ;;  %5155 = vpow2.f32 %v3292_v18  ;;  %v3226_v28 = vsub.f32 %v7179_v43, %v3113_v0  ;;  %v7952_v43 = vld [vmem:[#allocation18_spill] sm:$0xff]  ;;  %v7955_v44 = vld [vmem:[#allocation28_spill] sm:$0xff]  ;;  %v7956_v0 = vld [vmem:[#allocation15_spill] sm:$0xff] }
 0x334   : > { %v3115_v50 = vpop.xlane.xlu1 %3114  ;;  %4776 = vmatmul.mubr.bf16.vlgmr.msra.gmra.mxu1 %v3533_v58 }
 0x335   : > { %5157 = vpow2.f32 %v3294_v38  ;;  %v3227_v36 = vsub.f32 %v7190_v32, %v3115_v50  ;;  %4824 = vmatpush3.bf16.msra.mxu1 %v7201_v61  ;;  %v3304_v7 = vmul.f32 1.442695, %v3226_v28  ;;  %v7957_v28 = vld [vmem:[#allocation25_spill] sm:$0xff] }
 0x336   : > { %5159 = vpow2.f32 %v3296_v14  ;;  %4825 = vmatprep.subr.bf16.mxu1 %v7161_v42  ;;  %v3109_v31 = vpop.xlane.xlu0 %3108  ;;  %3210 = vmax.xlane.f32.xlu1 %v7444_v57  ;;  %v5146_v1 = vpop.eup %5145 }
 0x337   : > { %v3306_v2 = vmul.f32 1.442695, %v3227_v36  ;;  %v3224_v48 = vsub.f32 %v7199_v25, %v3109_v31  ;;  %3404 = vadd.xlane.f32.xlu0 %v5138_v29  ;;  %v7953_v29 = vld [vmem:[#allocation31_spill] sm:$0xff] }
 0x338   : > { %v3111_v30 = vpop.xlane.xlu1 %3110  ;;  %v5148_v15 = vpop.eup %5147 }
 0x339   : > { %v3300_v49 = vmul.f32 1.442695, %v3224_v48  ;;  %v3225_v32 = vsub.f32 %v7951_v39, %v3111_v30  ;;  %4826 = vmatpush3.bf16.msra.mxu1 %v7161_v42  ;;  %5161 = vpow2.f32 %v3306_v2 }
 0x33a   : > { %v5150_v61 = vpop.eup %5149  ;;  %4827 = vmatprep.subr.bf16.mxu1 %v7952_v43  ;;  %3410 = vadd.xlane.f32.xlu1 %v5140_v60 }
 0x33b   : > { %v5152_v11 = vpop.eup %5151  ;;  %v3302_v62 = vmul.f32 1.442695, %v3225_v32  ;;  %3408 = vadd.xlane.f32.xlu0 %v5144_v47  ;;  %v3534_v34 = vpack.c.bf16 %v5150_v61, %v5148_v15  ;;  %5163 = vpow2.f32 %v3300_v49 }
 0x33c   : > { %v3535_v25 = vpack.c.bf16 %v5146_v1, %v5152_v11 }
 0x33d   : > { %5165 = vpow2.f32 %v3302_v62  ;;  %4828 = vmatpush3.bf16.msra.mxu1 %v7952_v43  ;;  %4779 = vmatprep.mubr.bf16.mxu1 %v3534_v34 }
 0x33e   : > { %5167 = vpow2.f32 %v3304_v7  ;;  %4829 = vmatprep.subr.bf16.mxu1 %v7953_v29  ;;  %4780 = vmatmul.mubr.bf16.gmra.mxu1 %v3535_v25  ;;  %v5154_v42 = vpop.eup %5153 }
 0x33f   : > { %3406 = vadd.xlane.f32.xlu1 %v5142_v46  ;;  %3416 = vadd.xlane.f32.xlu0 %v5152_v11 }
 0x340   : > { %v5156_v52 = vpop.eup %5155 }
 0x341   : > { %4830 = vmatpush3.bf16.msra.mxu1 %v7953_v29 }
 0x342   : > { %v5158_v60 = vpop.eup %5157  ;;  %4831 = vmatprep.subr.bf16.mxu1 %v7954_v63 }
 0x343   : > { %v5160_v47 = vpop.eup %5159  ;;  %3418 = vadd.xlane.f32.xlu1 %v5146_v1  ;;  %3412 = vadd.xlane.f32.xlu0 %v5148_v15  ;;  %v3536_v18 = vpack.c.bf16 %v5158_v60, %v5156_v52 }
 0x344   : > { %v3537_v19 = vpack.c.bf16 %v5154_v42, %v5160_v47 }
 0x345   : > { %4832 = vmatpush3.bf16.msra.mxu1 %v7954_v63  ;;  %4783 = vmatprep.mubr.bf16.mxu1 %v3536_v18 }
 0x346   : > { %4833 = vmatprep.subr.bf16.mxu1 %v7955_v44  ;;  %4784 = vmatmul.mubr.bf16.gmra.mxu1 %v3537_v19  ;;  %v5162_v46 = vpop.eup %5161 }
 0x347   : > { %3414 = vadd.xlane.f32.xlu1 %v5150_v61  ;;  %3424 = vadd.xlane.f32.xlu0 %v5160_v47 }
 0x348   : > { %v5164_v58 = vpop.eup %5163 }
 0x349   : > { %4834 = vmatpush3.bf16.msra.mxu1 %v7955_v44 }
 0x34a   : > { %v5166_v14 = vpop.eup %5165  ;;  %4835 = vmatprep.subr.bf16.mxu1 %v7956_v0 }
 0x34b   : > { %v5168_v38 = vpop.eup %5167  ;;  %3426 = vadd.xlane.f32.xlu1 %v5154_v42  ;;  %3420 = vadd.xlane.f32.xlu0 %v5156_v52  ;;  %v3538_v50 = vpack.c.bf16 %v5166_v14, %v5164_v58 }
 0x34c   : > { %v3539_v36 = vpack.c.bf16 %v5162_v46, %v5168_v38 }
 0x34d   : > { %4836 = vmatpush3.bf16.msra.mxu1 %v7956_v0  ;;  %4787 = vmatprep.mubr.bf16.mxu1 %v3538_v50 }
 0x34e   : > { %4837 = vmatprep.subr.bf16.mxu1 %v7957_v28  ;;  %4788 = vmatmul.mubr.bf16.gmra.mxu1 %v3539_v36 }
 0x34f   : > { %3422 = vadd.xlane.f32.xlu1 %v5158_v60  ;;  %3432 = vadd.xlane.f32.xlu0 %v5168_v38 }
 0x351   : > { %4838 = vmatpush3.bf16.msra.mxu1 %v7957_v28 }
 0x352   : > { %4887 = vmatprep.subr.bf16.mxu1 %v7298_v13 }
 0x353   : > { %3434 = vadd.xlane.f32.xlu1 %v5162_v46  ;;  %3428 = vadd.xlane.f32.xlu0 %v5164_v58 }
 0x357   : > { %3430 = vadd.xlane.f32.xlu1 %v5166_v14 }
 0x358   : > { %v3121_v31 = vpop.xlane.xlu0 %3120 }
 0x359   : > { %v3230_v2 = vsub.f32 %v7227_v59, %v3121_v31 }
 0x35b   : > { %v3312_v48 = vmul.f32 1.442695, %v3230_v2 }
 0x35c   : > { %v3123_v1 = vpop.xlane.xlu1 %3122  ;;  %v3117_v30 = vpop.xlane.xlu0 %3116 }
 0x35d   : > { %5169 = vpow2.f32 %v3312_v48  ;;  %v3231_v15 = vsub.f32 %v7235_v26, %v3123_v1  ;;  %v3228_v49 = vsub.f32 %v7232_v9, %v3117_v30 }
 0x35f   : > { %v3314_v39 = vmul.f32 1.442695, %v3231_v15  ;;  %v3308_v32 = vmul.f32 1.442695, %v3228_v49 }
 0x360   : > { %v3119_v61 = vpop.xlane.xlu1 %3118  ;;  %v3129_v7 = vpop.xlane.xlu0 %3128 }
 0x361   : > { %5171 = vpow2.f32 %v3314_v39  ;;  %v3229_v43 = vsub.f32 %v7243_v40, %v3119_v61  ;;  %v3234_v11 = vsub.f32 %v7246_v24, %v3129_v7 }
 0x362   : > { %5173 = vpow2.f32 %v3308_v32 }
 0x363   : > { %v3310_v62 = vmul.f32 1.442695, %v3229_v43  ;;  %v3320_v59 = vmul.f32 1.442695, %v3234_v11 }
 0x364   : > { %v3131_v34 = vpop.xlane.xlu1 %3130  ;;  %v3125_v25 = vpop.xlane.xlu0 %3124 }
 0x365   : > { %5175 = vpow2.f32 %v3310_v62  ;;  %v3235_v29 = vsub.f32 %v7255_v16, %v3131_v34  ;;  %v3232_v26 = vsub.f32 %v7252_v3, %v3125_v25  ;;  %v7958_v34 = vld [vmem:[#allocation35_spill] sm:$0xff] }
 0x366   : > { %5177 = vpow2.f32 %v3320_v59 }
 0x367   : > { %v3322_v9 = vmul.f32 1.442695, %v3235_v29  ;;  %v3316_v42 = vmul.f32 1.442695, %v3232_v26 }
 0x368   : > { %v3127_v52 = vpop.xlane.xlu1 %3126  ;;  %v3137_v60 = vpop.xlane.xlu0 %3136 }
 0x369   : > { %5179 = vpow2.f32 %v3322_v9  ;;  %v3233_v40 = vsub.f32 %v7263_v4, %v3127_v52  ;;  %v3238_v24 = vsub.f32 %v7266_v22, %v3137_v60  ;;  %v7959_v9 = vld [vmem:[#allocation37_spill] sm:$0xff] }
 0x36a   : > { %v5170_v63 = vpop.eup %5169  ;;  %5181 = vpow2.f32 %v3316_v42  ;;  %v7960_v42 = vld [vmem:[#allocation24_spill] sm:$0xff] }
 0x36b   : > { %v3318_v47 = vmul.f32 1.442695, %v3233_v40  ;;  %v3328_v18 = vmul.f32 1.442695, %v3238_v24  ;;  %3440 = vadd.xlane.f32.xlu0 %v5170_v63 }
 0x36c   : > { %v3139_v19 = vpop.xlane.xlu1 %3138  ;;  %v3133_v44 = vpop.xlane.xlu0 %3132 }
 0x36d   : > { %5183 = vpow2.f32 %v3318_v47  ;;  %v3239_v3 = vsub.f32 %v7275_v17, %v3139_v19  ;;  %v3236_v16 = vsub.f32 %v7272_v45, %v3133_v44  ;;  %v7962_v19 = vld [vmem:[#allocation26_spill] sm:$0xff] }
 0x36e   : > { %v5172_v46 = vpop.eup %5171  ;;  %5185 = vpow2.f32 %v3328_v18 }
 0x36f   : > { %v5174_v58 = vpop.eup %5173  ;;  %v3330_v14 = vmul.f32 1.442695, %v3239_v3  ;;  %v3324_v0 = vmul.f32 1.442695, %v3236_v16  ;;  %3442 = vadd.xlane.f32.xlu1 %v5172_v46  ;;  %v3541_v2 = vpack.c.bf16 %v5172_v46, %v5170_v63  ;;  %v7961_v63 = vld [vmem:[#allocation23_spill] sm:$0xff]  ;;  %v7963_v3 = vld [vmem:[#allocation41_spill] sm:$0xff] }
 0x370   : > { %3436 = vadd.xlane.f32.xlu0 %v5174_v58  ;;  %v3135_v4 = vpop.xlane.xlu1 %3134  ;;  %v3145_v22 = vpop.xlane.xlu0 %3144 }
 0x371   : > { %5187 = vpow2.f32 %v3330_v14  ;;  %v3237_v38 = vsub.f32 %v7283_v8, %v3135_v4  ;;  %v3242_v50 = vsub.f32 %v7286_v35, %v3145_v22  ;;  %v7964_v22 = vld [vmem:[#allocation34_spill] sm:$0xff] }
 0x372   : > { %v5176_v36 = vpop.eup %5175  ;;  %5189 = vpow2.f32 %v3324_v0 }
 0x373   : > { %v5178_v28 = vpop.eup %5177  ;;  %v3326_v17 = vmul.f32 1.442695, %v3237_v38  ;;  %v3336_v31 = vmul.f32 1.442695, %v3242_v50  ;;  %3438 = vadd.xlane.f32.xlu1 %v5176_v36  ;;  %v3540_v45 = vpack.c.bf16 %v5176_v36, %v5174_v58 }
 0x374   : > { %3448 = vadd.xlane.f32.xlu0 %v5178_v28  ;;  %v3147_v48 = vpop.xlane.xlu1 %3146  ;;  %v3141_v1 = vpop.xlane.xlu0 %3140 }
 0x375   : > { %5191 = vpow2.f32 %v3326_v17  ;;  %v3243_v30 = vsub.f32 %v7295_v20, %v3147_v48  ;;  %v3240_v15 = vsub.f32 %v7292_v5, %v3141_v1  ;;  %4807 = vmatprep.mubr.bf16.mxu0 %v3540_v45 }
 0x376   : > { %v5180_v8 = vpop.eup %5179  ;;  %5193 = vpow2.f32 %v3336_v31  ;;  %4808 = vmatmul.mubr.bf16.vlgmr.msra.gmra.mxu0 %v3541_v2  ;;  %v7966_v31 = vld [vmem:[#allocation27_spill] sm:$0xff] }
 0x377   : > { %v5182_v35 = vpop.eup %5181  ;;  %v3338_v49 = vmul.f32 1.442695, %v3243_v30  ;;  %v3332_v39 = vmul.f32 1.442695, %v3240_v15  ;;  %4856 = vmatpush3.bf16.msra.mxu0 %v7298_v13  ;;  %3450 = vadd.xlane.f32.xlu1 %v5180_v8  ;;  %v3543_v26 = vpack.c.bf16 %v5180_v8, %v5178_v28  ;;  %v7965_v28 = vld [vmem:[#allocation44_spill] sm:$0xff]  ;;  %v7967_v15 = vld [vmem:[#allocation21_spill] sm:$0xff] }
 0x378   : > { %4857 = vmatprep.subr.bf16.mxu0 %v7278_v56  ;;  %3444 = vadd.xlane.f32.xlu0 %v5182_v35  ;;  %v3143_v32 = vpop.xlane.xlu1 %3142 }
 0x379   : > { %v3153_v61 = vpop.xlane.xlu0 %3152  ;;  %5195 = vpow2.f32 %v3338_v49  ;;  %v3241_v20 = vsub.f32 %v7303_v23, %v3143_v32  ;;  %v7968_v49 = vld [vmem:[#allocation38_spill] sm:$0xff]  ;;  %v7969_v32 = vld [vmem:[#allocation36_spill] sm:$0xff] }
 0x37a   : > { %v3246_v5 = vsub.f32 %v7306_v10, %v3153_v61  ;;  %v5184_v7 = vpop.eup %5183  ;;  %5197 = vpow2.f32 %v3332_v39 }
 0x37b   : > { %v5186_v43 = vpop.eup %5185  ;;  %v3334_v11 = vmul.f32 1.442695, %v3241_v20  ;;  %4858 = vmatpush3.bf16.msra.mxu0 %v7278_v56  ;;  %3446 = vadd.xlane.f32.xlu1 %v5184_v7  ;;  %v3542_v59 = vpack.c.bf16 %v5184_v7, %v5182_v35 }
 0x37c   : > { %v3344_v62 = vmul.f32 1.442695, %v3246_v5  ;;  %4859 = vmatprep.subr.bf16.mxu0 %v7958_v34  ;;  %3456 = vadd.xlane.f32.xlu0 %v5186_v43 }
 0x37d   : > { %v3155_v25 = vpop.xlane.xlu1 %3154  ;;  %v3149_v29 = vpop.xlane.xlu0 %3148  ;;  %5199 = vpow2.f32 %v3334_v11  ;;  %4811 = vmatprep.mubr.bf16.mxu0 %v3542_v59 }
 0x37e   : > { %v3247_v23 = vsub.f32 %v7959_v9, %v3155_v25  ;;  %v3244_v10 = vsub.f32 %v7960_v42, %v3149_v29  ;;  %v5188_v52 = vpop.eup %5187  ;;  %5201 = vpow2.f32 %v3344_v62  ;;  %4812 = vmatmul.mubr.bf16.gmra.mxu0 %v3543_v26  ;;  %v7970_v62 = vld [vmem:[#allocation33_spill] sm:$0xff]  ;;  %v7971_v26 = vld [vmem:[#allocation30_spill] sm:$0xff] }
 0x37f   : > { %v5190_v60 = vpop.eup %5189  ;;  %4860 = vmatpush3.bf16.msra.mxu0 %v7958_v34  ;;  %3458 = vadd.xlane.f32.xlu1 %v5188_v52  ;;  %v3545_v36 = vpack.c.bf16 %v5188_v52, %v5186_v43 }
 0x380   : > { %v3346_v40 = vmul.f32 1.442695, %v3247_v23  ;;  %v3340_v24 = vmul.f32 1.442695, %v3244_v10  ;;  %4861 = vmatprep.subr.bf16.mxu0 %v7961_v63  ;;  %3452 = vadd.xlane.f32.xlu0 %v5190_v60  ;;  %v7972_v23 = vld [vmem:[#allocation29_spill] sm:$0xff] }
 0x381   : > { %v3151_v47 = vpop.xlane.xlu1 %3150  ;;  %v3161_v18 = vpop.xlane.xlu0 %3160 }
 0x382   : > { %5203 = vpow2.f32 %v3346_v40  ;;  %v3245_v44 = vsub.f32 %v7962_v19, %v3151_v47  ;;  %v3250_v16 = vsub.f32 %v7963_v3, %v3161_v18  ;;  %v5192_v46 = vpop.eup %5191  ;;  %v7974_v19 = vld [vmem:[#allocation42_spill] sm:$0xff]  ;;  %v7975_v3 = vld [vmem:[#allocation40_spill] sm:$0xff] }
 0x383   : > { %5205 = vpow2.f32 %v3340_v24  ;;  %v5194_v58 = vpop.eup %5193  ;;  %4862 = vmatpush3.bf16.msra.mxu0 %v7961_v63  ;;  %3454 = vadd.xlane.f32.xlu1 %v5192_v46  ;;  %v3544_v4 = vpack.c.bf16 %v5192_v46, %v5190_v60  ;;  %v7973_v24 = vld [vmem:[#allocation20_spill] sm:$0xff] }
 0x384   : > { %v3342_v14 = vmul.f32 1.442695, %v3245_v44  ;;  %v3352_v0 = vmul.f32 1.442695, %v3250_v16  ;;  %4863 = vmatprep.subr.bf16.mxu0 %v7964_v22  ;;  %3464 = vadd.xlane.f32.xlu0 %v5194_v58 }
 0x385   : > { %v3163_v38 = vpop.xlane.xlu1 %3162  ;;  %v3157_v50 = vpop.xlane.xlu0 %3156  ;;  %4815 = vmatprep.mubr.bf16.mxu0 %v3544_v4 }
 0x386   : > { %5207 = vpow2.f32 %v3342_v14  ;;  %v3251_v17 = vsub.f32 %v7965_v28, %v3163_v38  ;;  %v3248_v45 = vsub.f32 %v7966_v31, %v3157_v50  ;;  %v5196_v2 = vpop.eup %5195  ;;  %4816 = vmatmul.mubr.bf16.gmra.mxu0 %v3545_v36  ;;  %v7976_v28 = vld [vmem:[#allocation43_spill] sm:$0xff]  ;;  %v7977_v31 = vld [vmem:[#allocation45_spill] sm:$0xff] }
 0x387   : > { %5209 = vpow2.f32 %v3352_v0  ;;  %v5198_v48 = vpop.eup %5197  ;;  %4864 = vmatpush3.bf16.msra.mxu0 %v7964_v22  ;;  %3466 = vadd.xlane.f32.xlu1 %v5196_v2  ;;  %v3547_v29 = vpack.c.bf16 %v5196_v2, %v5194_v58 }
 0x388   : > { %v3354_v1 = vmul.f32 1.442695, %v3251_v17  ;;  %v3348_v30 = vmul.f32 1.442695, %v3248_v45  ;;  %4865 = vmatprep.subr.bf16.mxu0 %v7967_v15  ;;  %3460 = vadd.xlane.f32.xlu0 %v5198_v48 }
 0x389   : > { %v3159_v8 = vpop.xlane.xlu1 %3158  ;;  %v3169_v35 = vpop.xlane.xlu0 %3168 }
 0x38a   : > { %5211 = vpow2.f32 %v3354_v1  ;;  %v3249_v39 = vsub.f32 %v7968_v49, %v3159_v8  ;;  %v3254_v61 = vsub.f32 %v7969_v32, %v3169_v35  ;;  %v5200_v20 = vpop.eup %5199  ;;  %v7978_v35 = vld [vmem:[#allocation47_spill] sm:$0xff] }
 0x38b   : > { %5213 = vpow2.f32 %v3348_v30  ;;  %v5202_v5 = vpop.eup %5201  ;;  %4866 = vmatpush3.bf16.msra.mxu0 %v7967_v15  ;;  %3462 = vadd.xlane.f32.xlu1 %v5200_v20  ;;  %v3546_v11 = vpack.c.bf16 %v5200_v20, %v5198_v48 }
 0x38c   : > { %v3350_v7 = vmul.f32 1.442695, %v3249_v39  ;;  %v3360_v43 = vmul.f32 1.442695, %v3254_v61  ;;  %4867 = vmatprep.subr.bf16.mxu0 %v7970_v62  ;;  %3472 = vadd.xlane.f32.xlu0 %v5202_v5 }
 0x38d   : > { %v3171_v59 = vpop.xlane.xlu1 %3170  ;;  %v3165_v25 = vpop.xlane.xlu0 %3164  ;;  %4819 = vmatprep.mubr.bf16.mxu0 %v3546_v11 }
 0x38e   : > { %5215 = vpow2.f32 %v3350_v7  ;;  %v3255_v9 = vsub.f32 %v7971_v26, %v3171_v59  ;;  %v3252_v42 = vsub.f32 %v7972_v23, %v3165_v25  ;;  %4820 = vmatmul.mubr.bf16.gmra.mxu0 %v3547_v29  ;;  %v7980_v26 = vld [vmem:[#allocation48_spill] sm:$0xff]  ;;  %v7981_v23 = vld [vmem:[#allocation49_spill] sm:$0xff] }
 0x38f   : > { %v5204_v10 = vpop.eup %5203  ;;  %5217 = vpow2.f32 %v3360_v43  ;;  %4868 = vmatpush3.bf16.msra.mxu0 %v7970_v62 }
 0x390   : > { %v5206_v52 = vpop.eup %5205  ;;  %v3362_v60 = vmul.f32 1.442695, %v3255_v9  ;;  %v3356_v40 = vmul.f32 1.442695, %v3252_v42  ;;  %3474 = vadd.xlane.f32.xlu1 %v5204_v10  ;;  %4869 = vmatprep.subr.bf16.mxu0 %v7973_v24  ;;  %v3549_v38 = vpack.c.bf16 %v5204_v10, %v5202_v5 }
 0x391   : > { %3468 = vadd.xlane.f32.xlu0 %v5206_v52  ;;  %v3167_v47 = vpop.xlane.xlu1 %3166  ;;  %v3177_v18 = vpop.xlane.xlu0 %3176 }
 0x392   : > { %5219 = vpow2.f32 %v3362_v60  ;;  %v3253_v44 = vsub.f32 %v7974_v19, %v3167_v47  ;;  %v3258_v16 = vsub.f32 %v7975_v3, %v3177_v18  ;;  %v7982_v18 = vld [vmem:[#allocation51_spill] sm:$0xff] }
 0x393   : > { %v5208_v46 = vpop.eup %5207  ;;  %5221 = vpow2.f32 %v3356_v40  ;;  %4870 = vmatpush3.bf16.msra.mxu0 %v7973_v24 }
 0x394   : > { %v5210_v58 = vpop.eup %5209  ;;  %v3358_v14 = vmul.f32 1.442695, %v3253_v44  ;;  %v3368_v0 = vmul.f32 1.442695, %v3258_v16  ;;  %3470 = vadd.xlane.f32.xlu1 %v5208_v46  ;;  %v3548_v4 = vpack.c.bf16 %v5208_v46, %v5206_v52 }
 0x395   : > { %3480 = vadd.xlane.f32.xlu0 %v5210_v58  ;;  %v3179_v50 = vpop.xlane.xlu1 %3178  ;;  %v3173_v36 = vpop.xlane.xlu0 %3172 }
 0x396   : > { %5223 = vpow2.f32 %v3358_v14  ;;  %v3259_v17 = vsub.f32 %v7976_v28, %v3179_v50  ;;  %v3256_v45 = vsub.f32 %v7977_v31, %v3173_v36  ;;  %4839 = vmatprep.mubr.bf16.mxu1 %v3548_v4 }
 0x397   : > { %v5212_v2 = vpop.eup %5211  ;;  %5225 = vpow2.f32 %v3368_v0  ;;  %4840 = vmatmul.mubr.bf16.vlgmr.msra.gmra.mxu1 %v3549_v38 }
 0x398   : > { %v5214_v48 = vpop.eup %5213  ;;  %v3370_v1 = vmul.f32 1.442695, %v3259_v17  ;;  %v3364_v30 = vmul.f32 1.442695, %v3256_v45  ;;  %4895 = vmatpush3.bf16.msra.mxu1 %v7298_v13  ;;  %3482 = vadd.xlane.f32.xlu1 %v5212_v2  ;;  %v7979_v13 = vld [vmem:[#allocation46_spill] sm:$0xff]  ;;  %v3551_v43 = vpack.c.bf16 %v5212_v2, %v5210_v58 }
 0x399   : > { %4888 = vmatprep.subr.bf16.mxu1 %v7278_v56  ;;  %3476 = vadd.xlane.f32.xlu0 %v5214_v48  ;;  %v3175_v8 = vpop.xlane.xlu1 %3174 }
 0x39a   : > { %5227 = vpow2.f32 %v3370_v1  ;;  %v3257_v49 = vsub.f32 %v7978_v35, %v3175_v8 }
 0x39b   : > { %v5216_v39 = vpop.eup %5215  ;;  %5229 = vpow2.f32 %v3364_v30  ;;  %v3185_v20 = vpop.xlane.xlu0 %3184 }
 0x39c   : > { %v5218_v32 = vpop.eup %5217  ;;  %v3366_v61 = vmul.f32 1.442695, %v3257_v49  ;;  %4896 = vmatpush3.bf16.msra.mxu1 %v7278_v56  ;;  %3478 = vadd.xlane.f32.xlu1 %v5216_v39  ;;  %v3550_v5 = vpack.c.bf16 %v5216_v39, %v5214_v48  ;;  %v3262_v7 = vsub.f32 %v7979_v13, %v3185_v20 }
 0x39d   : > { %4889 = vmatprep.subr.bf16.mxu1 %v7958_v34  ;;  %3488 = vadd.xlane.f32.xlu0 %v5218_v32 }
 0x39e   : > { %5231 = vpow2.f32 %v3366_v61  ;;  %4843 = vmatprep.mubr.bf16.mxu1 %v3550_v5  ;;  %v3376_v59 = vmul.f32 1.442695, %v3262_v7 }
 0x39f   : > { %v5220_v11 = vpop.eup %5219  ;;  %4844 = vmatmul.mubr.bf16.gmra.mxu1 %v3551_v43  ;;  %v3187_v29 = vpop.xlane.xlu1 %3186 }
 0x3a0   : > { %v5222_v25 = vpop.eup %5221  ;;  %4897 = vmatpush3.bf16.msra.mxu1 %v7958_v34  ;;  %3490 = vadd.xlane.f32.xlu1 %v5220_v11  ;;  %v3181_v56 = vpop.xlane.xlu0 %3180  ;;  %5233 = vpow2.f32 %v3376_v59  ;;  %v3263_v9 = vsub.f32 %v7980_v26, %v3187_v29  ;;  %v3553_v44 = vpack.c.bf16 %v5220_v11, %v5218_v32 }
 0x3a1   : > { %4890 = vmatprep.subr.bf16.mxu1 %v7961_v63  ;;  %3484 = vadd.xlane.f32.xlu0 %v5222_v25  ;;  %v3260_v42 = vsub.f32 %v7981_v23, %v3181_v56 }
 0x3a2   : > { %v3378_v52 = vmul.f32 1.442695, %v3263_v9 }
 0x3a3   : > { %v5224_v10 = vpop.eup %5223  ;;  %v3372_v60 = vmul.f32 1.442695, %v3260_v42  ;;  %v3183_v47 = vpop.xlane.xlu1 %3182 }
 0x3a4   : > { %v5226_v40 = vpop.eup %5225  ;;  %4898 = vmatpush3.bf16.msra.mxu1 %v7961_v63  ;;  %3486 = vadd.xlane.f32.xlu1 %v5224_v10  ;;  %v3552_v34 = vpack.c.bf16 %v5224_v10, %v5222_v25  ;;  %5235 = vpow2.f32 %v3378_v52  ;;  %v3261_v19 = vsub.f32 %v7982_v18, %v3183_v47 }
 0x3a5   : > { %4891 = vmatprep.subr.bf16.mxu1 %v7964_v22  ;;  %3496 = vadd.xlane.f32.xlu0 %v5226_v40  ;;  %5237 = vpow2.f32 %v3372_v60  ;;  %v3189_v3 = vpop.xlane.xlu0 %3188 }
 0x3a6   : > { %4847 = vmatprep.mubr.bf16.mxu1 %v3552_v34  ;;  %v3374_v46 = vmul.f32 1.442695, %v3261_v19  ;;  %v3264_v58 = vsub.f32 %v7387_v33, %v3189_v3 }
 0x3a7   : > { %v5228_v16 = vpop.eup %5227  ;;  %4848 = vmatmul.mubr.bf16.gmra.mxu1 %v3553_v44 }
 0x3a8   : > { %v5230_v14 = vpop.eup %5229  ;;  %4899 = vmatpush3.bf16.msra.mxu1 %v7964_v22  ;;  %3498 = vadd.xlane.f32.xlu1 %v5228_v16  ;;  %5239 = vpow2.f32 %v3374_v46  ;;  %v3380_v63 = vmul.f32 1.442695, %v3264_v58  ;;  %v3555_v28 = vpack.c.bf16 %v5228_v16, %v5226_v40 }
 0x3a9   : > { %4892 = vmatprep.subr.bf16.mxu1 %v7967_v15  ;;  %3492 = vadd.xlane.f32.xlu0 %v5230_v14  ;;  %v3191_v0 = vpop.xlane.xlu1 %3190 }
 0x3aa   : > { %v3265_v38 = vsub.f32 %v7395_v37, %v3191_v0  ;;  %5241 = vpow2.f32 %v3380_v63 }
 0x3ab   : > { %v5232_v4 = vpop.eup %5231  ;;  %v3201_v50 = vpop.xlane.xlu0 %3200 }
 0x3ac   : > { %4900 = vmatpush3.bf16.msra.mxu1 %v7967_v15  ;;  %3494 = vadd.xlane.f32.xlu1 %v5232_v4  ;;  %v3554_v36 = vpack.c.bf16 %v5232_v4, %v5230_v14  ;;  %v3382_v33 = vmul.f32 1.442695, %v3265_v38  ;;  %v3270_v17 = vsub.f32 %v7399_v12, %v3201_v50 }
 0x3ad   : > { %4893 = vmatprep.subr.bf16.mxu1 %v7970_v62  ;;  %v5234_v22 = vpop.eup %5233 }
 0x3ae   : > { %4851 = vmatprep.mubr.bf16.mxu1 %v3554_v36  ;;  %5243 = vpow2.f32 %v3382_v33  ;;  %3504 = vadd.xlane.f32.xlu0 %v5234_v22  ;;  %v3392_v48 = vmul.f32 1.442695, %v3270_v17 }
 0x3af   : > { %4852 = vmatmul.mubr.bf16.gmra.mxu1 %v3555_v28  ;;  %v3203_v37 = vpop.xlane.xlu1 %3202  ;;  %v3197_v31 = vpop.xlane.xlu0 %3196 }
 0x3b0   : > { %4901 = vmatpush3.bf16.msra.mxu1 %v7970_v62  ;;  %v3271_v15 = vsub.f32 %v7407_v51, %v3203_v37  ;;  %v3268_v45 = vsub.f32 %v7404_v55, %v3197_v31  ;;  %5245 = vpow2.f32 %v3392_v48 }
 0x3b1   : > { %4894 = vmatprep.subr.bf16.mxu1 %v7973_v24  ;;  %v5236_v2 = vpop.eup %5235 }
 0x3b2   : > { %v5238_v1 = vpop.eup %5237  ;;  %v3394_v30 = vmul.f32 1.442695, %v3271_v15  ;;  %3506 = vadd.xlane.f32.xlu1 %v5236_v2  ;;  %v3388_v12 = vmul.f32 1.442695, %v3268_v45  ;;  %v3557_v61 = vpack.c.bf16 %v5236_v2, %v5234_v22 }
 0x3b3   : > { %3500 = vadd.xlane.f32.xlu0 %v5238_v1  ;;  %v3199_v8 = vpop.xlane.xlu1 %3198  ;;  %v3193_v35 = vpop.xlane.xlu0 %3192 }
 0x3b4   : > { %4902 = vmatpush3.bf16.msra.mxu1 %v7973_v24  ;;  %v3269_v62 = vsub.f32 %v7418_v53, %v3199_v8  ;;  %v3266_v49 = vsub.f32 %v7415_v54, %v3193_v35  ;;  %5247 = vpow2.f32 %v3394_v30 }
 0x3b5   : > { %v5240_v39 = vpop.eup %5239  ;;  %5249 = vpow2.f32 %v3388_v12 }
 0x3b6   : > { %v3390_v51 = vmul.f32 1.442695, %v3269_v62  ;;  %v3384_v55 = vmul.f32 1.442695, %v3266_v49  ;;  %3502 = vadd.xlane.f32.xlu1 %v5240_v39  ;;  %v3556_v32 = vpack.c.bf16 %v5240_v39, %v5238_v1 }
 0x3b7   : > { %v3195_v20 = vpop.xlane.xlu1 %3194  ;;  %v3205_v5 = vpop.xlane.xlu0 %3204 }
 0x3b8   : > { %5251 = vpow2.f32 %v3390_v51  ;;  %v3267_v24 = vsub.f32 %v7424_v21, %v3195_v20  ;;  %v3272_v13 = vsub.f32 %v7427_v6, %v3205_v5  ;;  %4871 = vmatprep.mubr.bf16.mxu0 %v3556_v32  ;;  %v5242_v54 = vpop.eup %5241 }
 0x3b9   : > { %5253 = vpow2.f32 %v3384_v55  ;;  %4872 = vmatmul.mubr.bf16.vlgmr.msra.gmra.mxu0 %v3557_v61 }
 0x3ba   : > { %v3386_v53 = vmul.f32 1.442695, %v3267_v24  ;;  %v3396_v43 = vmul.f32 1.442695, %v3272_v13 }
 0x3bb   : > { %v5244_v7 = vpop.eup %5243  ;;  %v3207_v11 = vpop.xlane.xlu1 %3206 }
 0x3bc   : > { %v3209_v59 = vpop.xlane.xlu0 %3208  ;;  %5255 = vpow2.f32 %v3386_v53  ;;  %v3273_v25 = vsub.f32 %v7438_v41, %v3207_v11  ;;  %v3558_v56 = vpack.c.bf16 %v5244_v7, %v5242_v54 }
 0x3bd   : > { %v3274_v29 = vsub.f32 %v7435_v27, %v3209_v59  ;;  %5257 = vpow2.f32 %v3396_v43  ;;  %v5246_v23 = vpop.eup %5245 }
 0x3be   : > { %v3398_v26 = vmul.f32 1.442695, %v3273_v25  ;;  %4875 = vmatprep.mubr.bf16.mxu0 %v3558_v56 }
 0x3bf   : > { %v3400_v21 = vmul.f32 1.442695, %v3274_v29  ;;  %v3211_v6 = vpop.xlane.xlu1 %3210 }
 0x3c0   : > { %5259 = vpow2.f32 %v3398_v26  ;;  %v3275_v9 = vsub.f32 %v7444_v57, %v3211_v6  ;;  %v3405_v3 = vpop.xlane.xlu0 %3404 }
 0x3c1   : > { %v5248_v10 = vpop.eup %5247  ;;  %5261 = vpow2.f32 %v3400_v21 }
 0x3c2   : > { %v3402_v42 = vmul.f32 1.442695, %v3275_v9  ;;  %v5250_v52 = vpop.eup %5249  ;;  %v3561_v47 = vpack.c.bf16 %v5248_v10, %v5246_v23 }
 0x3c3   : > { %v3411_v58 = vpop.xlane.xlu1 %3410 }
 0x3c4   : > { %5263 = vpow2.f32 %v3402_v42  ;;  %v3409_v14 = vpop.xlane.xlu0 %3408 }
 0x3c5   : > { %v5252_v60 = vpop.eup %5251  ;;  %5265 = vrcp.f32 %v3409_v14 }
 0x3c6   : > { %v5254_v40 = vpop.eup %5253  ;;  %v3560_v41 = vpack.c.bf16 %v5252_v60, %v5250_v52  ;;  %5267 = vrcp.f32 %v3405_v3 }
 0x3c7   : > { %3512 = vadd.xlane.f32.xlu0 %v5254_v40  ;;  %5269 = vrcp.f32 %v3411_v58 }
 0x3c8   : > { %4879 = vmatprep.mubr.bf16.mxu1 %v3560_v41  ;;  %v3407_v63 = vpop.xlane.xlu1 %3406  ;;  %v3417_v0 = vpop.xlane.xlu0 %3416 }
 0x3c9   : > { %v5256_v27 = vpop.eup %5255  ;;  %4880 = vmatmul.mubr.bf16.vlgmr.msra.gmra.mxu1 %v3561_v47  ;;  %5271 = vrcp.f32 %v3407_v63 }
 0x3ca   : > { %3514 = vadd.xlane.f32.xlu1 %v5256_v27  ;;  %v3559_v34 = vpack.c.bf16 %v5256_v27, %v5254_v40  ;;  %v5258_v18 = vpop.eup %5257  ;;  %5273 = vrcp.f32 %v3417_v0 }
 0x3cb   : > { %3508 = vadd.xlane.f32.xlu0 %v5242_v54 }
 0x3cc   : > { %4876 = vmatmul.mubr.bf16.gmra.mxu0 %v3559_v34  ;;  %v3419_v4 = vpop.xlane.xlu1 %3418  ;;  %v3413_v38 = vpop.xlane.xlu0 %3412 }
 0x3cd   : > { %v5260_v57 = vpop.eup %5259  ;;  %5275 = vrcp.f32 %v3413_v38 }
 0x3ce   : > { %3510 = vadd.xlane.f32.xlu1 %v5244_v7  ;;  %v3562_v19 = vpack.c.bf16 %v5260_v57, %v5258_v18  ;;  %v5262_v44 = vpop.eup %5261  ;;  %5277 = vrcp.f32 %v3419_v4 }
 0x3cf   : > { %3520 = vadd.xlane.f32.xlu0 %v5246_v23 }
 0x3d0   : > { %4883 = vmatprep.mubr.bf16.mxu1 %v3562_v19  ;;  %v3415_v50 = vpop.xlane.xlu1 %3414  ;;  %v3425_v36 = vpop.xlane.xlu0 %3424 }
 0x3d1   : > { %v5264_v16 = vpop.eup %5263  ;;  %5279 = vrcp.f32 %v3415_v50 }
 0x3d2   : > { %3522 = vadd.xlane.f32.xlu1 %v5248_v10  ;;  %v3563_v46 = vpack.c.bf16 %v5264_v16, %v5262_v44  ;;  %v5266_v17 = vpop.eup %5265  ;;  %5281 = vrcp.f32 %v3425_v36 }
 0x3d3   : > { %3516 = vadd.xlane.f32.xlu0 %v5250_v52  ;;  %v5268_v45 = vpop.eup %5267 }
 0x3d4   : > { %4884 = vmatmul.mubr.bf16.gmra.mxu1 %v3563_v46  ;;  %v3427_v33 = vpop.xlane.xlu1 %3426  ;;  %v3421_v28 = vpop.xlane.xlu0 %3420 }
 0x3d5   : > { %v5270_v30 = vpop.eup %5269  ;;  %5283 = vrcp.f32 %v3421_v28 }
 0x3d6   : > { %3518 = vadd.xlane.f32.xlu1 %v5252_v60  ;;  %v5272_v35 = vpop.eup %5271  ;;  %5285 = vrcp.f32 %v3427_v33 }
 0x3d7   : > { %3524 = vadd.xlane.f32.xlu0 %v5258_v18  ;;  %v5274_v55 = vpop.eup %5273 }
 0x3d8   : > { %v3423_v22 = vpop.xlane.xlu1 %3422  ;;  %v3433_v37 = vpop.xlane.xlu0 %3432 }
 0x3d9   : > { %5287 = vrcp.f32 %v3423_v22 }
 0x3da   : > { %3526 = vadd.xlane.f32.xlu1 %v5260_v57  ;;  %v5276_v5 = vpop.eup %5275  ;;  %5289 = vrcp.f32 %v3433_v37 }
 0x3db   : > { %3528 = vadd.xlane.f32.xlu0 %v5262_v44  ;;  %v5278_v53 = vpop.eup %5277 }
 0x3dc   : > { %v3435_v48 = vpop.xlane.xlu1 %3434  ;;  %v3429_v62 = vpop.xlane.xlu0 %3428 }
 0x3dd   : > { %5291 = vrcp.f32 %v3429_v62 }
 0x3de   : > { %3530 = vadd.xlane.f32.xlu1 %v5264_v16  ;;  %v5280_v11 = vpop.eup %5279  ;;  %5293 = vrcp.f32 %v3435_v48 }
 0x3df   : > { %v5282_v56 = vpop.eup %5281 }
 0x3e0   : > { %v3431_v51 = vpop.xlane.xlu1 %3430 }
 0x3e1   : > { %5295 = vrcp.f32 %v3431_v51 }
 0x3e2   : > { %v5284_v9 = vpop.eup %5283 }
 0x3e3   : > { %v5286_v10 = vpop.eup %5285 }
 0x3e6   : > { %v5288_v41 = vpop.eup %5287 }
 0x3e7   : > { %v5290_v18 = vpop.eup %5289 }
 0x3ea   : > { %v5292_v44 = vpop.eup %5291 }
 0x3eb   : > { %v5294_v58 = vpop.eup %5293 }
 0x3ee   : > { %v5296_v4 = vpop.eup %5295 }
 0x3f4   : > { %v4777_v31 = vpop.f32.mrf.mxu1  ;;  %v7555_v32 = vpop.xlane.xlu0 %3440 }
 0x3f5   : > { %v4018_v15 = vmul.f32 %v5266_v17, %v4777_v31  ;;  %5297 = vrcp.f32 %v7555_v32 }
 0x3f6   : > { %v3598_v2 = vpop.f32.mrf.mxu1 }
 0x3f7   : > { %4082 = vst [vmem:[%s7549_s25 + $0x10] sm:$0xff] %v4018_v15  ;;  %v4016_v1 = vmul.f32 %v5268_v45, %v3598_v2 }
 0x3f8   : > { %v4778_v12 = vpop.f32.mrf.mxu1  ;;  %v3443_v13 = vpop.xlane.xlu1 %3442 }
 0x3f9   : > { %4080 = vst [vmem:[%s7549_s25] sm:$0xff] %v4016_v1  ;;  %v4019_v8 = vmul.f32 %v5270_v30, %v4778_v12  ;;  %v3437_v59 = vpop.xlane.xlu0 %3436 }
 0x3fa   : > { %v3601_v49 = vpop.f32.mrf.mxu1  ;;  %5299 = vrcp.f32 %v3437_v59 }
 0x3fb   : > { %4083 = vst [vmem:[%s7549_s25 + $0x18] sm:$0xff] %v4019_v8  ;;  %v4017_v39 = vmul.f32 %v5272_v35, %v3601_v49  ;;  %5301 = vrcp.f32 %v3443_v13 }
 0x3fc   : > { %v3439_v21 = vpop.xlane.xlu1 %3438 }
 0x3fd   : > { %4081 = vst [vmem:[%s7549_s25 + $0x8] sm:$0xff] %v4017_v39  ;;  %v3449_v52 = vpop.xlane.xlu0 %3448  ;;  %5303 = vrcp.f32 %v3439_v21 }
 0x3fe   : > { %v4781_v61 = vpop.f32.mrf.mxu1  ;;  %5305 = vrcp.f32 %v3449_v52 }
 0x3ff   : > { %v4022_v20 = vmul.f32 %v5274_v55, %v4781_v61 }
 0x400   : > { %v3614_v24 = vpop.f32.mrf.mxu1  ;;  %v3451_v27 = vpop.xlane.xlu1 %3450 }
 0x401   : > { %4086 = vst [vmem:[%s7549_s25 + $0x30] sm:$0xff] %v4022_v20  ;;  %v4020_v54 = vmul.f32 %v5276_v5, %v3614_v24  ;;  %v3445_v3 = vpop.xlane.xlu0 %3444 }
 0x402   : > { %v4782_v7 = vpop.f32.mrf.mxu1  ;;  %5307 = vrcp.f32 %v3445_v3  ;;  %v5298_v1 = vpop.eup %5297 }
 0x403   : > { %4084 = vst [vmem:[%s7549_s25 + $0x20] sm:$0xff] %v4020_v54  ;;  %v4023_v43 = vmul.f32 %v5278_v53, %v4782_v7  ;;  %5309 = vrcp.f32 %v3451_v27 }
 0x404   : > { %v3617_v25 = vpop.f32.mrf.mxu1  ;;  %v3447_v63 = vpop.xlane.xlu1 %3446 }
 0x405   : > { %4087 = vst [vmem:[%s7549_s25 + $0x38] sm:$0xff] %v4023_v43  ;;  %v4021_v29 = vmul.f32 %v5280_v11, %v3617_v25  ;;  %v3457_v36 = vpop.xlane.xlu0 %3456  ;;  %5311 = vrcp.f32 %v3447_v63 }
 0x406   : > { %v4785_v26 = vpop.f32.mrf.mxu1  ;;  %5313 = vrcp.f32 %v3457_v36 }
 0x407   : > { %4085 = vst [vmem:[%s7549_s25 + $0x28] sm:$0xff] %v4021_v29  ;;  %v4026_v6 = vmul.f32 %v5282_v56, %v4785_v26  ;;  %v5300_v35 = vpop.eup %5299 }
 0x408   : > { %v3630_v23 = vpop.f32.mrf.mxu1  ;;  %v3459_v33 = vpop.xlane.xlu1 %3458 }
 0x409   : > { %4090 = vst [vmem:[%s7549_s25 + $0x50] sm:$0xff] %v4026_v6  ;;  %v4024_v42 = vmul.f32 %v5284_v9, %v3630_v23  ;;  %v3453_v28 = vpop.xlane.xlu0 %3452  ;;  %v5302_v39 = vpop.eup %5301 }
 0x40a   : > { %v4786_v60 = vpop.f32.mrf.mxu1  ;;  %5315 = vrcp.f32 %v3453_v28  ;;  %v5304_v61 = vpop.eup %5303 }
 0x40b   : > { %4088 = vst [vmem:[%s7549_s25 + $0x40] sm:$0xff] %v4024_v42  ;;  %v4027_v40 = vmul.f32 %v5286_v10, %v4786_v60  ;;  %5317 = vrcp.f32 %v3459_v33  ;;  %v5306_v13 = vpop.eup %5305 }
 0x40c   : > { %v3633_v47 = vpop.f32.mrf.mxu1  ;;  %v3455_v22 = vpop.xlane.xlu1 %3454 }
 0x40d   : > { %4091 = vst [vmem:[%s7549_s25 + $0x58] sm:$0xff] %v4027_v40  ;;  %v4025_v34 = vmul.f32 %v5288_v41, %v3633_v47  ;;  %v3465_v17 = vpop.xlane.xlu0 %3464  ;;  %5319 = vrcp.f32 %v3455_v22 }
 0x40e   : > { %v4789_v57 = vpop.f32.mrf.mxu1  ;;  %5321 = vrcp.f32 %v3465_v17 }
 0x40f   : > { %4089 = vst [vmem:[%s7549_s25 + $0x48] sm:$0xff] %v4025_v34  ;;  %v4030_v19 = vmul.f32 %v5290_v18, %v4789_v57  ;;  %v5308_v7 = vpop.eup %5307 }
 0x410   : > { %v3646_v16 = vpop.f32.mrf.mxu1  ;;  %v3467_v37 = vpop.xlane.xlu1 %3466 }
 0x411   : > { %4094 = vst [vmem:[%s7549_s25 + $0x70] sm:$0xff] %v4030_v19  ;;  %v4028_v46 = vmul.f32 %v5292_v44, %v3646_v16  ;;  %v3461_v31 = vpop.xlane.xlu0 %3460  ;;  %v5310_v25 = vpop.eup %5309 }
 0x412   : > { %v4790_v14 = vpop.f32.mrf.mxu1  ;;  %5323 = vrcp.f32 %v3461_v31  ;;  %v5312_v21 = vpop.eup %5311 }
 0x413   : > { %4092 = vst [vmem:[%s7549_s25 + $0x60] sm:$0xff] %v4028_v46  ;;  %v4031_v0 = vmul.f32 %v5294_v58, %v4790_v14  ;;  %5325 = vrcp.f32 %v3467_v37  ;;  %v5314_v23 = vpop.eup %5313 }
 0x414   : > { %v3649_v38 = vpop.f32.mrf.mxu1  ;;  %v3463_v15 = vpop.xlane.xlu1 %3462 }
 0x415   : > { %4095 = vst [vmem:[%s7549_s25 + $0x78] sm:$0xff] %v4031_v0  ;;  %v4029_v50 = vmul.f32 %v5296_v4, %v3649_v38  ;;  %v3473_v45 = vpop.xlane.xlu0 %3472  ;;  %5327 = vrcp.f32 %v3463_v15 }
 0x416   : > { %5329 = vrcp.f32 %v3473_v45 }
 0x417   : > { %4093 = vst [vmem:[%s7549_s25 + $0x68] sm:$0xff] %v4029_v50  ;;  %v5316_v60 = vpop.eup %5315 }
 0x418   : > { %v5318_v27 = vpop.eup %5317 }
 0x419   : > { %v7570_v2 = vpop.xlane.xlu1 %3474 }
 0x41a   : > { %v3469_v48 = vpop.xlane.xlu0 %3468  ;;  %v5320_v57 = vpop.eup %5319 }
 0x41b   : > { %5331 = vrcp.f32 %v3469_v48  ;;  %v5322_v16 = vpop.eup %5321 }
 0x41c   : > { %5333 = vrcp.f32 %v7570_v2 }
 0x41d   : > { %v7572_v12 = vpop.xlane.xlu1 %3470 }
 0x41e   : > { %v7575_v51 = vpop.xlane.xlu0 %3480  ;;  %5335 = vrcp.f32 %v7572_v12 }
 0x41f   : > { %v5324_v63 = vpop.eup %5323  ;;  %5337 = vrcp.f32 %v7575_v51 }
 0x420   : > { %v5326_v38 = vpop.eup %5325 }
 0x421   : > { %v7578_v5 = vpop.xlane.xlu1 %3482 }
 0x422   : > { %v3477_v43 = vpop.xlane.xlu0 %3476  ;;  %v5328_v28 = vpop.eup %5327 }
 0x423   : > { %5339 = vrcp.f32 %v3477_v43  ;;  %v5330_v31 = vpop.eup %5329 }
 0x424   : > { %5341 = vrcp.f32 %v7578_v5 }
 0x425   : > { %v3479_v56 = vpop.xlane.xlu1 %3478 }
 0x426   : > { %v3489_v42 = vpop.xlane.xlu0 %3488  ;;  %5343 = vrcp.f32 %v3479_v56 }
 0x427   : > { %5345 = vrcp.f32 %v3489_v42 }
 0x428   : > { %v5332_v2 = vpop.eup %5331 }
 0x429   : > { %v3491_v41 = vpop.xlane.xlu1 %3490  ;;  %v5334_v12 = vpop.eup %5333 }
 0x42a   : > { %v3485_v19 = vpop.xlane.xlu0 %3484 }
 0x42b   : > { %5347 = vrcp.f32 %v3485_v19 }
 0x42c   : > { %5349 = vrcp.f32 %v3491_v41 }
 0x42d   : > { %v3487_v58 = vpop.xlane.xlu1 %3486 }
 0x42e   : > { %v3497_v50 = vpop.xlane.xlu0 %3496  ;;  %5351 = vrcp.f32 %v3487_v58 }
 0x42f   : > { %5353 = vrcp.f32 %v3497_v50 }
 0x431   : > { %v3499_v17 = vpop.xlane.xlu1 %3498 }
 0x432   : > { %v3493_v48 = vpop.xlane.xlu0 %3492 }
 0x433   : > { %5355 = vrcp.f32 %v3493_v48 }
 0x434   : > { %5357 = vrcp.f32 %v3499_v17 }
 0x436   : > { %v4809_v30 = vpop.f32.mrf.mxu0 }
 0x437   : > { %v4034_v8 = vmul.f32 %v5298_v1, %v4809_v30 }
 0x438   : > { %v3695_v62 = vpop.f32.mrf.mxu0 }
 0x439   : > { %4098 = vst [vmem:[%s7549_s25 + $0x90] sm:$0xff] %v4034_v8  ;;  %v4032_v49 = vmul.f32 %v5300_v35, %v3695_v62  ;;  %v3495_v35 = vpop.xlane.xlu1 %3494 }
 0x43a   : > { %v4810_v55 = vpop.f32.mrf.mxu0  ;;  %5359 = vrcp.f32 %v3495_v35 }
 0x43b   : > { %4096 = vst [vmem:[%s7549_s25 + $0x80] sm:$0xff] %v4032_v49  ;;  %v4035_v32 = vmul.f32 %v5302_v39, %v4810_v55  ;;  %v5336_v49 = vpop.eup %5335  ;;  %v3505_v39 = vpop.xlane.xlu0 %3504 }
 0x43c   : > { %v3698_v20 = vpop.f32.mrf.mxu0  ;;  %5361 = vrcp.f32 %v3505_v39 }
 0x43d   : > { %4099 = vst [vmem:[%s7549_s25 + $0x98] sm:$0xff] %v4035_v32  ;;  %v4033_v24 = vmul.f32 %v5304_v61, %v3698_v20  ;;  %v5338_v32 = vpop.eup %5337  ;;  %v3507_v20 = vpop.xlane.xlu1 %3506 }
 0x43e   : > { %v4813_v54 = vpop.f32.mrf.mxu0 }
 0x43f   : > { %4097 = vst [vmem:[%s7549_s25 + $0x88] sm:$0xff] %v4033_v24  ;;  %v4038_v53 = vmul.f32 %v5306_v13, %v4813_v54  ;;  %v5340_v24 = vpop.eup %5339 }
 0x440   : > { %v3711_v11 = vpop.f32.mrf.mxu0 }
 0x441   : > { %4102 = vst [vmem:[%s7549_s25 + $0xb0] sm:$0xff] %v4038_v53  ;;  %v4036_v59 = vmul.f32 %v5308_v7, %v3711_v11  ;;  %v5342_v53 = vpop.eup %5341  ;;  %v3501_v7 = vpop.xlane.xlu0 %3500 }
 0x442   : > { %v4814_v29 = vpop.f32.mrf.mxu0  ;;  %5363 = vrcp.f32 %v3501_v7 }
 0x443   : > { %4100 = vst [vmem:[%s7549_s25 + $0xa0] sm:$0xff] %v4036_v59  ;;  %v4039_v26 = vmul.f32 %v5310_v25, %v4814_v29  ;;  %v5344_v59 = vpop.eup %5343  ;;  %v3503_v29 = vpop.xlane.xlu1 %3502  ;;  %5365 = vrcp.f32 %v3507_v20 }
 0x444   : > { %v3714_v6 = vpop.f32.mrf.mxu0  ;;  %5367 = vrcp.f32 %v3503_v29 }
 0x445   : > { %4103 = vst [vmem:[%s7549_s25 + $0xb8] sm:$0xff] %v4039_v26  ;;  %v4037_v9 = vmul.f32 %v5312_v21, %v3714_v6  ;;  %v5346_v26 = vpop.eup %5345 }
 0x446   : > { %v4817_v10 = vpop.f32.mrf.mxu0 }
 0x447   : > { %4101 = vst [vmem:[%s7549_s25 + $0xa8] sm:$0xff] %v4037_v9  ;;  %v4042_v52 = vmul.f32 %v5314_v23, %v4817_v10  ;;  %v5348_v23 = vpop.eup %5347 }
 0x448   : > { %v3727_v40 = vpop.f32.mrf.mxu0 }
 0x449   : > { %4106 = vst [vmem:[%s7549_s25 + $0xd0] sm:$0xff] %v4042_v52  ;;  %v4040_v47 = vmul.f32 %v5316_v60, %v3727_v40  ;;  %v5350_v52 = vpop.eup %5349 }
 0x44a   : > { %v4818_v34 = vpop.f32.mrf.mxu0 }
 0x44b   : > { %4104 = vst [vmem:[%s7549_s25 + $0xc0] sm:$0xff] %v4040_v47  ;;  %v4043_v18 = vmul.f32 %v5318_v27, %v4818_v34  ;;  %v5352_v47 = vpop.eup %5351 }
 0x44c   : > { %v3730_v44 = vpop.f32.mrf.mxu0 }
 0x44d   : > { %4107 = vst [vmem:[%s7549_s25 + $0xd8] sm:$0xff] %v4043_v18  ;;  %v4041_v3 = vmul.f32 %v5320_v57, %v3730_v44  ;;  %v5354_v57 = vpop.eup %5353 }
 0x44e   : > { %v4821_v46 = vpop.f32.mrf.mxu0 }
 0x44f   : > { %4105 = vst [vmem:[%s7549_s25 + $0xc8] sm:$0xff] %v4041_v3  ;;  %v4046_v14 = vmul.f32 %v5322_v16, %v4821_v46  ;;  %v5356_v3 = vpop.eup %5355 }
 0x450   : > { %v3743_v0 = vpop.f32.mrf.mxu0  ;;  %v3513_v21 = vpop.xlane.xlu0 %3512 }
 0x451   : > { %4110 = vst [vmem:[%s7549_s25 + $0xf0] sm:$0xff] %v4046_v14  ;;  %v4044_v4 = vmul.f32 %v5324_v63, %v3743_v0  ;;  %v5358_v14 = vpop.eup %5357 }
 0x452   : > { %v4822_v36 = vpop.f32.mrf.mxu0 }
 0x453   : > { %4108 = vst [vmem:[%s7549_s25 + $0xe0] sm:$0xff] %v4044_v4  ;;  %v4047_v33 = vmul.f32 %v5326_v38, %v4822_v36  ;;  %v3515_v60 = vpop.xlane.xlu1 %3514  ;;  %v5360_v38 = vpop.eup %5359 }
 0x454   : > { %v3746_v22 = vpop.f32.mrf.mxu0  ;;  %v3509_v27 = vpop.xlane.xlu0 %3508 }
 0x455   : > { %4111 = vst [vmem:[%s7549_s25 + $0xf8] sm:$0xff] %v4047_v33  ;;  %v4045_v37 = vmul.f32 %v5328_v28, %v3746_v22  ;;  %v5362_v22 = vpop.eup %5361 }
 0x457   : > { %v4841_v15 = vpop.f32.mrf.mxu1  ;;  %4109 = vst [vmem:[%s7549_s25 + $0xe8] sm:$0xff] %v4045_v37  ;;  %v3511_v16 = vpop.xlane.xlu1 %3510 }
 0x458   : > { %v4050_v45 = vmul.f32 %v5330_v31, %v4841_v15  ;;  %v3521_v63 = vpop.xlane.xlu0 %3520  ;;  %v5364_v31 = vpop.eup %5363 }
 0x459   : > { %v3792_v1 = vpop.f32.mrf.mxu1  ;;  %5369 = vrcp.f32 %v3521_v63  ;;  %v5366_v48 = vpop.eup %5365 }
 0x45a   : > { %4114 = vst [vmem:[%s7549_s25 + $0x110] sm:$0xff] %v4050_v45  ;;  %v4048_v30 = vmul.f32 %v5332_v2, %v3792_v1 }
 0x45b   : > { %v4842_v8 = vpop.f32.mrf.mxu1  ;;  %v3523_v33 = vpop.xlane.xlu1 %3522 }
 0x45c   : > { %4112 = vst [vmem:[%s7549_s25 + $0x100] sm:$0xff] %v4048_v30  ;;  %v4051_v62 = vmul.f32 %v5334_v12, %v4842_v8  ;;  %v3517_v28 = vpop.xlane.xlu0 %3516  ;;  %v5368_v8 = vpop.eup %5367 }
 0x45d   : > { %v3795_v51 = vpop.f32.mrf.mxu1  ;;  %5371 = vrcp.f32 %v3517_v28 }
 0x45e   : > { %4115 = vst [vmem:[%s7549_s25 + $0x118] sm:$0xff] %v4051_v62  ;;  %v4049_v55 = vmul.f32 %v5336_v49, %v3795_v51  ;;  %5373 = vrcp.f32 %v3513_v21 }
 0x45f   : > { %v4845_v61 = vpop.f32.mrf.mxu1  ;;  %v3519_v45 = vpop.xlane.xlu1 %3518  ;;  %5375 = vrcp.f32 %v3523_v33 }
 0x460   : > { %4113 = vst [vmem:[%s7549_s25 + $0x108] sm:$0xff] %v4049_v55  ;;  %v4054_v5 = vmul.f32 %v5338_v32, %v4845_v61  ;;  %v3525_v30 = vpop.xlane.xlu0 %3524  ;;  %5377 = vrcp.f32 %v3509_v27 }
 0x461   : > { %v3808_v13 = vpop.f32.mrf.mxu1  ;;  %5379 = vrcp.f32 %v3519_v45 }
 0x462   : > { %4118 = vst [vmem:[%s7549_s25 + $0x130] sm:$0xff] %v4054_v5  ;;  %v4052_v54 = vmul.f32 %v5340_v24, %v3808_v13  ;;  %5381 = vrcp.f32 %v3515_v60 }
 0x463   : > { %v4846_v43 = vpop.f32.mrf.mxu1  ;;  %v3527_v49 = vpop.xlane.xlu1 %3526  ;;  %5383 = vrcp.f32 %v3511_v16 }
 0x464   : > { %4116 = vst [vmem:[%s7549_s25 + $0x120] sm:$0xff] %v4052_v54  ;;  %v4055_v11 = vmul.f32 %v5342_v53, %v4846_v43  ;;  %v3529_v39 = vpop.xlane.xlu0 %3528 }
 0x465   : > { %v3811_v25 = vpop.f32.mrf.mxu1  ;;  %5385 = vrcp.f32 %v3529_v39 }
 0x466   : > { %4119 = vst [vmem:[%s7549_s25 + $0x138] sm:$0xff] %v4055_v11  ;;  %v4053_v56 = vmul.f32 %v5344_v59, %v3811_v25  ;;  %v5370_v55 = vpop.eup %5369  ;;  %5387 = vrcp.f32 %v3525_v30 }
 0x467   : > { %v4849_v6 = vpop.f32.mrf.mxu1  ;;  %v3531_v51 = vpop.xlane.xlu1 %3530 }
 0x468   : > { %4117 = vst [vmem:[%s7549_s25 + $0x128] sm:$0xff] %v4053_v56  ;;  %v4058_v9 = vmul.f32 %v5346_v26, %v4849_v6  ;;  %5389 = vrcp.f32 %v3531_v51 }
 0x469   : > { %v3824_v42 = vpop.f32.mrf.mxu1  ;;  %5391 = vrcp.f32 %v3527_v49 }
 0x46a   : > { %4122 = vst [vmem:[%s7549_s25 + $0x150] sm:$0xff] %v4058_v9  ;;  %v4056_v10 = vmul.f32 %v5348_v23, %v3824_v42  ;;  %v5372_v20 = vpop.eup %5371 }
 0x46b   : > { %v4850_v40 = vpop.f32.mrf.mxu1  ;;  %v5374_v24 = vpop.eup %5373 }
 0x46c   : > { %4120 = vst [vmem:[%s7549_s25 + $0x140] sm:$0xff] %v4056_v10  ;;  %v4059_v41 = vmul.f32 %v5350_v52, %v4850_v40  ;;  %v5376_v53 = vpop.eup %5375 }
 0x46d   : > { %v3827_v34 = vpop.f32.mrf.mxu1  ;;  %v5378_v11 = vpop.eup %5377 }
 0x46e   : > { %4123 = vst [vmem:[%s7549_s25 + $0x158] sm:$0xff] %v4059_v41  ;;  %v4057_v18 = vmul.f32 %v5352_v47, %v3827_v34  ;;  %v5380_v29 = vpop.eup %5379 }
 0x46f   : > { %v4853_v19 = vpop.f32.mrf.mxu1  ;;  %v5382_v21 = vpop.eup %5381 }
 0x470   : > { %4121 = vst [vmem:[%s7549_s25 + $0x148] sm:$0xff] %v4057_v18  ;;  %v4062_v44 = vmul.f32 %v5354_v57, %v4853_v19  ;;  %v5384_v42 = vpop.eup %5383 }
 0x471   : > { %v3840_v46 = vpop.f32.mrf.mxu1 }
 0x472   : > { %4126 = vst [vmem:[%s7549_s25 + $0x170] sm:$0xff] %v4062_v44  ;;  %v4060_v58 = vmul.f32 %v5356_v3, %v3840_v46  ;;  %v5386_v60 = vpop.eup %5385 }
 0x473   : > { %v4854_v0 = vpop.f32.mrf.mxu1  ;;  %v5388_v47 = vpop.eup %5387 }
 0x474   : > { %4124 = vst [vmem:[%s7549_s25 + $0x160] sm:$0xff] %v4060_v58  ;;  %v4063_v4 = vmul.f32 %v5358_v14, %v4854_v0 }
 0x475   : > { %v3843_v50 = vpop.f32.mrf.mxu1  ;;  %v5390_v18 = vpop.eup %5389 }
 0x476   : > { %4127 = vst [vmem:[%s7549_s25 + $0x178] sm:$0xff] %v4063_v4  ;;  %v4061_v36 = vmul.f32 %v5360_v38, %v3843_v50  ;;  %v5392_v44 = vpop.eup %5391 }
 0x478   : > { %4125 = vst [vmem:[%s7549_s25 + $0x168] sm:$0xff] %v4061_v36 }
 0x479   : > { %v4873_v17 = vpop.f32.mrf.mxu0 }
 0x47a   : > { %v4066_v37 = vmul.f32 %v5362_v22, %v4873_v17 }
 0x47b   : > { %v3889_v15 = vpop.f32.mrf.mxu0 }
 0x47c   : > { %4130 = vst [vmem:[%s7549_s25 + $0x190] sm:$0xff] %v4066_v37  ;;  %v4064_v2 = vmul.f32 %v5364_v31, %v3889_v15 }
 0x47d   : > { %v4874_v1 = vpop.f32.mrf.mxu0 }
 0x47e   : > { %4128 = vst [vmem:[%s7549_s25 + $0x180] sm:$0xff] %v4064_v2  ;;  %v4067_v12 = vmul.f32 %v5366_v48, %v4874_v1 }
 0x47f   : > { %v3892_v35 = vpop.f32.mrf.mxu0 }
 0x480   : > { %4131 = vst [vmem:[%s7549_s25 + $0x198] sm:$0xff] %v4067_v12  ;;  %v4065_v62 = vmul.f32 %v5368_v8, %v3892_v35 }
 0x482   : > { %4129 = vst [vmem:[%s7549_s25 + $0x188] sm:$0xff] %v4065_v62 }
 0x489   : > { %v4881_v32 = vpop.f32.mrf.mxu1 }
 0x48a   : > { %v4074_v61 = vmul.f32 %v5370_v55, %v4881_v32 }
 0x48b   : > { %v3921_v5 = vpop.f32.mrf.mxu1 }
 0x48c   : > { %4138 = vst [vmem:[%s7549_s25 + $0x1d0] sm:$0xff] %v4074_v61  ;;  %v4072_v13 = vmul.f32 %v5372_v20, %v3921_v5  ;;  %v4877_v54 = vpop.f32.mrf.mxu0 }
 0x48d   : > { %v4070_v7 = vmul.f32 %v5374_v24, %v4877_v54  ;;  %v4882_v43 = vpop.f32.mrf.mxu1 }
 0x48e   : > { %4136 = vst [vmem:[%s7549_s25 + $0x1c0] sm:$0xff] %v4072_v13  ;;  %v4075_v59 = vmul.f32 %v5376_v53, %v4882_v43  ;;  %v3905_v25 = vpop.f32.mrf.mxu0 }
 0x48f   : > { %4134 = vst [vmem:[%s7549_s25 + $0x1b0] sm:$0xff] %v4070_v7  ;;  %v4068_v56 = vmul.f32 %v5378_v11, %v3905_v25  ;;  %v3924_v26 = vpop.f32.mrf.mxu1 }
 0x490   : > { %4139 = vst [vmem:[%s7549_s25 + $0x1d8] sm:$0xff] %v4075_v59  ;;  %v4073_v6 = vmul.f32 %v5380_v29, %v3924_v26  ;;  %v4878_v9 = vpop.f32.mrf.mxu0 }
 0x491   : > { %4132 = vst [vmem:[%s7549_s25 + $0x1a0] sm:$0xff] %v4068_v56  ;;  %v4071_v23 = vmul.f32 %v5382_v21, %v4878_v9 }
 0x492   : > { %4137 = vst [vmem:[%s7549_s25 + $0x1c8] sm:$0xff] %v4073_v6  ;;  %v3908_v10 = vpop.f32.mrf.mxu0 }
 0x493   : > { %4135 = vst [vmem:[%s7549_s25 + $0x1b8] sm:$0xff] %v4071_v23  ;;  %v4069_v52 = vmul.f32 %v5384_v42, %v3908_v10 }
 0x494   : > { %v4885_v40 = vpop.f32.mrf.mxu1 }
 0x495   : > { %4133 = vst [vmem:[%s7549_s25 + $0x1a8] sm:$0xff] %v4069_v52  ;;  %v4078_v41 = vmul.f32 %v5386_v60, %v4885_v40 }
 0x496   : > { %v3937_v27 = vpop.f32.mrf.mxu1 }
 0x497   : > { %4142 = vst [vmem:[%s7549_s25 + $0x1f0] sm:$0xff] %v4078_v41  ;;  %v4076_v34 = vmul.f32 %v5388_v47, %v3937_v27 }
 0x498   : > { %v4886_v57 = vpop.f32.mrf.mxu1 }
 0x499   : > { %4140 = vst [vmem:[%s7549_s25 + $0x1e0] sm:$0xff] %v4076_v34  ;;  %v4079_v19 = vmul.f32 %v5390_v18, %v4886_v57 }
 0x49a   : > { %v3940_v3 = vpop.f32.mrf.mxu1 }
 0x49b   : > { %4143 = vst [vmem:[%s7549_s25 + $0x1f8] sm:$0xff] %v4079_v19  ;;  %v4077_v16 = vmul.f32 %v5392_v44, %v3940_v3 }
 0x49d   : > { %4141 = vst [vmem:[%s7549_s25 + $0x1e8] sm:$0xff] %v4077_v16 }
 0x49e PF: > { %s13_s12 = sadd.s32 1, %s5430_s12  }
 0x49f   : > { %p10_p4 = scmp.ge.s32.totalorder %s13_s12, 4  }
 0x4a1   :  { %12 = sbr.rel (!%p10_p4) target bundleno = 1 (0x1), region = 62 }

</bundles_post_ra>
